<compile_context>
chip_gen: v7x
topology: tpu7x:2x2x1
jax: 0.10.0
libtpu: 0.0.40
codegen_flags: <defaults>
</compile_context>

<pallas_src>
import functools

import jax
import jax.numpy as jnp
from jax.experimental import pallas as pl
from jax.experimental.pallas import tpu as pltpu

NEG_SLOPE = 0.01  # nn.LeakyReLU default negative_slope


def _leaky_relu(x):
    return jnp.where(x >= 0, x, NEG_SLOPE * x)


def _full_spec(shape):
    """Whole-array BlockSpec for a grid=(1,) pallas_call."""
    nd = len(shape)
    return pl.BlockSpec(shape, lambda i, _nd=nd: (0,) * _nd)


# ---------------------------------------------------------------------------
# The fused forward kernel
# ---------------------------------------------------------------------------
def _fused_forward_kernel(
    patches_ref,                # (2, 100*B, 5*C_in)  conv1 patches, both pool branches
    w1_ref, b1_ref,             # (5*C_in, 32), (1, 32)
    w2_ref, b2_ref,             # (5, 32, 64),  (1, 64)   per-tap conv2 weights
    w3_ref, b3_ref,             # (2, 64, 128), (1, 128)  per-tap conv3 weights
    wa1_ref, ba1_ref, wa2_ref,  # (5, 128, 100), (1, 100), (1, 100)
    whin_ref, bhin_ref,         # (5, 128, H), (1, H)
    whid_ref, bhid_ref,         # (n_hidden, H, H), (n_hidden, 1, H)
    whout_ref,                  # (1, H)
    btail_ref,                  # (2,) f32 in SMEM: [b_a2, b_h_out] scalar biases
    o_ref,                      # (B, 128) lane-dense output: lane 0 = arrival, lane 1 = height
    s1p_ref,                    # VMEM scratch (100*B, 32): conv1+pool1 activations
    s2p_ref,                    # VMEM scratch (10*B, 64):  conv2+pool2 activations
    *, batch, n_hidden):
    f32 = jnp.float32
    k2 = w2_ref.shape[0]        # 5
    k3 = w3_ref.shape[0]        # 2
    n_t = wa1_ref.shape[0]      # 5 flattened time positions after conv3
    m1 = n_t * k3 * batch       # 10*B rows of conv2+pool2 output

    # --- stage 1: Conv1d(C_in->32, k=5, s=5) + LeakyReLU + MaxPool1d(2) ------
    # One matmul per pool branch.  Rows are already ordered (j2, u2, b) so the
    # conv-2 taps below read contiguous slabs of s1p.
    w1 = w1_ref[...]
    pre_a = jnp.dot(patches_ref[0], w1, preferred_element_type=f32)
    pre_b = jnp.dot(patches_ref[1], w1, preferred_element_type=f32)
    s1p_ref[...] = _leaky_relu(jnp.maximum(pre_a, pre_b) + b1_ref[...])

    # --- stage 2: Conv1d(32->64, k=5, s=5) + LeakyReLU + MaxPool1d(2) --------
    c2 = w2_ref.shape[2]
    acc_a = jnp.zeros((m1, c2), f32)
    acc_b = jnp.zeros((m1, c2), f32)
    for j in range(k2):
        w2_j = w2_ref[j]
        acc_a = acc_a + jnp.dot(s1p_ref[pl.ds(j * m1, m1), :], w2_j,
                                preferred_element_type=f32)
        acc_b = acc_b + jnp.dot(s1p_ref[pl.ds((k2 + j) * m1, m1), :], w2_j,
                                preferred_element_type=f32)
    s2p_ref[...] = _leaky_relu(jnp.maximum(acc_a, acc_b) + b2_ref[...])

    # --- stage 3: Conv1d(64->128, k=2, s=2) + LeakyReLU, fused with the first
    #     Linear of BOTH heads (the Flatten is absorbed into wa1/whin rows) ----
    h_a = jnp.zeros((batch, wa1_ref.shape[2]), f32)   # arrival hidden (B, 100)
    h_h = jnp.zeros((batch, whin_ref.shape[2]), f32)  # height hidden  (B, H)
    for t in range(n_t):
        pre3 = b3_ref[...]
        for j in range(k3):
            pre3 = pre3 + jnp.dot(s2p_ref[pl.ds((k3 * t + j) * batch, batch), :],
                                  w3_ref[j], preferred_element_type=f32)
        y3_t = _leaky_relu(pre3)                                    # (B, 128)
        h_a = h_a + jnp.dot(y3_t, wa1_ref[t], preferred_element_type=f32)
        h_h = h_h + jnp.dot(y3_t, whin_ref[t], preferred_element_type=f32)

    # --- arrival head: LeakyReLU -> Linear(100, 1) as a lane reduction -------
    h_a = _leaky_relu(h_a + ba1_ref[...])
    arrival = jnp.sum(h_a * wa2_ref[...], axis=1, keepdims=True) + btail_ref[0]

    # --- height head: hidden stack (+ sandwiched ReLU) -> Linear(H, 1) -------
    # Dropout layers of the PyTorch stack are identity at inference.
    h_h = h_h + bhin_ref[...]
    for idx in range(n_hidden):
        if idx == n_hidden // 2:
            h_h = jnp.maximum(h_h, 0.0)            # the sandwiched nn.ReLU
        h_h = jnp.dot(h_h, whid_ref[idx], preferred_element_type=f32) + bhid_ref[idx]
    height = jnp.sum(h_h * whout_ref[...], axis=1, keepdims=True) + btail_ref[1]

    # --- pack both (B,1) results into one lane-dense (B,128) output slab -----
    lane = jax.lax.broadcasted_iota(jnp.int32, o_ref.shape, 1)
    o_ref[...] = jnp.where(lane == 0, arrival, 0.0) + jnp.where(lane == 1, height, 0.0)


# ---------------------------------------------------------------------------
# Glue: parameter init / one-time layout preparation / forward wrapper
# ---------------------------------------------------------------------------
def init_params(key, in_channels, h_hidden_units, h_hidden_layers):
    """Random parameters in PyTorch-equivalent layout."""
    def dense(k, shape, scale=0.05):
        return scale * jax.random.normal(k, shape, dtype=jnp.float32)

    keys = jax.random.split(key, 16)
    H = h_hidden_units
    return {
        # feature extractor (PyTorch Conv1d weight layout (C_out, C_in, k))
        "w_conv1": dense(keys[0], (32, in_channels, 5)),
        "b_conv1": dense(keys[1], (32,)),
        "w_conv2": dense(keys[2], (64, 32, 5)),
        "b_conv2": dense(keys[3], (64,)),
        "w_conv3": dense(keys[4], (128, 64, 2)),
        "b_conv3": dense(keys[5], (128,)),
        # arrival head (Linear weights stored as (in, out); rows follow PyTorch's
        # channel-major flatten index c*5 + t)
        "w_a1": dense(keys[6], (128 * 5, 100)),
        "b_a1": dense(keys[7], (100,)),
        "w_a2": dense(keys[8], (100, 1)),
        "b_a2": dense(keys[9], (1,)),
        # height head
        "w_h_in": dense(keys[10], (128 * 5, H)),
        "b_h_in": dense(keys[11], (H,)),
        "w_h_hidden": dense(keys[12], (h_hidden_layers, H, H)),
        "b_h_hidden": dense(keys[13], (h_hidden_layers, 1, H)),
        "w_h_out": dense(keys[14], (H, 1)),
        "b_h_out": dense(keys[15], (1,)),
    }


def prepare_params(p):
    """One-time conversion into the kernel's pre-transposed matmul layouts.

    Done once at init (per the perf review): the forward path contains no
    per-call weight transposes/reshapes and no activation layout shuffles.
    """
    C_in = p["w_conv1"].shape[1]
    H = p["w_h_in"].shape[1]
    n_a = p["w_a1"].shape[1]
    return {
        # conv1 as one (5*C_in, 32) matmul; patch columns are (tap j, ci)
        "w1": jnp.transpose(p["w_conv1"], (2, 1, 0)).reshape(5 * C_in, 32),
        "b1": p["b_conv1"].reshape(1, -1),
        # conv2 / conv3 as per-tap (C_in, C_out) matrices
        "w2": jnp.transpose(p["w_conv2"], (2, 1, 0)),            # (5, 32, 64)
        "b2": p["b_conv2"].reshape(1, -1),
        "w3": jnp.transpose(p["w_conv3"], (2, 1, 0)),            # (2, 64, 128)
        "b3": p["b_conv3"].reshape(1, -1),
        # head input Linears: rows pre-permuted from PyTorch's flatten index
        # (c*5 + t) into per-time (t, c) slabs -> flatten absorbed into weights
        "wa1": jnp.transpose(p["w_a1"].reshape(128, 5, n_a), (1, 0, 2)),   # (5, 128, 100)
        "ba1": p["b_a1"].reshape(1, -1),
        "wa2": p["w_a2"].reshape(1, -1),                         # (1, 100) reduction row
        "wh_in": jnp.transpose(p["w_h_in"].reshape(128, 5, H), (1, 0, 2)),  # (5, 128, H)
        "bh_in": p["b_h_in"].reshape(1, -1),
        "wh_hid": p["w_h_hidden"],                               # (n_hidden, H, H), (in,out)
        "bh_hid": p["b_h_hidden"],                               # (n_hidden, 1, H)
        "wh_out": p["w_h_out"].reshape(1, -1),                   # (1, H) reduction row
        # scalar output biases packed for SMEM
        "b_tail": jnp.concatenate([p["b_a2"], p["b_h_out"]]).astype(jnp.float32),  # (2,)
    }


def branched_conv_reg_forward(kp, x_ncl):
    """x_ncl: (B, C_in, 1000) in PyTorch NCL convention. Returns (arrival, height), each (B, 1)."""
    B, C_in, L = x_ncl.shape
    # Architecture fixes the length: 1000 --conv(5,s5)--> 200 --pool--> 100
    # --conv(5,s5)--> 20 --pool--> 10 --conv(2,s2)--> 5, flatten = 128*5 = 640.
    assert L == 1000, "BranchedConvReg requires input length 1000"

    # Build conv-1 patches once in XLA (raw input only; intermediates never hit
    # HBM).  Leading axis = pool branch; row order (j2, u2, b) is exactly what
    # the fused kernel's contiguous-slab reads expect.
    x_nlc = jnp.transpose(x_ncl, (0, 2, 1)).astype(jnp.float32)   # (B, 1000, C_in)
    patches = jnp.transpose(
        x_nlc.reshape(B, 10, 10, 2, 5, C_in),   # [b, u2, j2, branch, j1, ci]
        (3, 2, 1, 0, 4, 5),
    ).reshape(2, 100 * B, 5 * C_in)

    n_hidden = kp["wh_hid"].shape[0]
    c1 = kp["w2"].shape[1]   # 32
    c2 = kp["w3"].shape[1]   # 64

    operands = (patches,
                kp["w1"], kp["b1"], kp["w2"], kp["b2"], kp["w3"], kp["b3"],
                kp["wa1"], kp["ba1"], kp["wa2"],
                kp["wh_in"], kp["bh_in"], kp["wh_hid"], kp["bh_hid"], kp["wh_out"],
                kp["b_tail"])
    in_specs = [_full_spec(op.shape) for op in operands[:-1]]
    in_specs.append(pl.BlockSpec(memory_space=pltpu.MemorySpace.SMEM))  # scalar biases

    out = pl.pallas_call(
        functools.partial(_fused_forward_kernel, batch=B, n_hidden=n_hidden),
        grid=(1,),   # everything fits in VMEM at these sizes; add a parallel
                     # row-tile axis here (megacore) if B is ever scaled up
        in_specs=in_specs,
        out_specs=_full_spec((B, 128)),
        out_shape=jax.ShapeDtypeStruct((B, 128), jnp.float32),
        scratch_shapes=[pltpu.VMEM((100 * B, c1), jnp.float32),
                        pltpu.VMEM((10 * B, c2), jnp.float32)],
    )(*operands)

    return out[:, 0:1], out[:, 1:2]


# ---------------------------------------------------------------------------
# Pure-JAX reference of the PyTorch module (eval mode) for a correctness check
# ---------------------------------------------------------------------------
def _reference_forward(p, x_ncl):
    x = jnp.transpose(x_ncl, (0, 2, 1)).astype(jnp.float32)   # (B, L, C)

    def conv_lrelu(x_nlc, w, b, k):
        Bb, Ll, Cc = x_nlc.shape
        co = w.shape[0]
        Lo = Ll // k
        patches = x_nlc[:, :Lo * k, :].reshape(Bb, Lo, k * Cc)
        wm = jnp.transpose(w, (2, 1, 0)).reshape(k * Cc, co)
        y = patches @ wm + b
        return jnp.where(y >= 0, y, NEG_SLOPE * y)

    def pool2(x_nlc):
        Bb, Ll, Cc = x_nlc.shape
        return jnp.max(x_nlc.reshape(Bb, Ll // 2, 2, Cc), axis=2)

    y = pool2(conv_lrelu(x, p["w_conv1"], p["b_conv1"], 5))
    y = pool2(conv_lrelu(y, p["w_conv2"], p["b_conv2"], 5))
    y = conv_lrelu(y, p["w_conv3"], p["b_conv3"], 2)                  # (B, 5, 128)
    feat = jnp.transpose(y, (0, 2, 1)).reshape(y.shape[0], -1)        # PyTorch (C, L) flatten

    h = feat @ p["w_a1"] + p["b_a1"]
    h = jnp.where(h >= 0, h, NEG_SLOPE * h)
    arrival = h @ p["w_a2"] + p["b_a2"]

    g = feat @ p["w_h_in"] + p["b_h_in"]
    n = p["w_h_hidden"].shape[0]
    for i in range(n):
        if i == n // 2:
            g = jnp.maximum(g, 0.0)
        g = g @ p["w_h_hidden"][i] + p["b_h_hidden"][i]
    height = g @ p["w_h_out"] + p["b_h_out"]
    return arrival, height


if __name__ == "__main__":
    # L=1000 is dictated by the architecture (flatten size 128*5 = 640).
    B, C_IN, L = 2, 4, 1000
    H_UNITS, H_LAYERS = 32, 2

    key = jax.random.PRNGKey(0)
    pkey, xkey = jax.random.split(key)
    params = init_params(pkey, C_IN, H_UNITS, H_LAYERS)
    kparams = prepare_params(params)   # pre-transposed weights, computed once
    x = jax.random.normal(xkey, (B, C_IN, L), dtype=jnp.float32)

    fwd = jax.jit(functools.partial(branched_conv_reg_forward, kparams))
    out_arrival, out_height = fwd(x)
    jax.block_until_ready((out_arrival, out_height))

    assert out_arrival.shape == (B, 1) and out_height.shape == (B, 1)
    assert bool(jnp.all(jnp.isfinite(out_arrival))) and bool(jnp.all(jnp.isfinite(out_height)))

    # numerical check against a pure-JAX reference of the PyTorch module (eval mode)
    with jax.default_matmul_precision("highest"):
        ref_arrival, ref_height = _reference_forward(params, x)
    assert bool(jnp.allclose(out_arrival, ref_arrival, rtol=5e-3, atol=5e-4))
    assert bool(jnp.allclose(out_height, ref_height, rtol=5e-3, atol=5e-4))

    print("KERNEL_OK")
</pallas_src>

<mosaic_0001>
module attributes {stable_mosaic.version = 11 : i64} {
  func.func @_fused_forward_kernel(%arg0: i32, %arg1: memref<2x200x20xf32, #tpu.memory_space<vmem>>, %arg2: memref<20x32xf32, #tpu.memory_space<vmem>>, %arg3: memref<1x32xf32, #tpu.memory_space<vmem>>, %arg4: memref<5x32x64xf32, #tpu.memory_space<vmem>>, %arg5: memref<1x64xf32, #tpu.memory_space<vmem>>, %arg6: memref<2x64x128xf32, #tpu.memory_space<vmem>>, %arg7: memref<1x128xf32, #tpu.memory_space<vmem>>, %arg8: memref<5x128x100xf32, #tpu.memory_space<vmem>>, %arg9: memref<1x100xf32, #tpu.memory_space<vmem>>, %arg10: memref<1x100xf32, #tpu.memory_space<vmem>>, %arg11: memref<5x128x32xf32, #tpu.memory_space<vmem>>, %arg12: memref<1x32xf32, #tpu.memory_space<vmem>>, %arg13: memref<2x32x32xf32, #tpu.memory_space<vmem>>, %arg14: memref<2x1x32xf32, #tpu.memory_space<vmem>>, %arg15: memref<1x32xf32, #tpu.memory_space<vmem>>, %arg16: memref<2xf32, #tpu.memory_space<smem>>, %arg17: memref<2x128xf32, #tpu.memory_space<vmem>>, %arg18: memref<200x32xf32, #tpu.memory_space<vmem>>, %arg19: memref<20x64xf32, #tpu.memory_space<vmem>>) attributes {dimension_semantics = [#tpu.dimension_semantics<arbitrary>], iteration_bounds = array<i64: 1>, scalar_prefetch = 0 : i64, scratch_operands = 2 : i64, tpu.core_type = #tpu.core_type<tc>, window_params = [{pipeline_mode = #tpu.pipeline_mode<synchronous>, transform_indices = @transform_0, window_bounds = array<i64: 2, 200, 20>}, {pipeline_mode = #tpu.pipeline_mode<synchronous>, transform_indices = @transform_1, window_bounds = array<i64: 20, 32>}, {pipeline_mode = #tpu.pipeline_mode<synchronous>, transform_indices = @transform_2, window_bounds = array<i64: 1, 32>}, {pipeline_mode = #tpu.pipeline_mode<synchronous>, transform_indices = @transform_3, window_bounds = array<i64: 5, 32, 64>}, {pipeline_mode = #tpu.pipeline_mode<synchronous>, transform_indices = @transform_4, window_bounds = array<i64: 1, 64>}, {pipeline_mode = #tpu.pipeline_mode<synchronous>, transform_indices = @transform_5, window_bounds = array<i64: 2, 64, 128>}, {pipeline_mode = #tpu.pipeline_mode<synchronous>, transform_indices = @transform_6, window_bounds = array<i64: 1, 128>}, {pipeline_mode = #tpu.pipeline_mode<synchronous>, transform_indices = @transform_7, window_bounds = array<i64: 5, 128, 100>}, {pipeline_mode = #tpu.pipeline_mode<synchronous>, transform_indices = @transform_8, window_bounds = array<i64: 1, 100>}, {pipeline_mode = #tpu.pipeline_mode<synchronous>, transform_indices = @transform_9, window_bounds = array<i64: 1, 100>}, {pipeline_mode = #tpu.pipeline_mode<synchronous>, transform_indices = @transform_10, window_bounds = array<i64: 5, 128, 32>}, {pipeline_mode = #tpu.pipeline_mode<synchronous>, transform_indices = @transform_11, window_bounds = array<i64: 1, 32>}, {pipeline_mode = #tpu.pipeline_mode<synchronous>, transform_indices = @transform_12, window_bounds = array<i64: 2, 32, 32>}, {pipeline_mode = #tpu.pipeline_mode<synchronous>, transform_indices = @transform_13, window_bounds = array<i64: 2, 1, 32>}, {pipeline_mode = #tpu.pipeline_mode<synchronous>, transform_indices = @transform_14, window_bounds = array<i64: 1, 32>}, {transform_indices = @transform_15, window_bounds = array<i64: 2>}, {pipeline_mode = #tpu.pipeline_mode<synchronous>, transform_indices = @transform_16, window_bounds = array<i64: 2, 128>}]} {
    %c0 = arith.constant 0 : index
    %c0_0 = arith.constant 0 : index
    %0 = vector.load %arg2[%c0, %c0_0] : memref<20x32xf32, #tpu.memory_space<vmem>>, vector<20x32xf32>
    %c0_1 = arith.constant 0 : index
    %c0_2 = arith.constant 0 : index
    %c0_3 = arith.constant 0 : index
    %1 = vector.load %arg1[%c0_1, %c0_2, %c0_3] : memref<2x200x20xf32, #tpu.memory_space<vmem>>, vector<1x200x20xf32>
    %2 = vector.shape_cast %1 : vector<1x200x20xf32> to vector<200x20xf32>
    %cst = arith.constant dense<0.000000e+00> : vector<200x32xf32>
    %3 = tpu.matmul %2, %0, %cst {dimension_numbers = #tpu.dot_dimension_numbers<[1], [0], [0], [1], [0, 0, 1, 1], [], []>} : vector<200x20xf32>, vector<20x32xf32>, vector<200x32xf32> -> vector<200x32xf32>
    %c1 = arith.constant 1 : index
    %c0_4 = arith.constant 0 : index
    %c0_5 = arith.constant 0 : index
    %4 = vector.load %arg1[%c1, %c0_4, %c0_5] : memref<2x200x20xf32, #tpu.memory_space<vmem>>, vector<1x200x20xf32>
    %5 = vector.shape_cast %4 : vector<1x200x20xf32> to vector<200x20xf32>
    %cst_6 = arith.constant dense<0.000000e+00> : vector<200x32xf32>
    %6 = tpu.matmul %5, %0, %cst_6 {dimension_numbers = #tpu.dot_dimension_numbers<[1], [0], [0], [1], [0, 0, 1, 1], [], []>} : vector<200x20xf32>, vector<20x32xf32>, vector<200x32xf32> -> vector<200x32xf32>
    %7 = arith.maximumf %3, %6 : vector<200x32xf32>
    %c0_7 = arith.constant 0 : index
    %c0_8 = arith.constant 0 : index
    %8 = vector.load %arg3[%c0_7, %c0_8] : memref<1x32xf32, #tpu.memory_space<vmem>>, vector<1x32xf32>
    %9 = vector.broadcast %8 : vector<1x32xf32> to vector<200x32xf32>
    %10 = arith.addf %7, %9 : vector<200x32xf32>
    %cst_9 = arith.constant 0.000000e+00 : f32
    %11 = vector.broadcast %cst_9 : f32 to vector<200x32xf32>
    %12 = arith.cmpf oge, %10, %11 : vector<200x32xf32>
    %cst_10 = arith.constant 0.00999999977 : f32
    %13 = vector.broadcast %cst_10 : f32 to vector<200x32xf32>
    %14 = arith.mulf %13, %10 : vector<200x32xf32>
    %15 = arith.select %12, %10, %14 : vector<200x32xi1>, vector<200x32xf32>
    %c0_11 = arith.constant 0 : index
    %c0_12 = arith.constant 0 : index
    %16 = vector.load %arg18[%c0_11, %c0_12] : memref<200x32xf32, #tpu.memory_space<vmem>>, vector<200x32xf32>
    tpu.vector_store %arg18[%c0_11, %c0_12], %15 {strides = array<i32>} : memref<200x32xf32, #tpu.memory_space<vmem>>, vector<200x32xf32>,
    %cst_13 = arith.constant 0.000000e+00 : f32
    %17 = vector.broadcast %cst_13 : f32 to vector<20x64xf32>
    %cst_14 = arith.constant 0.000000e+00 : f32
    %18 = vector.broadcast %cst_14 : f32 to vector<20x64xf32>
    %c0_15 = arith.constant 0 : index
    %c0_16 = arith.constant 0 : index
    %c0_17 = arith.constant 0 : index
    %19 = vector.load %arg4[%c0_15, %c0_16, %c0_17] : memref<5x32x64xf32, #tpu.memory_space<vmem>>, vector<1x32x64xf32>
    %20 = vector.shape_cast %19 : vector<1x32x64xf32> to vector<32x64xf32>
    %c0_18 = arith.constant 0 : index
    %c0_19 = arith.constant 0 : index
    %21 = vector.load %arg18[%c0_18, %c0_19] : memref<200x32xf32, #tpu.memory_space<vmem>>, vector<20x32xf32>
    %cst_20 = arith.constant dense<0.000000e+00> : vector<20x64xf32>
    %22 = tpu.matmul %21, %20, %cst_20 {dimension_numbers = #tpu.dot_dimension_numbers<[1], [0], [0], [1], [0, 0, 1, 1], [], []>} : vector<20x32xf32>, vector<32x64xf32>, vector<20x64xf32> -> vector<20x64xf32>
    %23 = arith.addf %17, %22 : vector<20x64xf32>
    %c100 = arith.constant 100 : index
    %c0_21 = arith.constant 0 : index
    %24 = vector.load %arg18[%c100, %c0_21] : memref<200x32xf32, #tpu.memory_space<vmem>>, vector<20x32xf32>
    %cst_22 = arith.constant dense<0.000000e+00> : vector<20x64xf32>
    %25 = tpu.matmul %24, %20, %cst_22 {dimension_numbers = #tpu.dot_dimension_numbers<[1], [0], [0], [1], [0, 0, 1, 1], [], []>} : vector<20x32xf32>, vector<32x64xf32>, vector<20x64xf32> -> vector<20x64xf32>
    %26 = arith.addf %18, %25 : vector<20x64xf32>
    %c1_23 = arith.constant 1 : index
    %c0_24 = arith.constant 0 : index
    %c0_25 = arith.constant 0 : index
    %27 = vector.load %arg4[%c1_23, %c0_24, %c0_25] : memref<5x32x64xf32, #tpu.memory_space<vmem>>, vector<1x32x64xf32>
    %28 = vector.shape_cast %27 : vector<1x32x64xf32> to vector<32x64xf32>
    %c20 = arith.constant 20 : index
    %c0_26 = arith.constant 0 : index
    %29 = vector.load %arg18[%c20, %c0_26] : memref<200x32xf32, #tpu.memory_space<vmem>>, vector<20x32xf32>
    %cst_27 = arith.constant dense<0.000000e+00> : vector<20x64xf32>
    %30 = tpu.matmul %29, %28, %cst_27 {dimension_numbers = #tpu.dot_dimension_numbers<[1], [0], [0], [1], [0, 0, 1, 1], [], []>} : vector<20x32xf32>, vector<32x64xf32>, vector<20x64xf32> -> vector<20x64xf32>
    %31 = arith.addf %23, %30 : vector<20x64xf32>
    %c120 = arith.constant 120 : index
    %c0_28 = arith.constant 0 : index
    %32 = vector.load %arg18[%c120, %c0_28] : memref<200x32xf32, #tpu.memory_space<vmem>>, vector<20x32xf32>
    %cst_29 = arith.constant dense<0.000000e+00> : vector<20x64xf32>
    %33 = tpu.matmul %32, %28, %cst_29 {dimension_numbers = #tpu.dot_dimension_numbers<[1], [0], [0], [1], [0, 0, 1, 1], [], []>} : vector<20x32xf32>, vector<32x64xf32>, vector<20x64xf32> -> vector<20x64xf32>
    %34 = arith.addf %26, %33 : vector<20x64xf32>
    %c2 = arith.constant 2 : index
    %c0_30 = arith.constant 0 : index
    %c0_31 = arith.constant 0 : index
    %35 = vector.load %arg4[%c2, %c0_30, %c0_31] : memref<5x32x64xf32, #tpu.memory_space<vmem>>, vector<1x32x64xf32>
    %36 = vector.shape_cast %35 : vector<1x32x64xf32> to vector<32x64xf32>
    %c40 = arith.constant 40 : index
    %c0_32 = arith.constant 0 : index
    %37 = vector.load %arg18[%c40, %c0_32] : memref<200x32xf32, #tpu.memory_space<vmem>>, vector<20x32xf32>
    %cst_33 = arith.constant dense<0.000000e+00> : vector<20x64xf32>
    %38 = tpu.matmul %37, %36, %cst_33 {dimension_numbers = #tpu.dot_dimension_numbers<[1], [0], [0], [1], [0, 0, 1, 1], [], []>} : vector<20x32xf32>, vector<32x64xf32>, vector<20x64xf32> -> vector<20x64xf32>
    %39 = arith.addf %31, %38 : vector<20x64xf32>
    %c140 = arith.constant 140 : index
    %c0_34 = arith.constant 0 : index
    %40 = vector.load %arg18[%c140, %c0_34] : memref<200x32xf32, #tpu.memory_space<vmem>>, vector<20x32xf32>
    %cst_35 = arith.constant dense<0.000000e+00> : vector<20x64xf32>
    %41 = tpu.matmul %40, %36, %cst_35 {dimension_numbers = #tpu.dot_dimension_numbers<[1], [0], [0], [1], [0, 0, 1, 1], [], []>} : vector<20x32xf32>, vector<32x64xf32>, vector<20x64xf32> -> vector<20x64xf32>
    %42 = arith.addf %34, %41 : vector<20x64xf32>
    %c3 = arith.constant 3 : index
    %c0_36 = arith.constant 0 : index
    %c0_37 = arith.constant 0 : index
    %43 = vector.load %arg4[%c3, %c0_36, %c0_37] : memref<5x32x64xf32, #tpu.memory_space<vmem>>, vector<1x32x64xf32>
    %44 = vector.shape_cast %43 : vector<1x32x64xf32> to vector<32x64xf32>
    %c60 = arith.constant 60 : index
    %c0_38 = arith.constant 0 : index
    %45 = vector.load %arg18[%c60, %c0_38] : memref<200x32xf32, #tpu.memory_space<vmem>>, vector<20x32xf32>
    %cst_39 = arith.constant dense<0.000000e+00> : vector<20x64xf32>
    %46 = tpu.matmul %45, %44, %cst_39 {dimension_numbers = #tpu.dot_dimension_numbers<[1], [0], [0], [1], [0, 0, 1, 1], [], []>} : vector<20x32xf32>, vector<32x64xf32>, vector<20x64xf32> -> vector<20x64xf32>
    %47 = arith.addf %39, %46 : vector<20x64xf32>
    %c160 = arith.constant 160 : index
    %c0_40 = arith.constant 0 : index
    %48 = vector.load %arg18[%c160, %c0_40] : memref<200x32xf32, #tpu.memory_space<vmem>>, vector<20x32xf32>
    %cst_41 = arith.constant dense<0.000000e+00> : vector<20x64xf32>
    %49 = tpu.matmul %48, %44, %cst_41 {dimension_numbers = #tpu.dot_dimension_numbers<[1], [0], [0], [1], [0, 0, 1, 1], [], []>} : vector<20x32xf32>, vector<32x64xf32>, vector<20x64xf32> -> vector<20x64xf32>
    %50 = arith.addf %42, %49 : vector<20x64xf32>
    %c4 = arith.constant 4 : index
    %c0_42 = arith.constant 0 : index
    %c0_43 = arith.constant 0 : index
    %51 = vector.load %arg4[%c4, %c0_42, %c0_43] : memref<5x32x64xf32, #tpu.memory_space<vmem>>, vector<1x32x64xf32>
    %52 = vector.shape_cast %51 : vector<1x32x64xf32> to vector<32x64xf32>
    %c80 = arith.constant 80 : index
    %c0_44 = arith.constant 0 : index
    %53 = vector.load %arg18[%c80, %c0_44] : memref<200x32xf32, #tpu.memory_space<vmem>>, vector<20x32xf32>
    %cst_45 = arith.constant dense<0.000000e+00> : vector<20x64xf32>
    %54 = tpu.matmul %53, %52, %cst_45 {dimension_numbers = #tpu.dot_dimension_numbers<[1], [0], [0], [1], [0, 0, 1, 1], [], []>} : vector<20x32xf32>, vector<32x64xf32>, vector<20x64xf32> -> vector<20x64xf32>
    %55 = arith.addf %47, %54 : vector<20x64xf32>
    %c180 = arith.constant 180 : index
    %c0_46 = arith.constant 0 : index
    %56 = vector.load %arg18[%c180, %c0_46] : memref<200x32xf32, #tpu.memory_space<vmem>>, vector<20x32xf32>
    %cst_47 = arith.constant dense<0.000000e+00> : vector<20x64xf32>
    %57 = tpu.matmul %56, %52, %cst_47 {dimension_numbers = #tpu.dot_dimension_numbers<[1], [0], [0], [1], [0, 0, 1, 1], [], []>} : vector<20x32xf32>, vector<32x64xf32>, vector<20x64xf32> -> vector<20x64xf32>
    %58 = arith.addf %50, %57 : vector<20x64xf32>
    %59 = arith.maximumf %55, %58 : vector<20x64xf32>
    %c0_48 = arith.constant 0 : index
    %c0_49 = arith.constant 0 : index
    %60 = vector.load %arg5[%c0_48, %c0_49] : memref<1x64xf32, #tpu.memory_space<vmem>>, vector<1x64xf32>
    %61 = vector.broadcast %60 : vector<1x64xf32> to vector<20x64xf32>
    %62 = arith.addf %59, %61 : vector<20x64xf32>
    %cst_50 = arith.constant 0.000000e+00 : f32
    %63 = vector.broadcast %cst_50 : f32 to vector<20x64xf32>
    %64 = arith.cmpf oge, %62, %63 : vector<20x64xf32>
    %cst_51 = arith.constant 0.00999999977 : f32
    %65 = vector.broadcast %cst_51 : f32 to vector<20x64xf32>
    %66 = arith.mulf %65, %62 : vector<20x64xf32>
    %67 = arith.select %64, %62, %66 : vector<20x64xi1>, vector<20x64xf32>
    %c0_52 = arith.constant 0 : index
    %c0_53 = arith.constant 0 : index
    %68 = vector.load %arg19[%c0_52, %c0_53] : memref<20x64xf32, #tpu.memory_space<vmem>>, vector<20x64xf32>
    tpu.vector_store %arg19[%c0_52, %c0_53], %67 {strides = array<i32>} : memref<20x64xf32, #tpu.memory_space<vmem>>, vector<20x64xf32>,
    %cst_54 = arith.constant 0.000000e+00 : f32
    %69 = vector.broadcast %cst_54 : f32 to vector<2x100xf32>
    %cst_55 = arith.constant 0.000000e+00 : f32
    %70 = vector.broadcast %cst_55 : f32 to vector<2x32xf32>
    %c0_56 = arith.constant 0 : index
    %c0_57 = arith.constant 0 : index
    %71 = vector.load %arg7[%c0_56, %c0_57] : memref<1x128xf32, #tpu.memory_space<vmem>>, vector<1x128xf32>
    %c0_58 = arith.constant 0 : index
    %c0_59 = arith.constant 0 : index
    %72 = vector.load %arg19[%c0_58, %c0_59] : memref<20x64xf32, #tpu.memory_space<vmem>>, vector<2x64xf32>
    %c0_60 = arith.constant 0 : index
    %c0_61 = arith.constant 0 : index
    %c0_62 = arith.constant 0 : index
    %73 = vector.load %arg6[%c0_60, %c0_61, %c0_62] : memref<2x64x128xf32, #tpu.memory_space<vmem>>, vector<1x64x128xf32>
    %74 = vector.shape_cast %73 : vector<1x64x128xf32> to vector<64x128xf32>
    %cst_63 = arith.constant dense<0.000000e+00> : vector<2x128xf32>
    %75 = tpu.matmul %72, %74, %cst_63 {dimension_numbers = #tpu.dot_dimension_numbers<[1], [0], [0], [1], [0, 0, 1, 1], [], []>} : vector<2x64xf32>, vector<64x128xf32>, vector<2x128xf32> -> vector<2x128xf32>
    %76 = vector.broadcast %71 : vector<1x128xf32> to vector<2x128xf32>
    %77 = arith.addf %76, %75 : vector<2x128xf32>
    %c2_64 = arith.constant 2 : index
    %c0_65 = arith.constant 0 : index
    %78 = vector.load %arg19[%c2_64, %c0_65] : memref<20x64xf32, #tpu.memory_space<vmem>>, vector<2x64xf32>
    %c1_66 = arith.constant 1 : index
    %c0_67 = arith.constant 0 : index
    %c0_68 = arith.constant 0 : index
    %79 = vector.load %arg6[%c1_66, %c0_67, %c0_68] : memref<2x64x128xf32, #tpu.memory_space<vmem>>, vector<1x64x128xf32>
    %80 = vector.shape_cast %79 : vector<1x64x128xf32> to vector<64x128xf32>
    %cst_69 = arith.constant dense<0.000000e+00> : vector<2x128xf32>
    %81 = tpu.matmul %78, %80, %cst_69 {dimension_numbers = #tpu.dot_dimension_numbers<[1], [0], [0], [1], [0, 0, 1, 1], [], []>} : vector<2x64xf32>, vector<64x128xf32>, vector<2x128xf32> -> vector<2x128xf32>
    %82 = arith.addf %77, %81 : vector<2x128xf32>
    %cst_70 = arith.constant 0.000000e+00 : f32
    %83 = vector.broadcast %cst_70 : f32 to vector<2x128xf32>
    %84 = arith.cmpf oge, %82, %83 : vector<2x128xf32>
    %cst_71 = arith.constant 0.00999999977 : f32
    %85 = vector.broadcast %cst_71 : f32 to vector<2x128xf32>
    %86 = arith.mulf %85, %82 : vector<2x128xf32>
    %87 = arith.select %84, %82, %86 : vector<2x128xi1>, vector<2x128xf32>
    %c0_72 = arith.constant 0 : index
    %c0_73 = arith.constant 0 : index
    %c0_74 = arith.constant 0 : index
    %88 = vector.load %arg8[%c0_72, %c0_73, %c0_74] : memref<5x128x100xf32, #tpu.memory_space<vmem>>, vector<1x128x100xf32>
    %89 = vector.shape_cast %88 : vector<1x128x100xf32> to vector<128x100xf32>
    %cst_75 = arith.constant dense<0.000000e+00> : vector<2x100xf32>
    %90 = tpu.matmul %87, %89, %cst_75 {dimension_numbers = #tpu.dot_dimension_numbers<[1], [0], [0], [1], [0, 0, 1, 1], [], []>} : vector<2x128xf32>, vector<128x100xf32>, vector<2x100xf32> -> vector<2x100xf32>
    %91 = arith.addf %69, %90 : vector<2x100xf32>
    %c0_76 = arith.constant 0 : index
    %c0_77 = arith.constant 0 : index
    %c0_78 = arith.constant 0 : index
    %92 = vector.load %arg11[%c0_76, %c0_77, %c0_78] : memref<5x128x32xf32, #tpu.memory_space<vmem>>, vector<1x128x32xf32>
    %93 = vector.shape_cast %92 : vector<1x128x32xf32> to vector<128x32xf32>
    %cst_79 = arith.constant dense<0.000000e+00> : vector<2x32xf32>
    %94 = tpu.matmul %87, %93, %cst_79 {dimension_numbers = #tpu.dot_dimension_numbers<[1], [0], [0], [1], [0, 0, 1, 1], [], []>} : vector<2x128xf32>, vector<128x32xf32>, vector<2x32xf32> -> vector<2x32xf32>
    %95 = arith.addf %70, %94 : vector<2x32xf32>
    %c0_80 = arith.constant 0 : index
    %c0_81 = arith.constant 0 : index
    %96 = vector.load %arg7[%c0_80, %c0_81] : memref<1x128xf32, #tpu.memory_space<vmem>>, vector<1x128xf32>
    %c4_82 = arith.constant 4 : index
    %c0_83 = arith.constant 0 : index
    %97 = vector.load %arg19[%c4_82, %c0_83] : memref<20x64xf32, #tpu.memory_space<vmem>>, vector<2x64xf32>
    %c0_84 = arith.constant 0 : index
    %c0_85 = arith.constant 0 : index
    %c0_86 = arith.constant 0 : index
    %98 = vector.load %arg6[%c0_84, %c0_85, %c0_86] : memref<2x64x128xf32, #tpu.memory_space<vmem>>, vector<1x64x128xf32>
    %99 = vector.shape_cast %98 : vector<1x64x128xf32> to vector<64x128xf32>
    %cst_87 = arith.constant dense<0.000000e+00> : vector<2x128xf32>
    %100 = tpu.matmul %97, %99, %cst_87 {dimension_numbers = #tpu.dot_dimension_numbers<[1], [0], [0], [1], [0, 0, 1, 1], [], []>} : vector<2x64xf32>, vector<64x128xf32>, vector<2x128xf32> -> vector<2x128xf32>
    %101 = vector.broadcast %96 : vector<1x128xf32> to vector<2x128xf32>
    %102 = arith.addf %101, %100 : vector<2x128xf32>
    %c6 = arith.constant 6 : index
    %c0_88 = arith.constant 0 : index
    %103 = vector.load %arg19[%c6, %c0_88] : memref<20x64xf32, #tpu.memory_space<vmem>>, vector<2x64xf32>
    %c1_89 = arith.constant 1 : index
    %c0_90 = arith.constant 0 : index
    %c0_91 = arith.constant 0 : index
    %104 = vector.load %arg6[%c1_89, %c0_90, %c0_91] : memref<2x64x128xf32, #tpu.memory_space<vmem>>, vector<1x64x128xf32>
    %105 = vector.shape_cast %104 : vector<1x64x128xf32> to vector<64x128xf32>
    %cst_92 = arith.constant dense<0.000000e+00> : vector<2x128xf32>
    %106 = tpu.matmul %103, %105, %cst_92 {dimension_numbers = #tpu.dot_dimension_numbers<[1], [0], [0], [1], [0, 0, 1, 1], [], []>} : vector<2x64xf32>, vector<64x128xf32>, vector<2x128xf32> -> vector<2x128xf32>
    %107 = arith.addf %102, %106 : vector<2x128xf32>
    %cst_93 = arith.constant 0.000000e+00 : f32
    %108 = vector.broadcast %cst_93 : f32 to vector<2x128xf32>
    %109 = arith.cmpf oge, %107, %108 : vector<2x128xf32>
    %cst_94 = arith.constant 0.00999999977 : f32
    %110 = vector.broadcast %cst_94 : f32 to vector<2x128xf32>
    %111 = arith.mulf %110, %107 : vector<2x128xf32>
    %112 = arith.select %109, %107, %111 : vector<2x128xi1>, vector<2x128xf32>
    %c1_95 = arith.constant 1 : index
    %c0_96 = arith.constant 0 : index
    %c0_97 = arith.constant 0 : index
    %113 = vector.load %arg8[%c1_95, %c0_96, %c0_97] : memref<5x128x100xf32, #tpu.memory_space<vmem>>, vector<1x128x100xf32>
    %114 = vector.shape_cast %113 : vector<1x128x100xf32> to vector<128x100xf32>
    %cst_98 = arith.constant dense<0.000000e+00> : vector<2x100xf32>
    %115 = tpu.matmul %112, %114, %cst_98 {dimension_numbers = #tpu.dot_dimension_numbers<[1], [0], [0], [1], [0, 0, 1, 1], [], []>} : vector<2x128xf32>, vector<128x100xf32>, vector<2x100xf32> -> vector<2x100xf32>
    %116 = arith.addf %91, %115 : vector<2x100xf32>
    %c1_99 = arith.constant 1 : index
    %c0_100 = arith.constant 0 : index
    %c0_101 = arith.constant 0 : index
    %117 = vector.load %arg11[%c1_99, %c0_100, %c0_101] : memref<5x128x32xf32, #tpu.memory_space<vmem>>, vector<1x128x32xf32>
    %118 = vector.shape_cast %117 : vector<1x128x32xf32> to vector<128x32xf32>
    %cst_102 = arith.constant dense<0.000000e+00> : vector<2x32xf32>
    %119 = tpu.matmul %112, %118, %cst_102 {dimension_numbers = #tpu.dot_dimension_numbers<[1], [0], [0], [1], [0, 0, 1, 1], [], []>} : vector<2x128xf32>, vector<128x32xf32>, vector<2x32xf32> -> vector<2x32xf32>
    %120 = arith.addf %95, %119 : vector<2x32xf32>
    %c0_103 = arith.constant 0 : index
    %c0_104 = arith.constant 0 : index
    %121 = vector.load %arg7[%c0_103, %c0_104] : memref<1x128xf32, #tpu.memory_space<vmem>>, vector<1x128xf32>
    %c8 = arith.constant 8 : index
    %c0_105 = arith.constant 0 : index
    %122 = vector.load %arg19[%c8, %c0_105] : memref<20x64xf32, #tpu.memory_space<vmem>>, vector<2x64xf32>
    %c0_106 = arith.constant 0 : index
    %c0_107 = arith.constant 0 : index
    %c0_108 = arith.constant 0 : index
    %123 = vector.load %arg6[%c0_106, %c0_107, %c0_108] : memref<2x64x128xf32, #tpu.memory_space<vmem>>, vector<1x64x128xf32>
    %124 = vector.shape_cast %123 : vector<1x64x128xf32> to vector<64x128xf32>
    %cst_109 = arith.constant dense<0.000000e+00> : vector<2x128xf32>
    %125 = tpu.matmul %122, %124, %cst_109 {dimension_numbers = #tpu.dot_dimension_numbers<[1], [0], [0], [1], [0, 0, 1, 1], [], []>} : vector<2x64xf32>, vector<64x128xf32>, vector<2x128xf32> -> vector<2x128xf32>
    %126 = vector.broadcast %121 : vector<1x128xf32> to vector<2x128xf32>
    %127 = arith.addf %126, %125 : vector<2x128xf32>
    %c10 = arith.constant 10 : index
    %c0_110 = arith.constant 0 : index
    %128 = vector.load %arg19[%c10, %c0_110] : memref<20x64xf32, #tpu.memory_space<vmem>>, vector<2x64xf32>
    %c1_111 = arith.constant 1 : index
    %c0_112 = arith.constant 0 : index
    %c0_113 = arith.constant 0 : index
    %129 = vector.load %arg6[%c1_111, %c0_112, %c0_113] : memref<2x64x128xf32, #tpu.memory_space<vmem>>, vector<1x64x128xf32>
    %130 = vector.shape_cast %129 : vector<1x64x128xf32> to vector<64x128xf32>
    %cst_114 = arith.constant dense<0.000000e+00> : vector<2x128xf32>
    %131 = tpu.matmul %128, %130, %cst_114 {dimension_numbers = #tpu.dot_dimension_numbers<[1], [0], [0], [1], [0, 0, 1, 1], [], []>} : vector<2x64xf32>, vector<64x128xf32>, vector<2x128xf32> -> vector<2x128xf32>
    %132 = arith.addf %127, %131 : vector<2x128xf32>
    %cst_115 = arith.constant 0.000000e+00 : f32
    %133 = vector.broadcast %cst_115 : f32 to vector<2x128xf32>
    %134 = arith.cmpf oge, %132, %133 : vector<2x128xf32>
    %cst_116 = arith.constant 0.00999999977 : f32
    %135 = vector.broadcast %cst_116 : f32 to vector<2x128xf32>
    %136 = arith.mulf %135, %132 : vector<2x128xf32>
    %137 = arith.select %134, %132, %136 : vector<2x128xi1>, vector<2x128xf32>
    %c2_117 = arith.constant 2 : index
    %c0_118 = arith.constant 0 : index
    %c0_119 = arith.constant 0 : index
    %138 = vector.load %arg8[%c2_117, %c0_118, %c0_119] : memref<5x128x100xf32, #tpu.memory_space<vmem>>, vector<1x128x100xf32>
    %139 = vector.shape_cast %138 : vector<1x128x100xf32> to vector<128x100xf32>
    %cst_120 = arith.constant dense<0.000000e+00> : vector<2x100xf32>
    %140 = tpu.matmul %137, %139, %cst_120 {dimension_numbers = #tpu.dot_dimension_numbers<[1], [0], [0], [1], [0, 0, 1, 1], [], []>} : vector<2x128xf32>, vector<128x100xf32>, vector<2x100xf32> -> vector<2x100xf32>
    %141 = arith.addf %116, %140 : vector<2x100xf32>
    %c2_121 = arith.constant 2 : index
    %c0_122 = arith.constant 0 : index
    %c0_123 = arith.constant 0 : index
    %142 = vector.load %arg11[%c2_121, %c0_122, %c0_123] : memref<5x128x32xf32, #tpu.memory_space<vmem>>, vector<1x128x32xf32>
    %143 = vector.shape_cast %142 : vector<1x128x32xf32> to vector<128x32xf32>
    %cst_124 = arith.constant dense<0.000000e+00> : vector<2x32xf32>
    %144 = tpu.matmul %137, %143, %cst_124 {dimension_numbers = #tpu.dot_dimension_numbers<[1], [0], [0], [1], [0, 0, 1, 1], [], []>} : vector<2x128xf32>, vector<128x32xf32>, vector<2x32xf32> -> vector<2x32xf32>
    %145 = arith.addf %120, %144 : vector<2x32xf32>
    %c0_125 = arith.constant 0 : index
    %c0_126 = arith.constant 0 : index
    %146 = vector.load %arg7[%c0_125, %c0_126] : memref<1x128xf32, #tpu.memory_space<vmem>>, vector<1x128xf32>
    %c12 = arith.constant 12 : index
    %c0_127 = arith.constant 0 : index
    %147 = vector.load %arg19[%c12, %c0_127] : memref<20x64xf32, #tpu.memory_space<vmem>>, vector<2x64xf32>
    %c0_128 = arith.constant 0 : index
    %c0_129 = arith.constant 0 : index
    %c0_130 = arith.constant 0 : index
    %148 = vector.load %arg6[%c0_128, %c0_129, %c0_130] : memref<2x64x128xf32, #tpu.memory_space<vmem>>, vector<1x64x128xf32>
    %149 = vector.shape_cast %148 : vector<1x64x128xf32> to vector<64x128xf32>
    %cst_131 = arith.constant dense<0.000000e+00> : vector<2x128xf32>
    %150 = tpu.matmul %147, %149, %cst_131 {dimension_numbers = #tpu.dot_dimension_numbers<[1], [0], [0], [1], [0, 0, 1, 1], [], []>} : vector<2x64xf32>, vector<64x128xf32>, vector<2x128xf32> -> vector<2x128xf32>
    %151 = vector.broadcast %146 : vector<1x128xf32> to vector<2x128xf32>
    %152 = arith.addf %151, %150 : vector<2x128xf32>
    %c14 = arith.constant 14 : index
    %c0_132 = arith.constant 0 : index
    %153 = vector.load %arg19[%c14, %c0_132] : memref<20x64xf32, #tpu.memory_space<vmem>>, vector<2x64xf32>
    %c1_133 = arith.constant 1 : index
    %c0_134 = arith.constant 0 : index
    %c0_135 = arith.constant 0 : index
    %154 = vector.load %arg6[%c1_133, %c0_134, %c0_135] : memref<2x64x128xf32, #tpu.memory_space<vmem>>, vector<1x64x128xf32>
    %155 = vector.shape_cast %154 : vector<1x64x128xf32> to vector<64x128xf32>
    %cst_136 = arith.constant dense<0.000000e+00> : vector<2x128xf32>
    %156 = tpu.matmul %153, %155, %cst_136 {dimension_numbers = #tpu.dot_dimension_numbers<[1], [0], [0], [1], [0, 0, 1, 1], [], []>} : vector<2x64xf32>, vector<64x128xf32>, vector<2x128xf32> -> vector<2x128xf32>
    %157 = arith.addf %152, %156 : vector<2x128xf32>
    %cst_137 = arith.constant 0.000000e+00 : f32
    %158 = vector.broadcast %cst_137 : f32 to vector<2x128xf32>
    %159 = arith.cmpf oge, %157, %158 : vector<2x128xf32>
    %cst_138 = arith.constant 0.00999999977 : f32
    %160 = vector.broadcast %cst_138 : f32 to vector<2x128xf32>
    %161 = arith.mulf %160, %157 : vector<2x128xf32>
    %162 = arith.select %159, %157, %161 : vector<2x128xi1>, vector<2x128xf32>
    %c3_139 = arith.constant 3 : index
    %c0_140 = arith.constant 0 : index
    %c0_141 = arith.constant 0 : index
    %163 = vector.load %arg8[%c3_139, %c0_140, %c0_141] : memref<5x128x100xf32, #tpu.memory_space<vmem>>, vector<1x128x100xf32>
    %164 = vector.shape_cast %163 : vector<1x128x100xf32> to vector<128x100xf32>
    %cst_142 = arith.constant dense<0.000000e+00> : vector<2x100xf32>
    %165 = tpu.matmul %162, %164, %cst_142 {dimension_numbers = #tpu.dot_dimension_numbers<[1], [0], [0], [1], [0, 0, 1, 1], [], []>} : vector<2x128xf32>, vector<128x100xf32>, vector<2x100xf32> -> vector<2x100xf32>
    %166 = arith.addf %141, %165 : vector<2x100xf32>
    %c3_143 = arith.constant 3 : index
    %c0_144 = arith.constant 0 : index
    %c0_145 = arith.constant 0 : index
    %167 = vector.load %arg11[%c3_143, %c0_144, %c0_145] : memref<5x128x32xf32, #tpu.memory_space<vmem>>, vector<1x128x32xf32>
    %168 = vector.shape_cast %167 : vector<1x128x32xf32> to vector<128x32xf32>
    %cst_146 = arith.constant dense<0.000000e+00> : vector<2x32xf32>
    %169 = tpu.matmul %162, %168, %cst_146 {dimension_numbers = #tpu.dot_dimension_numbers<[1], [0], [0], [1], [0, 0, 1, 1], [], []>} : vector<2x128xf32>, vector<128x32xf32>, vector<2x32xf32> -> vector<2x32xf32>
    %170 = arith.addf %145, %169 : vector<2x32xf32>
    %c0_147 = arith.constant 0 : index
    %c0_148 = arith.constant 0 : index
    %171 = vector.load %arg7[%c0_147, %c0_148] : memref<1x128xf32, #tpu.memory_space<vmem>>, vector<1x128xf32>
    %c16 = arith.constant 16 : index
    %c0_149 = arith.constant 0 : index
    %172 = vector.load %arg19[%c16, %c0_149] : memref<20x64xf32, #tpu.memory_space<vmem>>, vector<2x64xf32>
    %c0_150 = arith.constant 0 : index
    %c0_151 = arith.constant 0 : index
    %c0_152 = arith.constant 0 : index
    %173 = vector.load %arg6[%c0_150, %c0_151, %c0_152] : memref<2x64x128xf32, #tpu.memory_space<vmem>>, vector<1x64x128xf32>
    %174 = vector.shape_cast %173 : vector<1x64x128xf32> to vector<64x128xf32>
    %cst_153 = arith.constant dense<0.000000e+00> : vector<2x128xf32>
    %175 = tpu.matmul %172, %174, %cst_153 {dimension_numbers = #tpu.dot_dimension_numbers<[1], [0], [0], [1], [0, 0, 1, 1], [], []>} : vector<2x64xf32>, vector<64x128xf32>, vector<2x128xf32> -> vector<2x128xf32>
    %176 = vector.broadcast %171 : vector<1x128xf32> to vector<2x128xf32>
    %177 = arith.addf %176, %175 : vector<2x128xf32>
    %c18 = arith.constant 18 : index
    %c0_154 = arith.constant 0 : index
    %178 = vector.load %arg19[%c18, %c0_154] : memref<20x64xf32, #tpu.memory_space<vmem>>, vector<2x64xf32>
    %c1_155 = arith.constant 1 : index
    %c0_156 = arith.constant 0 : index
    %c0_157 = arith.constant 0 : index
    %179 = vector.load %arg6[%c1_155, %c0_156, %c0_157] : memref<2x64x128xf32, #tpu.memory_space<vmem>>, vector<1x64x128xf32>
    %180 = vector.shape_cast %179 : vector<1x64x128xf32> to vector<64x128xf32>
    %cst_158 = arith.constant dense<0.000000e+00> : vector<2x128xf32>
    %181 = tpu.matmul %178, %180, %cst_158 {dimension_numbers = #tpu.dot_dimension_numbers<[1], [0], [0], [1], [0, 0, 1, 1], [], []>} : vector<2x64xf32>, vector<64x128xf32>, vector<2x128xf32> -> vector<2x128xf32>
    %182 = arith.addf %177, %181 : vector<2x128xf32>
    %cst_159 = arith.constant 0.000000e+00 : f32
    %183 = vector.broadcast %cst_159 : f32 to vector<2x128xf32>
    %184 = arith.cmpf oge, %182, %183 : vector<2x128xf32>
    %cst_160 = arith.constant 0.00999999977 : f32
    %185 = vector.broadcast %cst_160 : f32 to vector<2x128xf32>
    %186 = arith.mulf %185, %182 : vector<2x128xf32>
    %187 = arith.select %184, %182, %186 : vector<2x128xi1>, vector<2x128xf32>
    %c4_161 = arith.constant 4 : index
    %c0_162 = arith.constant 0 : index
    %c0_163 = arith.constant 0 : index
    %188 = vector.load %arg8[%c4_161, %c0_162, %c0_163] : memref<5x128x100xf32, #tpu.memory_space<vmem>>, vector<1x128x100xf32>
    %189 = vector.shape_cast %188 : vector<1x128x100xf32> to vector<128x100xf32>
    %cst_164 = arith.constant dense<0.000000e+00> : vector<2x100xf32>
    %190 = tpu.matmul %187, %189, %cst_164 {dimension_numbers = #tpu.dot_dimension_numbers<[1], [0], [0], [1], [0, 0, 1, 1], [], []>} : vector<2x128xf32>, vector<128x100xf32>, vector<2x100xf32> -> vector<2x100xf32>
    %191 = arith.addf %166, %190 : vector<2x100xf32>
    %c4_165 = arith.constant 4 : index
    %c0_166 = arith.constant 0 : index
    %c0_167 = arith.constant 0 : index
    %192 = vector.load %arg11[%c4_165, %c0_166, %c0_167] : memref<5x128x32xf32, #tpu.memory_space<vmem>>, vector<1x128x32xf32>
    %193 = vector.shape_cast %192 : vector<1x128x32xf32> to vector<128x32xf32>
    %cst_168 = arith.constant dense<0.000000e+00> : vector<2x32xf32>
    %194 = tpu.matmul %187, %193, %cst_168 {dimension_numbers = #tpu.dot_dimension_numbers<[1], [0], [0], [1], [0, 0, 1, 1], [], []>} : vector<2x128xf32>, vector<128x32xf32>, vector<2x32xf32> -> vector<2x32xf32>
    %195 = arith.addf %170, %194 : vector<2x32xf32>
    %c0_169 = arith.constant 0 : index
    %c0_170 = arith.constant 0 : index
    %196 = vector.load %arg9[%c0_169, %c0_170] : memref<1x100xf32, #tpu.memory_space<vmem>>, vector<1x100xf32>
    %197 = vector.broadcast %196 : vector<1x100xf32> to vector<2x100xf32>
    %198 = arith.addf %191, %197 : vector<2x100xf32>
    %cst_171 = arith.constant 0.000000e+00 : f32
    %199 = vector.broadcast %cst_171 : f32 to vector<2x100xf32>
    %200 = arith.cmpf oge, %198, %199 : vector<2x100xf32>
    %cst_172 = arith.constant 0.00999999977 : f32
    %201 = vector.broadcast %cst_172 : f32 to vector<2x100xf32>
    %202 = arith.mulf %201, %198 : vector<2x100xf32>
    %203 = arith.select %200, %198, %202 : vector<2x100xi1>, vector<2x100xf32>
    %c0_173 = arith.constant 0 : index
    %c0_174 = arith.constant 0 : index
    %204 = vector.load %arg10[%c0_173, %c0_174] : memref<1x100xf32, #tpu.memory_space<vmem>>, vector<1x100xf32>
    %205 = vector.broadcast %204 : vector<1x100xf32> to vector<2x100xf32>
    %206 = arith.mulf %203, %205 : vector<2x100xf32>
    %cst_175 = arith.constant dense<0.000000e+00> : vector<2xf32>
    %207 = vector.multi_reduction <add>, %206, %cst_175 [1] : vector<2x100xf32> to vector<2xf32>
    %208 = vector.shape_cast %207 : vector<2xf32> to vector<2x1xf32>
    %c0_176 = arith.constant 0 : index
    %209 = memref.load %arg16[%c0_176] : memref<2xf32, #tpu.memory_space<smem>>
    %210 = vector.broadcast %209 : f32 to vector<2x1xf32>
    %211 = arith.addf %208, %210 : vector<2x1xf32>
    %c0_177 = arith.constant 0 : index
    %c0_178 = arith.constant 0 : index
    %212 = vector.load %arg12[%c0_177, %c0_178] : memref<1x32xf32, #tpu.memory_space<vmem>>, vector<1x32xf32>
    %213 = vector.broadcast %212 : vector<1x32xf32> to vector<2x32xf32>
    %214 = arith.addf %195, %213 : vector<2x32xf32>
    %c0_179 = arith.constant 0 : index
    %c0_180 = arith.constant 0 : index
    %c0_181 = arith.constant 0 : index
    %215 = vector.load %arg13[%c0_179, %c0_180, %c0_181] : memref<2x32x32xf32, #tpu.memory_space<vmem>>, vector<1x32x32xf32>
    %216 = vector.shape_cast %215 : vector<1x32x32xf32> to vector<32x32xf32>
    %cst_182 = arith.constant dense<0.000000e+00> : vector<2x32xf32>
    %217 = tpu.matmul %214, %216, %cst_182 {dimension_numbers = #tpu.dot_dimension_numbers<[1], [0], [0], [1], [0, 0, 1, 1], [], []>} : vector<2x32xf32>, vector<32x32xf32>, vector<2x32xf32> -> vector<2x32xf32>
    %c0_183 = arith.constant 0 : index
    %c0_184 = arith.constant 0 : index
    %c0_185 = arith.constant 0 : index
    %218 = vector.load %arg14[%c0_183, %c0_184, %c0_185] : memref<2x1x32xf32, #tpu.memory_space<vmem>>, vector<1x1x32xf32>
    %219 = vector.shape_cast %218 : vector<1x1x32xf32> to vector<1x32xf32>
    %220 = vector.broadcast %219 : vector<1x32xf32> to vector<2x32xf32>
    %221 = arith.addf %217, %220 : vector<2x32xf32>
    %cst_186 = arith.constant 0.000000e+00 : f32
    %222 = vector.broadcast %cst_186 : f32 to vector<2x32xf32>
    %223 = arith.maximumf %221, %222 : vector<2x32xf32>
    %c1_187 = arith.constant 1 : index
    %c0_188 = arith.constant 0 : index
    %c0_189 = arith.constant 0 : index
    %224 = vector.load %arg13[%c1_187, %c0_188, %c0_189] : memref<2x32x32xf32, #tpu.memory_space<vmem>>, vector<1x32x32xf32>
    %225 = vector.shape_cast %224 : vector<1x32x32xf32> to vector<32x32xf32>
    %cst_190 = arith.constant dense<0.000000e+00> : vector<2x32xf32>
    %226 = tpu.matmul %223, %225, %cst_190 {dimension_numbers = #tpu.dot_dimension_numbers<[1], [0], [0], [1], [0, 0, 1, 1], [], []>} : vector<2x32xf32>, vector<32x32xf32>, vector<2x32xf32> -> vector<2x32xf32>
    %c1_191 = arith.constant 1 : index
    %c0_192 = arith.constant 0 : index
    %c0_193 = arith.constant 0 : index
    %227 = vector.load %arg14[%c1_191, %c0_192, %c0_193] : memref<2x1x32xf32, #tpu.memory_space<vmem>>, vector<1x1x32xf32>
    %228 = vector.shape_cast %227 : vector<1x1x32xf32> to vector<1x32xf32>
    %229 = vector.broadcast %228 : vector<1x32xf32> to vector<2x32xf32>
    %230 = arith.addf %226, %229 : vector<2x32xf32>
    %c0_194 = arith.constant 0 : index
    %c0_195 = arith.constant 0 : index
    %231 = vector.load %arg15[%c0_194, %c0_195] : memref<1x32xf32, #tpu.memory_space<vmem>>, vector<1x32xf32>
    %232 = vector.broadcast %231 : vector<1x32xf32> to vector<2x32xf32>
    %233 = arith.mulf %230, %232 : vector<2x32xf32>
    %cst_196 = arith.constant dense<0.000000e+00> : vector<2xf32>
    %234 = vector.multi_reduction <add>, %233, %cst_196 [1] : vector<2x32xf32> to vector<2xf32>
    %235 = vector.shape_cast %234 : vector<2xf32> to vector<2x1xf32>
    %c1_197 = arith.constant 1 : index
    %236 = memref.load %arg16[%c1_197] : memref<2xf32, #tpu.memory_space<smem>>
    %237 = vector.broadcast %236 : f32 to vector<2x1xf32>
    %238 = arith.addf %235, %237 : vector<2x1xf32>
    %239 = tpu.iota {dimensions = array<i32: 1>} : vector<2x128xi32>
    %c0_i32 = arith.constant 0 : i32
    %240 = vector.broadcast %c0_i32 : i32 to vector<2x128xi32>
    %241 = arith.cmpi eq, %239, %240 : vector<2x128xi32>
    %cst_198 = arith.constant 0.000000e+00 : f32
    %242 = vector.shape_cast %211 : vector<2x1xf32> to vector<2x1xf32>
    %243 = vector.broadcast %242 : vector<2x1xf32> to vector<2x128xf32>
    %244 = vector.broadcast %cst_198 : f32 to vector<2x128xf32>
    %245 = arith.select %241, %243, %244 : vector<2x128xi1>, vector<2x128xf32>
    %c1_i32 = arith.constant 1 : i32
    %246 = vector.broadcast %c1_i32 : i32 to vector<2x128xi32>
    %247 = arith.cmpi eq, %239, %246 : vector<2x128xi32>
    %cst_199 = arith.constant 0.000000e+00 : f32
    %248 = vector.shape_cast %238 : vector<2x1xf32> to vector<2x1xf32>
    %249 = vector.broadcast %248 : vector<2x1xf32> to vector<2x128xf32>
    %250 = vector.broadcast %cst_199 : f32 to vector<2x128xf32>
    %251 = arith.select %247, %249, %250 : vector<2x128xi1>, vector<2x128xf32>
    %252 = arith.addf %245, %251 : vector<2x128xf32>
    %c0_200 = arith.constant 0 : index
    %c0_201 = arith.constant 0 : index
    %253 = vector.load %arg17[%c0_200, %c0_201] : memref<2x128xf32, #tpu.memory_space<vmem>>, vector<2x128xf32>
    tpu.vector_store %arg17[%c0_200, %c0_201], %252 {strides = array<i32>} : memref<2x128xf32, #tpu.memory_space<vmem>>, vector<2x128xf32>,
    return
  }
  func.func @transform_0(%arg0: i32) -> (i32, i32, i32) {
    %c0_i32 = arith.constant 0 : i32
    %c0_i32_0 = arith.constant 0 : i32
    %c0_i32_1 = arith.constant 0 : i32
    %c0_i32_2 = arith.constant 0 : i32
    return %c0_i32, %c0_i32_0, %c0_i32_1 : i32, i32, i32
  }
  func.func @transform_1(%arg0: i32) -> (i32, i32) {
    %c0_i32 = arith.constant 0 : i32
    %c0_i32_0 = arith.constant 0 : i32
    %c0_i32_1 = arith.constant 0 : i32
    return %c0_i32, %c0_i32_0 : i32, i32
  }
  func.func @transform_2(%arg0: i32) -> (i32, i32) {
    %c0_i32 = arith.constant 0 : i32
    %c0_i32_0 = arith.constant 0 : i32
    %c0_i32_1 = arith.constant 0 : i32
    return %c0_i32, %c0_i32_0 : i32, i32
  }
  func.func @transform_3(%arg0: i32) -> (i32, i32, i32) {
    %c0_i32 = arith.constant 0 : i32
    %c0_i32_0 = arith.constant 0 : i32
    %c0_i32_1 = arith.constant 0 : i32
    %c0_i32_2 = arith.constant 0 : i32
    return %c0_i32, %c0_i32_0, %c0_i32_1 : i32, i32, i32
  }
  func.func @transform_4(%arg0: i32) -> (i32, i32) {
    %c0_i32 = arith.constant 0 : i32
    %c0_i32_0 = arith.constant 0 : i32
    %c0_i32_1 = arith.constant 0 : i32
    return %c0_i32, %c0_i32_0 : i32, i32
  }
  func.func @transform_5(%arg0: i32) -> (i32, i32, i32) {
    %c0_i32 = arith.constant 0 : i32
    %c0_i32_0 = arith.constant 0 : i32
    %c0_i32_1 = arith.constant 0 : i32
    %c0_i32_2 = arith.constant 0 : i32
    return %c0_i32, %c0_i32_0, %c0_i32_1 : i32, i32, i32
  }
  func.func @transform_6(%arg0: i32) -> (i32, i32) {
    %c0_i32 = arith.constant 0 : i32
    %c0_i32_0 = arith.constant 0 : i32
    %c0_i32_1 = arith.constant 0 : i32
    return %c0_i32, %c0_i32_0 : i32, i32
  }
  func.func @transform_7(%arg0: i32) -> (i32, i32, i32) {
    %c0_i32 = arith.constant 0 : i32
    %c0_i32_0 = arith.constant 0 : i32
    %c0_i32_1 = arith.constant 0 : i32
    %c0_i32_2 = arith.constant 0 : i32
    return %c0_i32, %c0_i32_0, %c0_i32_1 : i32, i32, i32
  }
  func.func @transform_8(%arg0: i32) -> (i32, i32) {
    %c0_i32 = arith.constant 0 : i32
    %c0_i32_0 = arith.constant 0 : i32
    %c0_i32_1 = arith.constant 0 : i32
    return %c0_i32, %c0_i32_0 : i32, i32
  }
  func.func @transform_9(%arg0: i32) -> (i32, i32) {
    %c0_i32 = arith.constant 0 : i32
    %c0_i32_0 = arith.constant 0 : i32
    %c0_i32_1 = arith.constant 0 : i32
    return %c0_i32, %c0_i32_0 : i32, i32
  }
  func.func @transform_10(%arg0: i32) -> (i32, i32, i32) {
    %c0_i32 = arith.constant 0 : i32
    %c0_i32_0 = arith.constant 0 : i32
    %c0_i32_1 = arith.constant 0 : i32
    %c0_i32_2 = arith.constant 0 : i32
    return %c0_i32, %c0_i32_0, %c0_i32_1 : i32, i32, i32
  }
  func.func @transform_11(%arg0: i32) -> (i32, i32) {
    %c0_i32 = arith.constant 0 : i32
    %c0_i32_0 = arith.constant 0 : i32
    %c0_i32_1 = arith.constant 0 : i32
    return %c0_i32, %c0_i32_0 : i32, i32
  }
  func.func @transform_12(%arg0: i32) -> (i32, i32, i32) {
    %c0_i32 = arith.constant 0 : i32
    %c0_i32_0 = arith.constant 0 : i32
    %c0_i32_1 = arith.constant 0 : i32
    %c0_i32_2 = arith.constant 0 : i32
    return %c0_i32, %c0_i32_0, %c0_i32_1 : i32, i32, i32
  }
  func.func @transform_13(%arg0: i32) -> (i32, i32, i32) {
    %c0_i32 = arith.constant 0 : i32
    %c0_i32_0 = arith.constant 0 : i32
    %c0_i32_1 = arith.constant 0 : i32
    %c0_i32_2 = arith.constant 0 : i32
    return %c0_i32, %c0_i32_0, %c0_i32_1 : i32, i32, i32
  }
  func.func @transform_14(%arg0: i32) -> (i32, i32) {
    %c0_i32 = arith.constant 0 : i32
    %c0_i32_0 = arith.constant 0 : i32
    %c0_i32_1 = arith.constant 0 : i32
    return %c0_i32, %c0_i32_0 : i32, i32
  }
  func.func @transform_15(%arg0: i32) -> i32 {
    %c0_i32 = arith.constant 0 : i32
    %c0_i32_0 = arith.constant 0 : i32
    return %c0_i32 : i32
  }
  func.func @transform_16(%arg0: i32) -> (i32, i32) {
    %c0_i32 = arith.constant 0 : i32
    %c0_i32_0 = arith.constant 0 : i32
    %c0_i32_1 = arith.constant 0 : i32
    return %c0_i32, %c0_i32_0 : i32, i32
  }
}

</mosaic_0001>

<bundles_post_ra>
// kernel: branched_conv_reg_forward.1
= control target key start
LH: loop header
LB: loop body
LE: loop exit
PB: predicated region body
PF: predicated region fallthrough
CT: control target
= control target key end

     0   :  { %s7314_s0 = inlined_call_operand.vmem [shape: f32[2,200,20], index: 0, kind: input, shape index: {}]   ;;  %s7315_s1 = inlined_call_operand.vmem [shape: f32[20,32], index: 1, kind: input, shape index: {}]   ;;  %s7316_s2 = inlined_call_operand.vmem [shape: f32[1,32], index: 2, kind: input, shape index: {}]   ;;  %s7317_s3 = inlined_call_operand.vmem [shape: f32[5,32,64], index: 3, kind: input, shape index: {}]   ;;  %s7318_s4 = inlined_call_operand.vmem [shape: f32[1,64], index: 4, kind: input, shape index: {}]   ;;  %s7319_s5 = inlined_call_operand.vmem [shape: f32[2,64,128], index: 5, kind: input, shape index: {}]   ;;  %s7320_s6 = inlined_call_operand.vmem [shape: f32[1,128], index: 6, kind: input, shape index: {}]   ;;  %s7321_s7 = inlined_call_operand.vmem [shape: f32[5,128,100], index: 7, kind: input, shape index: {}]   ;;  %s7322_s8 = inlined_call_operand.vmem [shape: f32[1,100], index: 8, kind: input, shape index: {}]   ;;  %s7323_s9 = inlined_call_operand.vmem [shape: f32[1,100], index: 9, kind: input, shape index: {}]   ;;  %s7324_s10 = inlined_call_operand.vmem [shape: f32[5,128,32], index: 10, kind: input, shape index: {}]   ;;  %s7325_s11 = inlined_call_operand.vmem [shape: f32[1,32], index: 11, kind: input, shape index: {}]   ;;  %s7326_s12 = inlined_call_operand.vmem [shape: f32[2,32,32], index: 12, kind: input, shape index: {}]   ;;  %s7327_s13 = inlined_call_operand.vmem [shape: f32[2,1,32], index: 13, kind: input, shape index: {}]   ;;  %s7328_s14 = inlined_call_operand.vmem [shape: f32[1,32], index: 14, kind: input, shape index: {}]   ;;  %s7329_s15 = inlined_call_operand.vmem [shape: f32[2], index: 15, kind: input, shape index: {}]   ;;  %s7330_s16 = inlined_call_operand.vmem [shape: f32[2,128], index: 16, kind: output, shape index: {}]  }
   0x1   :  { %7332 = sst [smem:[#allocation7_spill]] %s7314_s0 }
   0x2   :  { %21 = vsyncpa [#allocation5], 0  ;;  %s58_s23 = sshll.u32 %s7329_s15, 4  ;;  %s59_s23 = int_to_ptr.vmem [resolvable:$true] %s58_s23 }
   0x3   :  { %s5783_s24 = scalar_lea.vmem %s59_s23, 16  ;;  %p5788_p1 = scmp.lt.s32.totalorder %s59_s23, %s59_s23 }
   0x4   :  { %p5784_p0 = scmp.ne.s32.totalorder %s59_s23, %s5783_s24  ;;  %p5789_p2 = scmp.lt.s32.totalorder %s5783_s24, %s5783_s24 }
   0x6   :  { %p5790_p3 = por %p5789_p2, %p5788_p1 }
   0x8   :  { %p5791_p4 = pnand %p5790_p3, %p5784_p0 }
   0xa   :  { %5794 = shalt.err (!%p5791_p4)
}
   0xb   :  { %s5797_s25 = smov [#allocation4]  }
   0xc   :  { %61 = dma.vmem_to_smem %s59_s23, 16, %s5797_s25, [#allocation5]  }
   0xd   :  { %5795 = dma.done.wait [#allocation5], 16  }
   0xe   :  { %5796 = vsyncadd [#allocation5], 4294967280 }
   0xf   :  { %65 = sfence }
  0x10   :  { %v66_v0 = vld [vmem:[%s7315_s1] sm:$0xff]  ;;  %v67_v1 = vld [vmem:[%s7315_s1 + $0x8] sm:$0xff]  ;;  %v5798_v2 = vmov 0.0|0.0   ;;  %vm5799_vm0 = vmmov 0   ;;  %v5800_v4 = vmov 0.0   ;;  %vm170_vm1 = vcmask 1043456  }
  0x11   :  { %5712 = vmatprep.subr.bf16.mxu1 %v5798_v2  ;;  %v5275_v3 = vpack.c.bf16 %v67_v1, %v66_v0  ;;  %5274 = vmatprep.subr.bf16.mxu0 %v5798_v2  ;;  %v68_v5 = vld [vmem:[%s7315_s1 + $0x10] sm:$0xf]  ;;  %s7333_s18 = sld [smem:[#allocation7_spill]]  ;;  %vm94_vm2 = vcmask 162816   ;;  %v3776_v13 = vld [vmem:[%s7317_s3 + $0x20] sm:$0xff]  ;;  %v3777_v14 = vld [vmem:[%s7317_s3 + $0x28] sm:$0xff] }
  0x12   :  { %4455 = vmatprep.mubr.msk.f32.mxu1 %vm5799_vm0, %v5800_v4  ;;  %4386 = vmatprep.mubr.msk.f32.mxu0 %vm5799_vm0, %v5800_v4  ;;  %v5281_v16 = vpack.c.bf16 %v3777_v14, %v3776_v13  ;;  %v3778_v59 = vld [vmem:[%s7317_s3 + $0x30] sm:$0xff]  ;;  %v3779_v60 = vld [vmem:[%s7317_s3 + $0x38] sm:$0xff]  ;;  %vm787_vm4 = vcmask 261120   ;;  %s3983_s0 = sld [smem:[#allocation4 + $0x1]] }
  0x13   :  { %5714 = vmatpush3.bf16.msra.mxu1 %v5275_v3  ;;  %5276 = vmatpush3.bf16.msra.mxu0 %v5275_v3  ;;  %v5284_v61 = vpack.c.bf16 %v3779_v60, %v3778_v59 }
  0x14   :  { %5713 = vmatprep.subr.mxu1 %v5800_v4  ;;  %4384 = vmatprep.subr.mxu0 %v5800_v4 }
  0x17   :  { %v92_v6 = vld [vmem:[%s7333_s18 + $0xb8] sm:$0xff]  ;;  %5715 = vmatpush3.msk.msra.mxu1 %vm170_vm1, %v68_v5  ;;  %4385 = vmatpush3.msk.msra.mxu0 %vm170_vm1, %v68_v5  ;;  %v69_v7 = vld [vmem:[%s7333_s18] sm:$0xff]  ;;  %v70_v9 = vld [vmem:[%s7333_s18 + $0x8] sm:$0xff] }
  0x18   :  { %4456 = vmatmul.mubr.msk.f32.vlgmr.msra.gmra.mrb[0].mxu1 %vm94_vm2, %v92_v6  ;;  %5277 = vmatprep.subr.bf16.mxu1 %v5798_v2  ;;  %v93_v8 = vld [vmem:[%s7333_s18 + $0xc0] sm:$0xff]  ;;  %v3724_v10 = vld [vmem:[%s7333_s18 + $0xc8] sm:$0xff]  ;;  %v71_v11 = vld [vmem:[%s7333_s18 + $0x10] sm:$0xff] }
  0x19   :  { %5279 = vmatpush3.bf16.msra.mxu1 %v5275_v3  ;;  %4458 = vmatprep.mubr.msk.f32.mxu1 %vm5799_vm0, %v5800_v4  ;;  %v3725_v12 = vld [vmem:[%s7333_s18 + $0xd0] sm:$0xff]  ;;  %v72_v15 = vld [vmem:[%s7333_s18 + $0x18] sm:$0xff]  ;;  %v73_v18 = vld [vmem:[%s7333_s18 + $0x20] sm:$0xff] }
  0x1a   :  { %4465 = vmatprep.subr.mxu1 %v5800_v4  ;;  %4387 = vmatmul.mubr.msk.f32.vlgmr.msra.gmra.mrb[0].mxu0 %vm94_vm2, %v69_v7  ;;  %v3726_v17 = vld [vmem:[%s7333_s18 + $0xd8] sm:$0xff]  ;;  %v3727_v19 = vld [vmem:[%s7333_s18 + $0xe0] sm:$0xff]  ;;  %v74_v20 = vld [vmem:[%s7333_s18 + $0x28] sm:$0xff] }
  0x1b   :  { %4389 = vmatprep.mubr.msk.f32.mxu0 %vm5799_vm0, %v5800_v4  ;;  %5280 = vmatprep.subr.bf16.mxu0 %v5798_v2  ;;  %v3728_v21 = vld [vmem:[%s7333_s18 + $0xe8] sm:$0xff]  ;;  %v75_v22 = vld [vmem:[%s7333_s18 + $0x30] sm:$0xff]  ;;  %v76_v24 = vld [vmem:[%s7333_s18 + $0x38] sm:$0xff] }
  0x1c   :  { %4459 = vmatmul.mubr.msk.f32.gmra.mrb[2].mxu1 %vm94_vm2, %v93_v8  ;;  %5282 = vmatpush3.bf16.msra.mxu0 %v5281_v16  ;;  %v3729_v23 = vld [vmem:[%s7333_s18 + $0xf0] sm:$0xff]  ;;  %v3730_v25 = vld [vmem:[%s7333_s18 + $0xf8] sm:$0xff]  ;;  %v77_v26 = vld [vmem:[%s7333_s18 + $0x40] sm:$0xff] }
  0x1d   :  { %4466 = vmatpush3.msk.msra.mxu1 %vm170_vm1, %v68_v5  ;;  %4467 = vmatprep.mubr.msk.f32.mxu1 %vm5799_vm0, %v5800_v4  ;;  %v3731_v27 = vld [vmem:[%s7333_s18 + $0x100] sm:$0xff]  ;;  %v78_v28 = vld [vmem:[%s7333_s18 + $0x48] sm:$0xff]  ;;  %v79_v30 = vld [vmem:[%s7333_s18 + $0x50] sm:$0xff] }
  0x1e   :  { %4390 = vmatmul.mubr.msk.f32.gmra.mrb[2].mxu0 %vm94_vm2, %v70_v9  ;;  %5292 = vmatprep.subr.bf16.mxu1 %v5798_v2  ;;  %v3732_v29 = vld [vmem:[%s7333_s18 + $0x108] sm:$0xff]  ;;  %v3733_v31 = vld [vmem:[%s7333_s18 + $0x110] sm:$0xff]  ;;  %v80_v32 = vld [vmem:[%s7333_s18 + $0x58] sm:$0xff] }
  0x1f   :  { %4392 = vmatprep.mubr.msk.f32.mxu0 %vm5799_vm0, %v5800_v4  ;;  %5283 = vmatprep.subr.bf16.mxu0 %v5798_v2  ;;  %v3734_v33 = vld [vmem:[%s7333_s18 + $0x118] sm:$0xff]  ;;  %v81_v34 = vld [vmem:[%s7333_s18 + $0x60] sm:$0xff]  ;;  %v82_v36 = vld [vmem:[%s7333_s18 + $0x68] sm:$0xff] }
  0x20   :  { %4468 = vmatmul.mubr.msk.f32.vlgmr.msra.gmra.mrb[4].mxu1 %vm94_vm2, %v3724_v10  ;;  %v3735_v35 = vld [vmem:[%s7333_s18 + $0x120] sm:$0xff]  ;;  %v3736_v37 = vld [vmem:[%s7333_s18 + $0x128] sm:$0xff]  ;;  %v83_v38 = vld [vmem:[%s7333_s18 + $0x70] sm:$0xff]  ;;  %5285 = vmatpush3.bf16.msra.mxu0 %v5284_v61 }
  0x21   :  { %4470 = vmatprep.mubr.msk.f32.mxu1 %vm5799_vm0, %v5800_v4  ;;  %5294 = vmatpush3.bf16.msra.mxu1 %v5281_v16  ;;  %v3737_v39 = vld [vmem:[%s7333_s18 + $0x130] sm:$0xff]  ;;  %v84_v40 = vld [vmem:[%s7333_s18 + $0x78] sm:$0xff]  ;;  %v85_v42 = vld [vmem:[%s7333_s18 + $0x80] sm:$0xff] }
  0x22   :  { %4393 = vmatmul.mubr.msk.f32.gmra.mrb[4].mxu0 %vm94_vm2, %v71_v11  ;;  %5295 = vmatprep.subr.bf16.mxu1 %v5798_v2  ;;  %v3738_v41 = vld [vmem:[%s7333_s18 + $0x138] sm:$0xff]  ;;  %v3739_v43 = vld [vmem:[%s7333_s18 + $0x140] sm:$0xff]  ;;  %v86_v44 = vld [vmem:[%s7333_s18 + $0x88] sm:$0xff] }
  0x23   :  { %4395 = vmatprep.mubr.msk.f32.mxu0 %vm5799_vm0, %v5800_v4  ;;  %v3740_v45 = vld [vmem:[%s7333_s18 + $0x148] sm:$0xff]  ;;  %v87_v46 = vld [vmem:[%s7333_s18 + $0x90] sm:$0xff]  ;;  %v88_v48 = vld [vmem:[%s7333_s18 + $0x98] sm:$0xff]  ;;  %5286 = vmatprep.subr.bf16.mxu0 %v5798_v2 }
  0x24   :  { %4471 = vmatmul.mubr.msk.f32.gmra.mrb[6].mxu1 %vm94_vm2, %v3725_v12  ;;  %v3741_v47 = vld [vmem:[%s7333_s18 + $0x150] sm:$0xff]  ;;  %v3742_v49 = vld [vmem:[%s7333_s18 + $0x158] sm:$0xff]  ;;  %v89_v50 = vld [vmem:[%s7333_s18 + $0xa0] sm:$0xff] }
  0x25   :  { %4473 = vmatprep.mubr.msk.f32.mxu1 %vm5799_vm0, %v5800_v4  ;;  %v3743_v51 = vld [vmem:[%s7333_s18 + $0x160] sm:$0xff]  ;;  %v90_v52 = vld [vmem:[%s7333_s18 + $0xa8] sm:$0xff]  ;;  %v91_v54 = vld [vmem:[%s7333_s18 + $0xb0] sm:$0xff]  ;;  %5297 = vmatpush3.bf16.msra.mxu1 %v5284_v61 }
  0x26   :  { %4396 = vmatmul.mubr.msk.f32.gmra.mrb[6].mxu0 %vm94_vm2, %v72_v15  ;;  %v3744_v53 = vld [vmem:[%s7333_s18 + $0x168] sm:$0xff]  ;;  %v3745_v55 = vld [vmem:[%s7333_s18 + $0x170] sm:$0xff]  ;;  %v3746_v56 = vld [vmem:[%s7333_s18 + $0x178] sm:$0xff]  ;;  %5298 = vmatprep.subr.bf16.mxu1 %v5798_v2 }
  0x27   :  { %4398 = vmatprep.mubr.msk.f32.mxu0 %vm5799_vm0, %v5800_v4  ;;  %v3747_v57 = vld [vmem:[%s7333_s18 + $0x180] sm:$0xff]  ;;  %v3748_v58 = vld [vmem:[%s7333_s18 + $0x188] sm:$0xff] }
  0x28   :  { %4474 = vmatmul.mubr.msk.f32.gmra.mrb[8].mxu1 %vm94_vm2, %v3726_v17  ;;  %v6236_v9 = vld [vmem:[%s7316_s2] ss:$0 sm:$0xff] }
  0x29   :  { %4476 = vmatprep.mubr.msk.f32.mxu1 %vm5799_vm0, %v5800_v4 }
  0x2a   :  { %4399 = vmatmul.mubr.msk.f32.gmra.mrb[8].mxu0 %vm94_vm2, %v73_v18 }
  0x2b   :  { %4401 = vmatprep.mubr.msk.f32.mxu0 %vm5799_vm0, %v5800_v4 }
  0x2c   :  { %4477 = vmatmul.mubr.msk.f32.gmra.mrb[10].mxu1 %vm94_vm2, %v3727_v19 }
  0x2d   :  { %4479 = vmatprep.mubr.msk.f32.mxu1 %vm5799_vm0, %v5800_v4 }
  0x2e   :  { %4402 = vmatmul.mubr.msk.f32.gmra.mrb[10].mxu0 %vm94_vm2, %v74_v20 }
  0x2f   :  { %4404 = vmatprep.mubr.msk.f32.mxu0 %vm5799_vm0, %v5800_v4 }
  0x30   :  { %4480 = vmatmul.mubr.msk.f32.gmra.mrb[12].mxu1 %vm94_vm2, %v3728_v21 }
  0x31   :  { %4482 = vmatprep.mubr.msk.f32.mxu1 %vm5799_vm0, %v5800_v4 }
  0x32   :  { %4405 = vmatmul.mubr.msk.f32.gmra.mrb[12].mxu0 %vm94_vm2, %v75_v22 }
  0x33   :  { %4407 = vmatprep.mubr.msk.f32.mxu0 %vm5799_vm0, %v5800_v4 }
  0x34   :  { %4483 = vmatmul.mubr.msk.f32.gmra.mrb[14].mxu1 %vm94_vm2, %v3729_v23 }
  0x35   :  { %4485 = vmatprep.mubr.msk.f32.mxu1 %vm5799_vm0, %v5800_v4 }
  0x36   :  { %4408 = vmatmul.mubr.msk.f32.gmra.mrb[14].mxu0 %vm94_vm2, %v76_v24 }
  0x37   :  { %4410 = vmatprep.mubr.msk.f32.mxu0 %vm5799_vm0, %v5800_v4 }
  0x38   :  { %4486 = vmatmul.mubr.msk.f32.gmra.mrb[16].mxu1 %vm94_vm2, %v3730_v25 }
  0x39   :  { %4488 = vmatprep.mubr.msk.f32.mxu1 %vm5799_vm0, %v5800_v4 }
  0x3a   :  { %4411 = vmatmul.mubr.msk.f32.gmra.mrb[16].mxu0 %vm94_vm2, %v77_v26 }
  0x3b   :  { %4413 = vmatprep.mubr.msk.f32.mxu0 %vm5799_vm0, %v5800_v4 }
  0x3c   :  { %4489 = vmatmul.mubr.msk.f32.gmra.mrb[18].mxu1 %vm94_vm2, %v3731_v27 }
  0x3d   :  { %4491 = vmatprep.mubr.msk.f32.mxu1 %vm5799_vm0, %v5800_v4 }
  0x3e   :  { %4414 = vmatmul.mubr.msk.f32.gmra.mrb[18].mxu0 %vm94_vm2, %v78_v28 }
  0x3f   :  { %4416 = vmatprep.mubr.msk.f32.mxu0 %vm5799_vm0, %v5800_v4 }
  0x40   :  { %4492 = vmatmul.mubr.msk.f32.gmra.mrb[20].mxu1 %vm94_vm2, %v3732_v29 }
  0x41   :  { %4494 = vmatprep.mubr.msk.f32.mxu1 %vm5799_vm0, %v5800_v4 }
  0x42   :  { %4417 = vmatmul.mubr.msk.f32.gmra.mrb[20].mxu0 %vm94_vm2, %v79_v30 }
  0x43   :  { %4419 = vmatprep.mubr.msk.f32.mxu0 %vm5799_vm0, %v5800_v4 }
  0x44   :  { %4495 = vmatmul.mubr.msk.f32.gmra.mrb[22].mxu1 %vm94_vm2, %v3733_v31 }
  0x45   :  { %4497 = vmatprep.mubr.msk.f32.mxu1 %vm5799_vm0, %v5800_v4 }
  0x46   :  { %4420 = vmatmul.mubr.msk.f32.gmra.mrb[22].mxu0 %vm94_vm2, %v80_v32 }
  0x47   :  { %4422 = vmatprep.mubr.msk.f32.mxu0 %vm5799_vm0, %v5800_v4 }
  0x48   :  { %4498 = vmatmul.mubr.msk.f32.gmra.mrb[24].mxu1 %vm94_vm2, %v3734_v33 }
  0x49   :  { %4500 = vmatprep.mubr.msk.f32.mxu1 %vm5799_vm0, %v5800_v4 }
  0x4a   :  { %4423 = vmatmul.mubr.msk.f32.gmra.mrb[24].mxu0 %vm94_vm2, %v81_v34 }
  0x4b   :  { %4425 = vmatprep.mubr.msk.f32.mxu0 %vm5799_vm0, %v5800_v4 }
  0x4c   :  { %4501 = vmatmul.mubr.msk.f32.gmra.mrb[26].mxu1 %vm94_vm2, %v3735_v35 }
  0x4d   :  { %4503 = vmatprep.mubr.msk.f32.mxu1 %vm5799_vm0, %v5800_v4 }
  0x4e   :  { %4426 = vmatmul.mubr.msk.f32.gmra.mrb[26].mxu0 %vm94_vm2, %v82_v36 }
  0x4f   :  { %4428 = vmatprep.mubr.msk.f32.mxu0 %vm5799_vm0, %v5800_v4 }
  0x50   :  { %4504 = vmatmul.mubr.msk.f32.gmra.mrb[28].mxu1 %vm94_vm2, %v3736_v37 }
  0x51   :  { %4506 = vmatprep.mubr.msk.f32.mxu1 %vm5799_vm0, %v5800_v4 }
  0x52   :  { %4429 = vmatmul.mubr.msk.f32.gmra.mrb[28].mxu0 %vm94_vm2, %v83_v38 }
  0x53   :  { %4431 = vmatprep.mubr.msk.f32.mxu0 %vm5799_vm0, %v5800_v4 }
  0x54   :  { %4507 = vmatmul.mubr.msk.f32.gmra.mrb[30].mxu1 %vm94_vm2, %v3737_v39 }
  0x55   :  { %4509 = vmatprep.mubr.msk.f32.mxu1 %vm5799_vm0, %v5800_v4 }
  0x56   :  { %4432 = vmatmul.mubr.msk.f32.gmra.mrb[30].mxu0 %vm94_vm2, %v84_v40 }
  0x57   :  { %4434 = vmatprep.mubr.msk.f32.mxu0 %vm5799_vm0, %v5800_v4 }
  0x58   :  { %4510 = vmatmul.mubr.msk.f32.gmra.mrb[32].mxu1 %vm94_vm2, %v3738_v41 }
  0x59   :  { %4512 = vmatprep.mubr.msk.f32.mxu1 %vm5799_vm0, %v5800_v4 }
  0x5a   :  { %4435 = vmatmul.mubr.msk.f32.gmra.mrb[32].mxu0 %vm94_vm2, %v85_v42 }
  0x5b   :  { %4437 = vmatprep.mubr.msk.f32.mxu0 %vm5799_vm0, %v5800_v4 }
  0x5c   :  { %4513 = vmatmul.mubr.msk.f32.gmra.mrb[34].mxu1 %vm94_vm2, %v3739_v43 }
  0x5d   :  { %4515 = vmatprep.mubr.msk.f32.mxu1 %vm5799_vm0, %v5800_v4 }
  0x5e   :  { %4438 = vmatmul.mubr.msk.f32.gmra.mrb[34].mxu0 %vm94_vm2, %v86_v44 }
  0x5f   :  { %4440 = vmatprep.mubr.msk.f32.mxu0 %vm5799_vm0, %v5800_v4 }
  0x60   :  { %4516 = vmatmul.mubr.msk.f32.gmra.mrb[36].mxu1 %vm94_vm2, %v3740_v45 }
  0x61   :  { %4518 = vmatprep.mubr.msk.f32.mxu1 %vm5799_vm0, %v5800_v4 }
  0x62   :  { %4441 = vmatmul.mubr.msk.f32.gmra.mrb[36].mxu0 %vm94_vm2, %v87_v46 }
  0x63   :  { %4443 = vmatprep.mubr.msk.f32.mxu0 %vm5799_vm0, %v5800_v4 }
  0x64   :  { %4519 = vmatmul.mubr.msk.f32.gmra.mrb[38].mxu1 %vm94_vm2, %v3741_v47 }
  0x65   :  { %4521 = vmatprep.mubr.msk.f32.mxu1 %vm5799_vm0, %v5800_v4 }
  0x66   :  { %4444 = vmatmul.mubr.msk.f32.gmra.mrb[38].mxu0 %vm94_vm2, %v88_v48 }
  0x67   :  { %4446 = vmatprep.mubr.msk.f32.mxu0 %vm5799_vm0, %v5800_v4 }
  0x68   :  { %4522 = vmatmul.mubr.msk.f32.gmra.mrb[40].mxu1 %vm94_vm2, %v3742_v49 }
  0x69   :  { %4524 = vmatprep.mubr.msk.f32.mxu1 %vm5799_vm0, %v5800_v4 }
  0x6a   :  { %4447 = vmatmul.mubr.msk.f32.gmra.mrb[40].mxu0 %vm94_vm2, %v89_v50 }
  0x6b   :  { %4449 = vmatprep.mubr.msk.f32.mxu0 %vm5799_vm0, %v5800_v4 }
  0x6c   :  { %4525 = vmatmul.mubr.msk.f32.gmra.mrb[42].mxu1 %vm94_vm2, %v3743_v51 }
  0x6d   :  { %4527 = vmatprep.mubr.msk.f32.mxu1 %vm5799_vm0, %v5800_v4 }
  0x6e   :  { %4450 = vmatmul.mubr.msk.f32.gmra.mrb[42].mxu0 %vm94_vm2, %v90_v52  ;;  %v813_v52 = vld [vmem:[%s7317_s3] sm:$0xff] }
  0x6f   :  { %4452 = vmatprep.mubr.msk.f32.mxu0 %vm5799_vm0, %v5800_v4 }
  0x70   :  { %4528 = vmatmul.mubr.msk.f32.gmra.mrb[44].mxu1 %vm94_vm2, %v3744_v53  ;;  %v814_v53 = vld [vmem:[%s7317_s3 + $0x8] sm:$0xff] }
  0x71   :  { %4530 = vmatprep.mubr.msk.f32.mxu1 %vm5799_vm0, %v5800_v4  ;;  %v6255_v61 = vpack.c.bf16 %v814_v53, %v813_v52 }
  0x72   :  { %4453 = vmatmul.mubr.msk.f32.gmra.mrb[44].mxu0 %vm94_vm2, %v91_v54 }
  0x73   :  { %4550 = vmatprep.mubr.msk.f32.mxu0 %vm5799_vm0, %v5800_v4 }
  0x74   :  { %4531 = vmatmul.mubr.msk.f32.gmra.mrb[46].mxu1 %vm94_vm2, %v3745_v55 }
  0x75   :  { %4533 = vmatprep.mubr.msk.f32.mxu1 %vm5799_vm0, %v5800_v4 }
  0x78   :  { %4534 = vmatmul.mubr.msk.f32.gmra.mrb[48].mxu1 %vm94_vm2, %v3746_v56 }
  0x79   :  { %4536 = vmatprep.mubr.msk.f32.mxu1 %vm5799_vm0, %v5800_v4 }
  0x7c   :  { %4537 = vmatmul.mubr.msk.f32.gmra.mrb[50].mxu1 %vm94_vm2, %v3747_v57 }
  0x7d   :  { %4539 = vmatprep.mubr.msk.f32.mxu1 %vm5799_vm0, %v5800_v4 }
  0x80   :  { %4540 = vmatmul.mubr.msk.f32.gmra.mrb[52].mxu1 %vm94_vm2, %v3748_v58 }
  0x81   :  { %4584 = vmatprep.mubr.msk.f32.mxu1 %vm5799_vm0, %v5800_v4 }
  0xeb   :  { %v6229_v62 = vpop.f32.mrb[0].mxu1 }
  0xec   :  { %v4457_v63 = vpop.f32.mrb[1].mxu1 }
  0xed   :  { %v240_v0 = vpop.f32.mrb[0].mxu0 }
  0xee   :  { %v4388_v1 = vpop.f32.mrb[1].mxu0 }
  0xef   :  { %v6231_v3 = vpop.f32.mrb[2].mxu1  ;;  %v816_v1 = vld [vmem:[%s7317_s3 + $0x18] sm:$0xff] }
  0xf0   :  { %v4460_v5 = vpop.f32.mrb[3].mxu1 }
  0xf1   :  { %v245_v6 = vpop.f32.mrb[2].mxu0 }
  0xf2   :  { %v4391_v7 = vpop.f32.mrb[3].mxu0 }
  0xf3   :  { %v531_v8 = vpop.f32.mrb[4].mxu1 }
  0xf4   :  { %v655_v10 = vmax.f32 %v240_v0, %v531_v8  ;;  %v4469_v11 = vpop.f32.mrb[5].mxu1  ;;  %v815_v0 = vld [vmem:[%s7317_s3 + $0x10] sm:$0xff] }
  0xf5   :  { %v250_v12 = vpop.f32.mrb[4].mxu0 }
  0xf6   :  { %v687_v13 = vadd.f32 %v6236_v9, %v655_v10  ;;  %v4394_v14 = vpop.f32.mrb[5].mxu0 }
  0xf7   :  { %v536_v15 = vpop.f32.mrb[6].mxu1  ;;  %v6269_v14 = vpack.c.bf16 %v816_v1, %v815_v0 }
  0xf8   :  { %vm712_vm3 = vcmp.ge.f32.partialorder %v687_v13, 0.0  ;;  %v737_v16 = vmul.f32 0.01, %v687_v13  ;;  %v656_v17 = vmax.f32 %v245_v6, %v536_v15  ;;  %v4472_v18 = vpop.f32.mrb[7].mxu1 }
  0xf9   :  { %v255_v19 = vpop.f32.mrb[6].mxu0 }
  0xfa   :  { %v762_v20 = vsel %vm712_vm3, %v687_v13, %v737_v16  ;;  %v688_v21 = vadd.f32 %v6236_v9, %v656_v17  ;;  %v4397_v22 = vpop.f32.mrb[7].mxu0 }
  0xfb   :  { %788 = vst.msk [vmem:[#allocation2] sm:$0xff] %vm787_vm4, %v762_v20  ;;  %v541_v23 = vpop.f32.mrb[8].mxu1 }
  0xfc   :  { %vm713_vm5 = vcmp.ge.f32.partialorder %v688_v21, 0.0  ;;  %v738_v24 = vmul.f32 0.01, %v688_v21  ;;  %v657_v25 = vmax.f32 %v250_v12, %v541_v23  ;;  %v4475_v26 = vpop.f32.mrb[9].mxu1 }
  0xfd   :  { %v260_v27 = vpop.f32.mrb[8].mxu0  ;;  %v3793_v26 = vld [vmem:[%s7317_s3 + $0x48] sm:$0xff] }
  0xfe   :  { %v763_v28 = vsel %vm713_vm5, %v688_v21, %v738_v24  ;;  %v689_v29 = vadd.f32 %v6236_v9, %v657_v25  ;;  %v4400_v30 = vpop.f32.mrb[9].mxu0  ;;  %v3792_v25 = vld [vmem:[%s7317_s3 + $0x40] sm:$0xff] }
  0xff   :  { %789 = vst.msk [vmem:[#allocation2 + $0x8] sm:$0xff] %vm787_vm4, %v763_v28  ;;  %v546_v31 = vpop.f32.mrb[10].mxu1 }
 0x100   :  { %vm714_vm6 = vcmp.ge.f32.partialorder %v689_v29, 0.0  ;;  %v739_v32 = vmul.f32 0.01, %v689_v29  ;;  %v658_v33 = vmax.f32 %v255_v19, %v546_v31  ;;  %v4478_v34 = vpop.f32.mrb[11].mxu1 }
 0x101   :  { %v265_v35 = vpop.f32.mrb[10].mxu0 }
 0x102   :  { %v764_v36 = vsel %vm714_vm6, %v689_v29, %v739_v32  ;;  %v690_v37 = vadd.f32 %v6236_v9, %v658_v33  ;;  %v4403_v38 = vpop.f32.mrb[11].mxu0 }
 0x103   :  { %790 = vst.msk [vmem:[#allocation2 + $0x10] sm:$0xff] %vm787_vm4, %v764_v36  ;;  %v551_v39 = vpop.f32.mrb[12].mxu1  ;;  %v3795_v38 = vld [vmem:[%s7317_s3 + $0x58] sm:$0xff] }
 0x104   :  { %vm715_vm7 = vcmp.ge.f32.partialorder %v690_v37, 0.0  ;;  %v740_v40 = vmul.f32 0.01, %v690_v37  ;;  %v659_v41 = vmax.f32 %v260_v27, %v551_v39  ;;  %v4481_v42 = vpop.f32.mrb[13].mxu1 }
 0x105   :  { %v270_v43 = vpop.f32.mrb[12].mxu0 }
 0x106   :  { %v765_v44 = vsel %vm715_vm7, %v690_v37, %v740_v40  ;;  %v691_v45 = vadd.f32 %v6236_v9, %v659_v41  ;;  %v4406_v46 = vpop.f32.mrb[13].mxu0  ;;  %v3794_v37 = vld [vmem:[%s7317_s3 + $0x50] sm:$0xff]  ;;  %v817_v41 = vld [vmem:[#allocation2] sm:$0xff] }
 0x107   :  { %791 = vst.msk [vmem:[#allocation2 + $0x18] sm:$0xff] %vm787_vm4, %v765_v44  ;;  %v556_v47 = vpop.f32.mrb[14].mxu1 }
 0x108   :  { %vm716_vm8 = vcmp.ge.f32.partialorder %v691_v45, 0.0  ;;  %v741_v48 = vmul.f32 0.01, %v691_v45  ;;  %v660_v49 = vmax.f32 %v265_v35, %v556_v47  ;;  %v4484_v50 = vpop.f32.mrb[15].mxu1  ;;  %v6290_v35 = vpack.c.bf16 %v3793_v26, %v3792_v25 }
 0x109   :  { %v275_v51 = vpop.f32.mrb[14].mxu0  ;;  %v6304_v47 = vpack.c.bf16 %v3795_v38, %v3794_v37 }
 0x10a   :  { %v766_v54 = vsel %vm716_vm8, %v691_v45, %v741_v48  ;;  %v692_v55 = vadd.f32 %v6236_v9, %v660_v49  ;;  %v4409_v56 = vpop.f32.mrb[15].mxu0  ;;  %v819_v0 = vld [vmem:[#allocation2 + $0x10] sm:$0xf] }
 0x10b   :  { %792 = vst.msk [vmem:[#allocation2 + $0x20] sm:$0xff] %vm787_vm4, %v766_v54  ;;  %v561_v57 = vpop.f32.mrb[16].mxu1 }
 0x10c   :  { %vm717_vm9 = vcmp.ge.f32.partialorder %v692_v55, 0.0  ;;  %v742_v58 = vmul.f32 0.01, %v692_v55  ;;  %v661_v59 = vmax.f32 %v270_v43, %v561_v57  ;;  %v4487_v60 = vpop.f32.mrb[17].mxu1 }
 0x10d   :  { %v280_v63 = vpop.f32.mrb[16].mxu0 }
 0x10e   :  { %v767_v5 = vsel %vm717_vm9, %v692_v55, %v742_v58  ;;  %v693_v6 = vadd.f32 %v6236_v9, %v661_v59  ;;  %v828_v7 = vld [vmem:[#allocation2 + $0x14] sm:$0xff]  ;;  %v4412_v8 = vpop.f32.mrb[17].mxu0  ;;  %v3802_v58 = vld [vmem:[%s7317_s3 + $0x60] sm:$0xff]  ;;  %v3803_v59 = vld [vmem:[%s7317_s3 + $0x68] sm:$0xff] }
 0x10f   :  { %793 = vst.msk [vmem:[#allocation2 + $0x28] sm:$0xff] %vm787_vm4, %v767_v5  ;;  %v566_v10 = vpop.f32.mrb[18].mxu1  ;;  %4551 = vmatmul.mubr.msk.f32.vlgmr.msra.gmra.mrb[46].mxu0 %vm787_vm4, %v828_v7 }
 0x110   :  { %vm718_vm10 = vcmp.ge.f32.partialorder %v693_v6, 0.0  ;;  %v743_v11 = vmul.f32 0.01, %v693_v6  ;;  %v662_v12 = vmax.f32 %v275_v51, %v566_v10  ;;  %v4490_v13 = vpop.f32.mrb[19].mxu1  ;;  %4553 = vmatprep.mubr.msk.f32.mxu0 %vm5799_vm0, %v5800_v4  ;;  %5288 = vmatpush3.bf16.msra.mxu0 %v6255_v61  ;;  %v818_v51 = vld [vmem:[#allocation2 + $0x8] sm:$0xff]  ;;  %v6325_v10 = vpack.c.bf16 %v3803_v59, %v3802_v58 }
 0x111   :  { %v285_v15 = vpop.f32.mrb[18].mxu0  ;;  %5289 = vmatprep.subr.bf16.mxu0 %v5798_v2  ;;  %v3805_v13 = vld [vmem:[%s7317_s3 + $0x78] sm:$0xff] }
 0x112   :  { %v768_v16 = vsel %vm718_vm10, %v693_v6, %v743_v11  ;;  %v694_v17 = vadd.f32 %v6236_v9, %v662_v12  ;;  %v829_v18 = vld [vmem:[#allocation2 + $0x1c] sm:$0xff]  ;;  %v4415_v19 = vpop.f32.mrb[19].mxu0  ;;  %v830_v29 = vld [vmem:[#allocation2 + $0x24] sm:$0xf]  ;;  %v3804_v12 = vld [vmem:[%s7317_s3 + $0x70] sm:$0xff] }
 0x113   :  { %794 = vst.msk [vmem:[#allocation2 + $0x30] sm:$0xff] %vm787_vm4, %v768_v16  ;;  %v571_v20 = vpop.f32.mrb[20].mxu1  ;;  %4554 = vmatmul.mubr.msk.f32.gmra.mrb[48].mxu0 %vm787_vm4, %v829_v18 }
 0x114   :  { %vm719_vm11 = vcmp.ge.f32.partialorder %v694_v17, 0.0  ;;  %v744_v21 = vmul.f32 0.01, %v694_v17  ;;  %v663_v22 = vmax.f32 %v280_v63, %v571_v20  ;;  %v4493_v23 = vpop.f32.mrb[21].mxu1  ;;  %4556 = vmatprep.mubr.msk.f32.mxu0 %vm5799_vm0, %v5800_v4  ;;  %5291 = vmatpush3.bf16.msra.mxu0 %v6269_v14 }
 0x115   :  { %v290_v24 = vpop.f32.mrb[20].mxu0  ;;  %5304 = vmatprep.subr.bf16.mxu0 %v5798_v2  ;;  %v6339_v23 = vpack.c.bf16 %v3805_v13, %v3804_v12 }
 0x116   :  { %v769_v27 = vsel %vm719_vm11, %v694_v17, %v744_v21  ;;  %v695_v28 = vadd.f32 %v6236_v9, %v663_v22  ;;  %v4418_v30 = vpop.f32.mrb[21].mxu0  ;;  %v1195_v17 = vld [vmem:[#allocation2 + $0x28] sm:$0xff] }
 0x117   :  { %795 = vst.msk [vmem:[#allocation2 + $0x38] sm:$0xff] %vm787_vm4, %v769_v27  ;;  %v576_v31 = vpop.f32.mrb[22].mxu1  ;;  %4557 = vmatmul.mubr.msk.f32.gmra.mrb[50].mxu0 %vm787_vm4, %v830_v29 }
 0x118   :  { %vm720_vm12 = vcmp.ge.f32.partialorder %v695_v28, 0.0  ;;  %v745_v32 = vmul.f32 0.01, %v695_v28  ;;  %v664_v33 = vmax.f32 %v285_v15, %v576_v31  ;;  %v4496_v34 = vpop.f32.mrb[23].mxu1  ;;  %4567 = vmatprep.mubr.msk.f32.mxu0 %vm5799_vm0, %v5800_v4 }
 0x119   :  { %v295_v36 = vpop.f32.mrb[22].mxu0  ;;  %v3812_v34 = vld [vmem:[%s7317_s3 + $0x80] sm:$0xff] }
 0x11a   :  { %v770_v39 = vsel %vm720_vm12, %v695_v28, %v745_v32  ;;  %v696_v40 = vadd.f32 %v6236_v9, %v664_v33  ;;  %v4421_v42 = vpop.f32.mrb[23].mxu0  ;;  %v1196_v27 = vld [vmem:[#allocation2 + $0x30] sm:$0xff] }
 0x11b   :  { %796 = vst.msk [vmem:[#allocation2 + $0x40] sm:$0xff] %vm787_vm4, %v770_v39  ;;  %v581_v43 = vpop.f32.mrb[24].mxu1  ;;  %4568 = vmatmul.mubr.msk.f32.vlgmr.msra.gmra.mrb[46].mxu0 %vm787_vm4, %v817_v41 }
 0x11c   :  { %vm721_vm13 = vcmp.ge.f32.partialorder %v696_v40, 0.0  ;;  %v746_v44 = vmul.f32 0.01, %v696_v40  ;;  %v665_v45 = vmax.f32 %v290_v24, %v581_v43  ;;  %v4499_v46 = vpop.f32.mrb[25].mxu1  ;;  %4570 = vmatprep.mubr.msk.f32.mxu0 %vm5799_vm0, %v5800_v4  ;;  %5306 = vmatpush3.bf16.msra.mxu0 %v6290_v35 }
 0x11d   :  { %v300_v48 = vpop.f32.mrb[24].mxu0  ;;  %5307 = vmatprep.subr.bf16.mxu0 %v5798_v2 }
 0x11e   :  { %v771_v49 = vsel %vm721_vm13, %v696_v40, %v746_v44  ;;  %v697_v50 = vadd.f32 %v6236_v9, %v665_v45  ;;  %v4424_v52 = vpop.f32.mrb[25].mxu0  ;;  %v1197_v39 = vld [vmem:[#allocation2 + $0x38] sm:$0xf] }
 0x11f   :  { %797 = vst.msk [vmem:[#allocation2 + $0x48] sm:$0xff] %vm787_vm4, %v771_v49  ;;  %v586_v53 = vpop.f32.mrb[26].mxu1  ;;  %4571 = vmatmul.mubr.msk.f32.gmra.mrb[48].mxu0 %vm787_vm4, %v818_v51  ;;  %v3815_v49 = vld [vmem:[%s7317_s3 + $0x98] sm:$0xff] }
 0x120   :  { %vm722_vm14 = vcmp.ge.f32.partialorder %v697_v50, 0.0  ;;  %v747_v54 = vmul.f32 0.01, %v697_v50  ;;  %v666_v55 = vmax.f32 %v295_v36, %v586_v53  ;;  %v4502_v56 = vpop.f32.mrb[27].mxu1  ;;  %4573 = vmatprep.mubr.msk.f32.mxu0 %vm5799_vm0, %v5800_v4  ;;  %5309 = vmatpush3.bf16.msra.mxu0 %v6304_v47  ;;  %v3813_v36 = vld [vmem:[%s7317_s3 + $0x88] sm:$0xff] }
 0x121   :  { %v305_v57 = vpop.f32.mrb[26].mxu0  ;;  %5316 = vmatprep.subr.bf16.mxu0 %v5798_v2  ;;  %v6360_v45 = vpack.c.bf16 %v3813_v36, %v3812_v34 }
 0x122   :  { %v772_v60 = vsel %vm722_vm14, %v697_v50, %v747_v54  ;;  %v698_v63 = vadd.f32 %v6236_v9, %v666_v55  ;;  %v4427_v1 = vpop.f32.mrb[27].mxu0  ;;  %v1390_v52 = vld [vmem:[#allocation2 + $0x3c] sm:$0xff] }
 0x123   :  { %798 = vst.msk [vmem:[#allocation2 + $0x50] sm:$0xff] %vm787_vm4, %v772_v60  ;;  %v591_v5 = vpop.f32.mrb[28].mxu1  ;;  %4574 = vmatmul.mubr.msk.f32.gmra.mrb[50].mxu0 %vm787_vm4, %v819_v0 }
 0x124   :  { %vm723_vm15 = vcmp.ge.f32.partialorder %v698_v63, 0.0  ;;  %v748_v6 = vmul.f32 0.01, %v698_v63  ;;  %v667_v7 = vmax.f32 %v300_v48, %v591_v5  ;;  %v4505_v8 = vpop.f32.mrb[29].mxu1  ;;  %4618 = vmatprep.mubr.msk.f32.mxu0 %vm5799_vm0, %v5800_v4  ;;  %v3814_v48 = vld [vmem:[%s7317_s3 + $0x90] sm:$0xff] }
 0x125   :  { %v310_v11 = vpop.f32.mrb[28].mxu0  ;;  %v6374_v58 = vpack.c.bf16 %v3815_v49, %v3814_v48 }
 0x126   :  { %v773_v15 = vsel %vm723_vm15, %v698_v63, %v748_v6  ;;  %v699_v16 = vadd.f32 %v6236_v9, %v667_v7  ;;  %v4430_v18 = vpop.f32.mrb[29].mxu0  ;;  %v1391_v0 = vld [vmem:[#allocation2 + $0x44] sm:$0xff] }
 0x127   :  { %799 = vst.msk [vmem:[#allocation2 + $0x58] sm:$0xff] %vm787_vm4, %v773_v15  ;;  %v596_v19 = vpop.f32.mrb[30].mxu1  ;;  %4619 = vmatmul.mubr.msk.f32.vlgmr.msra.gmra.mrb[46].mxu0 %vm787_vm4, %v1195_v17  ;;  %v1392_v15 = vld [vmem:[#allocation2 + $0x4c] sm:$0xf] }
 0x128   :  { %vm724_vm1 = vcmp.ge.f32.partialorder %v699_v16, 0.0  ;;  %v749_v20 = vmul.f32 0.01, %v699_v16  ;;  %v668_v21 = vmax.f32 %v305_v57, %v596_v19  ;;  %v4508_v22 = vpop.f32.mrb[31].mxu1  ;;  %4621 = vmatprep.mubr.msk.f32.mxu0 %vm5799_vm0, %v5800_v4  ;;  %5318 = vmatpush3.bf16.msra.mxu0 %v6325_v10 }
 0x129   :  { %v315_v24 = vpop.f32.mrb[30].mxu0  ;;  %5319 = vmatprep.subr.bf16.mxu0 %v5798_v2 }
 0x12a   :  { %v774_v25 = vsel %vm724_vm1, %v699_v16, %v749_v20  ;;  %v700_v26 = vadd.f32 %v6236_v9, %v668_v21  ;;  %v4433_v28 = vpop.f32.mrb[31].mxu0  ;;  %vm1797_vm1 = vcmask 523264  }
 0x12b   :  { %800 = vst.msk [vmem:[#allocation2 + $0x60] sm:$0xff] %vm787_vm4, %v774_v25  ;;  %v601_v29 = vpop.f32.mrb[32].mxu1  ;;  %4622 = vmatmul.mubr.msk.f32.gmra.mrb[48].mxu0 %vm787_vm4, %v1196_v27 }
 0x12c   :  { %vm725_vm2 = vcmp.ge.f32.partialorder %v700_v26, 0.0  ;;  %v750_v30 = vmul.f32 0.01, %v700_v26  ;;  %v669_v31 = vmax.f32 %v310_v11, %v601_v29  ;;  %v4511_v32 = vpop.f32.mrb[33].mxu1  ;;  %4624 = vmatprep.mubr.msk.f32.mxu0 %vm5799_vm0, %v5800_v4  ;;  %5321 = vmatpush3.bf16.msra.mxu0 %v6339_v23 }
 0x12d   :  { %v320_v33 = vpop.f32.mrb[32].mxu0  ;;  %5328 = vmatprep.subr.bf16.mxu0 %v5798_v2 }
 0x12e   :  { %v775_v37 = vsel %vm725_vm2, %v700_v26, %v750_v30  ;;  %v701_v38 = vadd.f32 %v6236_v9, %v669_v31  ;;  %v4436_v40 = vpop.f32.mrb[33].mxu0  ;;  %v1585_v26 = vld [vmem:[#allocation2 + $0x50] sm:$0xff]  ;;  %v1586_v36 = vld [vmem:[#allocation2 + $0x58] sm:$0xff] }
 0x12f   :  { %801 = vst.msk [vmem:[#allocation2 + $0x68] sm:$0xff] %vm787_vm4, %v775_v37  ;;  %v606_v41 = vpop.f32.mrb[34].mxu1  ;;  %4625 = vmatmul.mubr.msk.f32.gmra.mrb[50].mxu0 %vm787_vm4, %v1197_v39 }
 0x130   :  { %vm726_vm3 = vcmp.ge.f32.partialorder %v701_v38, 0.0  ;;  %v751_v42 = vmul.f32 0.01, %v701_v38  ;;  %v670_v43 = vmax.f32 %v315_v24, %v606_v41  ;;  %v4514_v44 = vpop.f32.mrb[35].mxu1  ;;  %4652 = vmatprep.mubr.msk.f32.mxu0 %vm5799_vm0, %v5800_v4 }
 0x131   :  { %v325_v46 = vpop.f32.mrb[34].mxu0 }
 0x132   :  { %v776_v50 = vsel %vm726_vm3, %v701_v38, %v751_v42  ;;  %v702_v51 = vadd.f32 %v6236_v9, %v670_v43  ;;  %v4439_v53 = vpop.f32.mrb[35].mxu0 }
 0x133   :  { %802 = vst.msk [vmem:[#allocation2 + $0x70] sm:$0xff] %vm787_vm4, %v776_v50  ;;  %v611_v54 = vpop.f32.mrb[36].mxu1  ;;  %4653 = vmatmul.mubr.msk.f32.vlgmr.msra.gmra.mrb[46].mxu0 %vm787_vm4, %v1390_v52 }
 0x134   :  { %vm727_vm5 = vcmp.ge.f32.partialorder %v702_v51, 0.0  ;;  %v752_v55 = vmul.f32 0.01, %v702_v51  ;;  %v671_v56 = vmax.f32 %v320_v33, %v611_v54  ;;  %v4517_v57 = vpop.f32.mrb[37].mxu1  ;;  %4655 = vmatprep.mubr.msk.f32.mxu0 %vm5799_vm0, %v5800_v4  ;;  %5330 = vmatpush3.bf16.msra.mxu0 %v6360_v45 }
 0x135   :  { %v330_v59 = vpop.f32.mrb[36].mxu0  ;;  %5331 = vmatprep.subr.bf16.mxu0 %v5798_v2 }
 0x136   :  { %v777_v60 = vsel %vm727_vm5, %v702_v51, %v752_v55  ;;  %v703_v63 = vadd.f32 %v6236_v9, %v671_v56  ;;  %v4442_v1 = vpop.f32.mrb[37].mxu0  ;;  %v820_v54 = vld [vmem:[#allocation2 + $0x64] sm:$0xff]  ;;  %vm1800_vm5 = vcmask 519168  }
 0x137   :  { %803 = vst.msk [vmem:[#allocation2 + $0x78] sm:$0xff] %vm787_vm4, %v777_v60  ;;  %v616_v5 = vpop.f32.mrb[38].mxu1  ;;  %4656 = vmatmul.mubr.msk.f32.gmra.mrb[48].mxu0 %vm787_vm4, %v1391_v0 }
 0x138   :  { %vm728_vm6 = vcmp.ge.f32.partialorder %v703_v63, 0.0  ;;  %v753_v6 = vmul.f32 0.01, %v703_v63  ;;  %v672_v7 = vmax.f32 %v325_v46, %v616_v5  ;;  %v4520_v8 = vpop.f32.mrb[39].mxu1  ;;  %4658 = vmatprep.mubr.msk.f32.mxu0 %vm5799_vm0, %v5800_v4  ;;  %5333 = vmatpush3.bf16.msra.mxu0 %v6374_v58  ;;  %v1587_v46 = vld [vmem:[#allocation2 + $0x60] sm:$0xf] }
 0x139   :  { %v335_v11 = vpop.f32.mrb[38].mxu0  ;;  %5340 = vmatprep.subr.bf16.mxu0 %v5798_v2 }
 0x13a   :  { %v778_v12 = vsel %vm728_vm6, %v703_v63, %v753_v6  ;;  %v704_v13 = vadd.f32 %v6236_v9, %v672_v7  ;;  %v4445_v16 = vpop.f32.mrb[39].mxu0  ;;  %v821_v1 = vld [vmem:[#allocation2 + $0x6c] sm:$0xff] }
 0x13b   :  { %804 = vst.msk [vmem:[#allocation2 + $0x80] sm:$0xff] %vm787_vm4, %v778_v12  ;;  %v621_v17 = vpop.f32.mrb[40].mxu1  ;;  %4659 = vmatmul.mubr.msk.f32.gmra.mrb[50].mxu0 %vm787_vm4, %v1392_v15  ;;  %v822_v12 = vld [vmem:[#allocation2 + $0x74] sm:$0xf] }
 0x13c   :  { %vm729_vm7 = vcmp.ge.f32.partialorder %v704_v13, 0.0  ;;  %v754_v18 = vmul.f32 0.01, %v704_v13  ;;  %v673_v19 = vmax.f32 %v330_v59, %v621_v17  ;;  %4686 = vmatprep.mubr.msk.f32.mxu0 %vm5799_vm0, %v5800_v4  ;;  %v4523_v20 = vpop.f32.mrb[41].mxu1 }
 0x13d   :  { %v340_v21 = vpop.f32.mrb[40].mxu0 }
 0x13e   :  { %v779_v22 = vsel %vm729_vm7, %v704_v13, %v754_v18  ;;  %v705_v24 = vadd.f32 %v6236_v9, %v673_v19  ;;  %v1009_v25 = vld [vmem:[#allocation2 + $0x78] sm:$0xff]  ;;  %v4448_v27 = vpop.f32.mrb[41].mxu0 }
 0x13f   :  { %805 = vst.msk [vmem:[#allocation2 + $0x88] sm:$0xff] %vm787_vm4, %v779_v22  ;;  %4585 = vmatmul.mubr.msk.f32.vlgmr.msra.gmra.mrb[54].mxu1 %vm787_vm4, %v1009_v25  ;;  %4687 = vmatmul.mubr.msk.f32.vlgmr.msra.gmra.mrb[46].mxu0 %vm787_vm4, %v1585_v26  ;;  %v626_v28 = vpop.f32.mrb[42].mxu1  ;;  %v1805_v25 = vld [vmem:[%s7319_s5 + $0x8] sm:$0xff]  ;;  %v1806_v27 = vld [vmem:[%s7319_s5 + $0x10] sm:$0xff] }
 0x140   :  { %vm730_vm8 = vcmp.ge.f32.partialorder %v705_v24, 0.0  ;;  %v755_v29 = vmul.f32 0.01, %v705_v24  ;;  %5300 = vmatpush3.bf16.msra.mxu1 %v6255_v61  ;;  %4587 = vmatprep.mubr.msk.f32.mxu1 %vm5799_vm0, %v5800_v4  ;;  %v674_v30 = vmax.f32 %v335_v11, %v626_v28  ;;  %v4526_v31 = vpop.f32.mrb[43].mxu1  ;;  %v1807_v28 = vld [vmem:[%s7319_s5 + $0x18] sm:$0xff] }
 0x141   :  { %4689 = vmatprep.mubr.msk.f32.mxu0 %vm5799_vm0, %v5800_v4  ;;  %5301 = vmatprep.subr.bf16.mxu1 %v5798_v2  ;;  %v345_v32 = vpop.f32.mrb[42].mxu0  ;;  %v1809_v31 = vld [vmem:[%s7319_s5 + $0x28] sm:$0xff] }
 0x142   :  { %v780_v33 = vsel %vm730_vm8, %v705_v24, %v755_v29  ;;  %v1010_v34 = vld [vmem:[#allocation2 + $0x80] sm:$0xff]  ;;  %v706_v37 = vadd.f32 %v6236_v9, %v674_v30  ;;  %v4451_v38 = vpop.f32.mrb[43].mxu0  ;;  %v6494_v29 = vpack.c.bf16 %v1807_v28, %v1806_v27 }
 0x143   :  { %806 = vst.msk [vmem:[#allocation2 + $0x90] sm:$0xff] %vm787_vm4, %v780_v33  ;;  %4588 = vmatmul.mubr.msk.f32.gmra.mrb[56].mxu1 %vm787_vm4, %v1010_v34  ;;  %4690 = vmatmul.mubr.msk.f32.gmra.mrb[48].mxu0 %vm787_vm4, %v1586_v36  ;;  %v631_v61 = vpop.f32.mrb[44].mxu1  ;;  %v1804_v24 = vld [vmem:[%s7319_s5] sm:$0xff]  ;;  %v1810_v33 = vld [vmem:[%s7319_s5 + $0x30] sm:$0xff]  ;;  %v1811_v34 = vld [vmem:[%s7319_s5 + $0x38] sm:$0xff] }
 0x144   :  { %vm731_vm9 = vcmp.ge.f32.partialorder %v706_v37, 0.0  ;;  %v756_v39 = vmul.f32 0.01, %v706_v37  ;;  %4590 = vmatprep.mubr.msk.f32.mxu1 %vm5799_vm0, %v5800_v4  ;;  %5303 = vmatpush3.bf16.msra.mxu1 %v6269_v14  ;;  %v4529_v40 = vpop.f32.mrb[45].mxu1  ;;  %v675_v41 = vmax.f32 %v340_v21, %v631_v61  ;;  %v6482_v26 = vpack.c.bf16 %v1805_v25, %v1804_v24  ;;  %v1808_v30 = vld [vmem:[%s7319_s5 + $0x20] sm:$0xff] }
 0x145   :  { %4692 = vmatprep.mubr.msk.f32.mxu0 %vm5799_vm0, %v5800_v4  ;;  %5310 = vmatprep.subr.bf16.mxu1 %v5798_v2  ;;  %v350_v42 = vpop.f32.mrb[44].mxu0  ;;  %v6518_v36 = vpack.c.bf16 %v1811_v34, %v1810_v33  ;;  %v3840_v28 = vld [vmem:[%s7321_s7 + $0xa0] sm:$0xff]  ;;  %v1984_v33 = vld [vmem:[%s7321_s7 + $0x28] sm:$0xff] }
 0x146   :  { %v781_v43 = vsel %vm731_vm9, %v706_v37, %v756_v39  ;;  %v1011_v44 = vld [vmem:[#allocation2 + $0x88] sm:$0xf]  ;;  %v707_v48 = vadd.f32 %v6236_v9, %v675_v41  ;;  %v4454_v49 = vpop.f32.mrb[45].mxu0  ;;  %5342 = vmatpush3.bf16.msra.mxu0 %v6482_v26 }
 0x147   :  { %807 = vst.msk [vmem:[#allocation2 + $0x98] sm:$0xff] %vm787_vm4, %v781_v43  ;;  %4591 = vmatmul.mubr.msk.f32.gmra.mrb[58].mxu1 %vm787_vm4, %v1011_v44  ;;  %4693 = vmatmul.mubr.msk.f32.gmra.mrb[50].mxu0 %vm787_vm4, %v1587_v46  ;;  %v636_v14 = vpop.f32.mrb[46].mxu1  ;;  %v3822_v43 = vld [vmem:[%s7318_s4] ss:$0 sm:$0xff] }
 0x148   :  { %4601 = vmatprep.mubr.msk.f32.mxu1 %vm5799_vm0, %v5800_v4  ;;  %vm732_vm10 = vcmp.ge.f32.partialorder %v707_v48, 0.0  ;;  %v757_v50 = vmul.f32 0.01, %v707_v48  ;;  %v4532_v51 = vpop.f32.mrb[47].mxu1  ;;  %v676_v52 = vmax.f32 %v345_v32, %v636_v14  ;;  %4728 = vmatprep.mubr.msk.f32.mxu0 %vm5799_vm0, %v5800_v4  ;;  %v6506_v32 = vpack.c.bf16 %v1809_v31, %v1808_v30  ;;  %v3841_v30 = vld [vmem:[%s7321_s7 + $0xa8] sm:$0xff]  ;;  %v1983_v31 = vld [vmem:[%s7321_s7 + $0x20] sm:$0xff] }
 0x149   :  { %5343 = vmatprep.subr.bf16.mxu0 %v5798_v2  ;;  %v5395_v34 = vpack.c.bf16 %v3841_v30, %v3840_v28  ;;  %v1998_v28 = vld [vmem:[%s7324_s10 + $0x18] sm:$0xff] }
 0x14a   :  { %v782_v53 = vsel %vm732_vm10, %v707_v48, %v757_v50  ;;  %v708_v55 = vadd.f32 %v6236_v9, %v676_v52  ;;  %v1290_v18 = vld [vmem:[#allocation2 + $0x8c] sm:$0xff]  ;;  %5345 = vmatpush3.bf16.msra.mxu0 %v6494_v29 }
 0x14b   :  { %808 = vst.msk [vmem:[#allocation2 + $0xa0] sm:$0xff] %vm787_vm4, %v782_v53  ;;  %4602 = vmatmul.mubr.msk.f32.vlgmr.msra.gmra.mrb[54].mxu1 %vm787_vm4, %v820_v54  ;;  %v641_v56 = vpop.f32.mrb[48].mxu1  ;;  %5346 = vmatprep.subr.bf16.mxu0 %v5798_v2 }
 0x14c   :  { %5312 = vmatpush3.bf16.msra.mxu1 %v6290_v35  ;;  %vm733_vm11 = vcmp.ge.f32.partialorder %v708_v55, 0.0  ;;  %v758_v57 = vmul.f32 0.01, %v708_v55  ;;  %v4535_v59 = vpop.f32.mrb[49].mxu1  ;;  %4604 = vmatprep.mubr.msk.f32.mxu1 %vm5799_vm0, %v5800_v4  ;;  %v677_v60 = vmax.f32 %v350_v42, %v641_v56 }
 0x14d   :  { %5313 = vmatprep.subr.bf16.mxu1 %v5798_v2  ;;  %v3825_v59 = vld [vmem:[%s7319_s5 + $0x40] sm:$0xff] }
 0x14e   :  { %v783_v63 = vsel %vm733_vm11, %v708_v55, %v758_v57  ;;  %v709_v0 = vadd.f32 %v6236_v9, %v677_v60  ;;  %v1291_v20 = vld [vmem:[#allocation2 + $0x94] sm:$0xff]  ;;  %5348 = vmatpush3.bf16.msra.mxu0 %v6506_v32  ;;  %v3826_v60 = vld [vmem:[%s7319_s5 + $0x48] sm:$0xff] }
 0x14f   :  { %809 = vst.msk [vmem:[#allocation2 + $0xa8] sm:$0xff] %vm787_vm4, %v783_v63  ;;  %v646_v5 = vpop.f32.mrb[50].mxu1  ;;  %4605 = vmatmul.mubr.msk.f32.gmra.mrb[56].mxu1 %vm787_vm4, %v821_v1  ;;  %5349 = vmatprep.subr.bf16.mxu0 %v5798_v2 }
 0x150   :  { %vm734_vm12 = vcmp.ge.f32.partialorder %v709_v0, 0.0  ;;  %v759_v35 = vmul.f32 0.01, %v709_v0  ;;  %v678_v6 = vmax.f32 %v6229_v62, %v646_v5  ;;  %v4538_v7 = vpop.f32.mrb[51].mxu1  ;;  %4607 = vmatprep.mubr.msk.f32.mxu1 %vm5799_vm0, %v5800_v4  ;;  %5315 = vmatpush3.bf16.msra.mxu1 %v6304_v47  ;;  %v6535_v5 = vpack.c.bf16 %v3826_v60, %v3825_v59  ;;  %v1991_v59 = vld [vmem:[%s7321_s7 + $0x60] sm:$0xff]  ;;  %v1992_v60 = vld [vmem:[%s7321_s7 + $0x68] sm:$0xff] }
 0x151   :  { %5322 = vmatprep.subr.bf16.mxu1 %v5798_v2 }
 0x152   :  { %v784_v8 = vsel %vm734_vm12, %v709_v0, %v759_v35  ;;  %v710_v11 = vadd.f32 %v6236_v9, %v678_v6  ;;  %5351 = vmatpush3.bf16.msra.mxu0 %v6518_v36  ;;  %v3827_v35 = vld [vmem:[%s7319_s5 + $0x50] sm:$0xff]  ;;  %v3828_v6 = vld [vmem:[%s7319_s5 + $0x58] sm:$0xff]  ;;  %vm3484_vm12 = vcmask 812032  }
 0x153   :  { %810 = vst.msk [vmem:[#allocation2 + $0xb0] sm:$0xff] %vm787_vm4, %v784_v8  ;;  %v651_v13 = vpop.f32.mrb[52].mxu1  ;;  %4608 = vmatmul.mubr.msk.f32.gmra.mrb[58].mxu1 %vm787_vm4, %v822_v12  ;;  %5352 = vmatprep.subr.bf16.mxu0 %v5798_v2  ;;  %v6547_v12 = vpack.c.bf16 %v3828_v6, %v3827_v35  ;;  %v3851_v35 = vld [vmem:[%s7321_s7 + $0xf8] sm:$0xff]  ;;  %v1993_v6 = vld [vmem:[%s7321_s7 + $0x70] sm:$0xff] }
 0x154   :  { %vm735_vm13 = vcmp.ge.f32.partialorder %v710_v11, 0.0  ;;  %v760_v15 = vmul.f32 0.01, %v710_v11  ;;  %v679_v62 = vmax.f32 %v6231_v3, %v651_v13  ;;  %4635 = vmatprep.mubr.msk.f32.mxu1 %vm5799_vm0, %v5800_v4  ;;  %v4541_v16 = vpop.f32.mrb[53].mxu1  ;;  %v3829_v13 = vld [vmem:[%s7319_s5 + $0x60] sm:$0xff] }
 0x155   :  { %v3831_v16 = vld [vmem:[%s7319_s5 + $0x70] sm:$0xff] }
 0x156   :  { %v785_v47 = vsel %vm735_vm13, %v710_v11, %v760_v15  ;;  %v711_v17 = vadd.f32 %v6236_v9, %v679_v62  ;;  %v1292_v9 = vld [vmem:[#allocation2 + $0x9c] sm:$0xf]  ;;  %v1486_v21 = vld [vmem:[#allocation2 + $0xa8] sm:$0xff] }
 0x157   :  { %811 = vst.msk [vmem:[#allocation2 + $0xb8] sm:$0xff] %vm787_vm4, %v785_v47  ;;  %4636 = vmatmul.mubr.msk.f32.vlgmr.msra.gmra.mrb[54].mxu1 %vm787_vm4, %v1290_v18  ;;  %v3830_v15 = vld [vmem:[%s7319_s5 + $0x68] sm:$0xff]  ;;  %v3832_v47 = vld [vmem:[%s7319_s5 + $0x78] sm:$0xff]  ;;  %v3836_v18 = vld [vmem:[%s7321_s7 + $0x80] sm:$0xff] }
 0x158   :  { %vm736_vm14 = vcmp.ge.f32.partialorder %v711_v17, 0.0  ;;  %v761_v19 = vmul.f32 0.01, %v711_v17  ;;  %5324 = vmatpush3.bf16.msra.mxu1 %v6325_v10  ;;  %4638 = vmatprep.mubr.msk.f32.mxu1 %vm5799_vm0, %v5800_v4  ;;  %v1485_v10 = vld [vmem:[#allocation2 + $0xa0] sm:$0xff]  ;;  %v6563_v62 = vpack.c.bf16 %v3830_v15, %v3829_v13 }
 0x159   :  { %5325 = vmatprep.subr.bf16.mxu1 %v5798_v2  ;;  %v6704_v13 = vld [vmem:[%s7320_s6] ss:$0 sm:$0xff] }
 0x15a   :  { %v786_v3 = vsel %vm736_vm14, %v711_v17, %v761_v19  ;;  %v6575_v17 = vpack.c.bf16 %v3832_v47, %v3831_v16  ;;  %v3837_v19 = vld [vmem:[%s7321_s7 + $0x88] sm:$0xff]  ;;  %v3852_v15 = vld [vmem:[%s7324_s10 + $0x80] sm:$0xff] }
 0x15b   :  { %812 = vst.msk [vmem:[#allocation2 + $0xc0] sm:$0xff] %vm787_vm4, %v786_v3  ;;  %4639 = vmatmul.mubr.msk.f32.gmra.mrb[56].mxu1 %vm787_vm4, %v1291_v20  ;;  %v1979_v3 = vld [vmem:[%s7321_s7] sm:$0xff]  ;;  %v1980_v20 = vld [vmem:[%s7321_s7 + $0x8] sm:$0xff] }
 0x15c   :  { %4641 = vmatprep.mubr.msk.f32.mxu1 %vm5799_vm0, %v5800_v4  ;;  %5327 = vmatpush3.bf16.msra.mxu1 %v6339_v23  ;;  %v1487_v23 = vld [vmem:[#allocation2 + $0xb0] sm:$0xf]  ;;  %v3853_v16 = vld [vmem:[%s7324_s10 + $0x88] sm:$0xff]  ;;  %v1995_v47 = vld [vmem:[%s7324_s10] sm:$0xff] }
 0x15d   :  { %5334 = vmatprep.subr.bf16.mxu1 %v5798_v2 }
 0x15f   :  { %4642 = vmatmul.mubr.msk.f32.gmra.mrb[58].mxu1 %vm787_vm4, %v1292_v9  ;;  %v5389_v9 = vpack.c.bf16 %v3837_v19, %v3836_v18  ;;  %v1996_v18 = vld [vmem:[%s7324_s10 + $0x8] sm:$0xff] }
 0x160   :  { %4669 = vmatprep.mubr.msk.f32.mxu1 %vm5799_vm0, %v5800_v4 }
 0x162   :  { %v1681_v22 = vld [vmem:[#allocation2 + $0xbc] sm:$0xff] }
 0x163   :  { %4670 = vmatmul.mubr.msk.f32.vlgmr.msra.gmra.mrb[54].mxu1 %vm787_vm4, %v1485_v10  ;;  %v5413_v10 = vpack.c.bf16 %v1980_v20, %v1979_v3 }
 0x164   :  { %5336 = vmatpush3.bf16.msra.mxu1 %v6360_v45  ;;  %4672 = vmatprep.mubr.msk.f32.mxu1 %vm5799_vm0, %v5800_v4  ;;  %v1680_v45 = vld [vmem:[#allocation2 + $0xb4] sm:$0xff] }
 0x165   :  { %5337 = vmatprep.subr.bf16.mxu1 %v5798_v2 }
 0x167   :  { %4673 = vmatmul.mubr.msk.f32.gmra.mrb[56].mxu1 %vm787_vm4, %v1486_v21  ;;  %v3838_v21 = vld [vmem:[%s7321_s7 + $0x90] sm:$0xff] }
 0x168   :  { %4675 = vmatprep.mubr.msk.f32.mxu1 %vm5799_vm0, %v5800_v4  ;;  %5339 = vmatpush3.bf16.msra.mxu1 %v6374_v58  ;;  %v1682_v58 = vld [vmem:[#allocation2 + $0xc4] sm:$0xf] }
 0x169   :  { %5364 = vmatprep.subr.bf16.mxu1 %v5798_v2 }
 0x16b   :  { %4676 = vmatmul.mubr.msk.f32.gmra.mrb[58].mxu1 %vm787_vm4, %v1487_v23  ;;  %v3839_v23 = vld [vmem:[%s7321_s7 + $0x98] sm:$0xff] }
 0x16c   :  { %4703 = vmatprep.mubr.msk.f32.mxu1 %vm5799_vm0, %v5800_v4  ;;  %v5392_v25 = vpack.c.bf16 %v3839_v23, %v3838_v21  ;;  %v5437_v23 = vpack.c.bf16 %v3853_v16, %v3852_v15  ;;  %v3867_v15 = vld [vmem:[%s7324_s10 + $0xf8] sm:$0xff]  ;;  %v2009_v16 = vld [vmem:[%s7324_s10 + $0x70] sm:$0xff] }
 0x16f   :  { %4704 = vmatmul.mubr.msk.f32.vlgmr.msra.gmra.mrb[54].mxu1 %vm787_vm4, %v1680_v45  ;;  %v1981_v45 = vld [vmem:[%s7321_s7 + $0x10] sm:$0xff] }
 0x170   :  { %4706 = vmatprep.mubr.msk.f32.mxu1 %vm5799_vm0, %v5800_v4  ;;  %5366 = vmatpush3.bf16.msra.mxu1 %v6482_v26 }
 0x171   :  { %5367 = vmatprep.subr.bf16.mxu1 %v5798_v2 }
 0x173   :  { %4707 = vmatmul.mubr.msk.f32.gmra.mrb[56].mxu1 %vm787_vm4, %v1681_v22  ;;  %v1982_v22 = vld [vmem:[%s7321_s7 + $0x18] sm:$0xff] }
 0x174   :  { %4709 = vmatprep.mubr.msk.f32.mxu1 %vm5799_vm0, %v5800_v4  ;;  %5369 = vmatpush3.bf16.msra.mxu1 %v6494_v29  ;;  %v5416_v27 = vpack.c.bf16 %v1982_v22, %v1981_v45  ;;  %v5461_v45 = vpack.c.bf16 %v1996_v18, %v1995_v47  ;;  %v3854_v22 = vld [vmem:[%s7324_s10 + $0x90] sm:$0xff]  ;;  %v2010_v47 = vld [vmem:[%s7324_s10 + $0x78] sm:$0xff] }
 0x175   :  { %5370 = vmatprep.subr.bf16.mxu1 %v5798_v2 }
 0x177   :  { %4710 = vmatmul.mubr.msk.f32.gmra.mrb[58].mxu1 %vm787_vm4, %v1682_v58 }
 0x178   :  { %4766 = vmatprep.mubr.msk.f32.mxu1 %vm5799_vm0, %v5800_v4  ;;  %5372 = vmatpush3.bf16.msra.mxu1 %v6506_v32 }
 0x179   :  { %5373 = vmatprep.subr.bf16.mxu1 %v5798_v2 }
 0x17c   :  { %5375 = vmatpush3.bf16.msra.mxu1 %v6518_v36 }
 0x17d   :  { %5376 = vmatprep.subr.bf16.mxu1 %v5798_v2 }
 0x212   :  { %v1663_v37 = vpop.f32.mrb[46].mxu0 }
 0x213   :  { %v4688_v38 = vpop.f32.mrb[47].mxu0 }
 0x214   :  { %v3842_v38 = vld [vmem:[%s7321_s7 + $0xb0] sm:$0xff] }
 0x216   :  { %v1668_v61 = vpop.f32.mrb[48].mxu0 }
 0x217   :  { %v4691_v39 = vpop.f32.mrb[49].mxu0 }
 0x218   :  { %v1985_v39 = vld [vmem:[%s7321_s7 + $0x30] sm:$0xff] }
 0x21a   :  { %v1673_v40 = vpop.f32.mrb[50].mxu0 }
 0x21b   :  { %v4694_v41 = vpop.f32.mrb[51].mxu0 }
 0x242   :  { %v1758_v42 = vpop.f32.mrb[54].mxu1 }
 0x243   :  { %v1775_v44 = vmax.f32 %v1663_v37, %v1758_v42  ;;  %v4705_v46 = vpop.f32.mrb[55].mxu1  ;;  %v5419_v37 = vpack.c.bf16 %v1984_v33, %v1983_v31 }
 0x244   :  { %v1987_v46 = vld [vmem:[%s7321_s7 + $0x40] sm:$0xff] }
 0x245   :  { %v1785_v48 = vadd.f32 %v3822_v43, %v1775_v44  ;;  %v3845_v44 = vld [vmem:[%s7321_s7 + $0xc8] sm:$0xff] }
 0x246   :  { %v1763_v49 = vpop.f32.mrb[56].mxu1 }
 0x247   :  { %vm1788_vm15 = vcmp.ge.f32.partialorder %v1785_v48, 0.0  ;;  %v1791_v14 = vmul.f32 0.01, %v1785_v48  ;;  %v1776_v50 = vmax.f32 %v1668_v61, %v1763_v49  ;;  %v4708_v51 = vpop.f32.mrb[57].mxu1  ;;  %v3843_v61 = vld [vmem:[%s7321_s7 + $0xb8] sm:$0xff] }
 0x248   :  { %v5398_v41 = vpack.c.bf16 %v3843_v61, %v3842_v38  ;;  %v3847_v51 = vld [vmem:[%s7321_s7 + $0xd8] sm:$0xff]  ;;  %v3857_v38 = vld [vmem:[%s7324_s10 + $0xa8] sm:$0xff]  ;;  %v1999_v61 = vld [vmem:[%s7324_s10 + $0x20] sm:$0xff] }
 0x249   :  { %v1794_v52 = vsel %vm1788_vm15, %v1785_v48, %v1791_v14  ;;  %v1786_v53 = vadd.f32 %v3822_v43, %v1776_v50  ;;  %v1988_v48 = vld [vmem:[%s7321_s7 + $0x48] sm:$0xff]  ;;  %v3846_v50 = vld [vmem:[%s7321_s7 + $0xd0] sm:$0xff] }
 0x24a   :  { %1798 = vst.msk [vmem:[#allocation3] sm:$0xff] %vm1797_vm1, %v1794_v52  ;;  %v1768_v54 = vpop.f32.mrb[58].mxu1  ;;  %v5425_v14 = vpack.c.bf16 %v1988_v48, %v1987_v46  ;;  %v1989_v52 = vld [vmem:[%s7321_s7 + $0x50] sm:$0xff]  ;;  %v2002_v46 = vld [vmem:[%s7324_s10 + $0x38] sm:$0xff] }
 0x24b   :  { %vm1789_vm2 = vcmp.ge.f32.partialorder %v1786_v53, 0.0  ;;  %v1792_v55 = vmul.f32 0.01, %v1786_v53  ;;  %v1777_v56 = vmax.f32 %v1673_v40, %v1768_v54  ;;  %v4711_v57 = vpop.f32.mrb[59].mxu1  ;;  %v1986_v40 = vld [vmem:[%s7321_s7 + $0x38] sm:$0xff]  ;;  %v5404_v54 = vpack.c.bf16 %v3847_v51, %v3846_v50  ;;  %v3861_v50 = vld [vmem:[%s7324_s10 + $0xc8] sm:$0xff] }
 0x24c   :  { %v5422_v42 = vpack.c.bf16 %v1986_v40, %v1985_v39  ;;  %v3849_v57 = vld [vmem:[%s7321_s7 + $0xe8] sm:$0xff]  ;;  %v2003_v51 = vld [vmem:[%s7324_s10 + $0x40] sm:$0xff] }
 0x24d   :  { %v1795_v63 = vsel %vm1789_vm2, %v1786_v53, %v1792_v55  ;;  %v1787_v0 = vadd.f32 %v3822_v43, %v1777_v56  ;;  %v3844_v43 = vld [vmem:[%s7321_s7 + $0xc0] sm:$0xff]  ;;  %v1990_v53 = vld [vmem:[%s7321_s7 + $0x58] sm:$0xff]  ;;  %v2000_v39 = vld [vmem:[%s7324_s10 + $0x28] sm:$0xff] }
 0x24e   :  { %1799 = vst.msk [vmem:[#allocation3 + $0x8] sm:$0xff] %vm1797_vm1, %v1795_v63  ;;  %v5401_v49 = vpack.c.bf16 %v3845_v44, %v3844_v43  ;;  %v5428_v55 = vpack.c.bf16 %v1990_v53, %v1989_v52  ;;  %v3848_v56 = vld [vmem:[%s7321_s7 + $0xe0] sm:$0xff]  ;;  %v3859_v43 = vld [vmem:[%s7324_s10 + $0xb8] sm:$0xff]  ;;  %v2001_v44 = vld [vmem:[%s7324_s10 + $0x30] sm:$0xff] }
 0x24f   :  { %vm1790_vm3 = vcmp.ge.f32.partialorder %v1787_v0, 0.0  ;;  %v1793_v1 = vmul.f32 0.01, %v1787_v0  ;;  %v5407_v63 = vpack.c.bf16 %v3849_v57, %v3848_v56  ;;  %v2004_v52 = vld [vmem:[%s7324_s10 + $0x48] sm:$0xff]  ;;  %v3863_v56 = vld [vmem:[%s7324_s10 + $0xd8] sm:$0xff]  ;;  %v2005_v57 = vld [vmem:[%s7324_s10 + $0x50] sm:$0xff] }
 0x251   :  { %v1796_v7 = vsel %vm1790_vm3, %v1787_v0, %v1793_v1  ;;  %v1803_v8 = vld [vmem:[#allocation3] sm:$0x3]  ;;  %v2011_v11 = vld [vmem:[#allocation3 + $0x4] sm:$0x3]  ;;  %v1892_v58 = vld [vmem:[#allocation3 + $0x2] sm:$0x3]  ;;  %v5431_v0 = vpack.c.bf16 %v1992_v60, %v1991_v59 }
 0x252   :  { %1801 = vst.msk [vmem:[#allocation3 + $0x10] sm:$0xf] %vm1800_vm5, %v1796_v7  ;;  %4729 = vmatmul.mubr.msk.f32.vlgmr.msra.gmra.mrb[52].mxu0 %vm1797_vm1, %v1803_v8  ;;  %4767 = vmatmul.mubr.msk.f32.vlgmr.msra.gmra.mrb[60].mxu1 %vm1797_vm1, %v2011_v11  ;;  %v2086_v24 = vld [vmem:[#allocation3 + $0x6] sm:$0x3]  ;;  %v3850_v1 = vld [vmem:[%s7321_s7 + $0xf0] sm:$0xff]  ;;  %v1994_v8 = vld [vmem:[%s7321_s7 + $0x78] sm:$0xff] }
 0x253   :  { %5354 = vmatpush3.bf16.msra.mxu0 %v6535_v5  ;;  %5378 = vmatpush3.bf16.msra.mxu1 %v6535_v5  ;;  %v5410_v7 = vpack.c.bf16 %v3851_v35, %v3850_v1  ;;  %v5434_v11 = vpack.c.bf16 %v1994_v8, %v1993_v6  ;;  %v2006_v59 = vld [vmem:[%s7324_s10 + $0x58] sm:$0xff]  ;;  %v3865_v1 = vld [vmem:[%s7324_s10 + $0xe8] sm:$0xff]  ;;  %v2007_v35 = vld [vmem:[%s7324_s10 + $0x60] sm:$0xff] }
 0x254   :  { %5355 = vmatprep.subr.bf16.mxu0 %v5798_v2  ;;  %5379 = vmatprep.subr.bf16.mxu1 %v5798_v2  ;;  %v2008_v6 = vld [vmem:[%s7324_s10 + $0x68] sm:$0xff] }
 0x255   :  { %4747 = vmatprep.mubr.msk.f32.mxu0 %vm5799_vm0, %v5800_v4  ;;  %4785 = vmatprep.mubr.msk.f32.mxu1 %vm5799_vm0, %v5800_v4  ;;  %v5479_v8 = vpack.c.bf16 %v2008_v6, %v2007_v35  ;;  %v3884_v6 = vld [vmem:[%s7321_s7 + $0x170] sm:$0xff] }
 0x257   :  { %5357 = vmatpush3.bf16.msra.mxu0 %v6547_v12  ;;  %5381 = vmatpush3.bf16.msra.mxu1 %v6547_v12 }
 0x258   :  { %5358 = vmatprep.subr.bf16.mxu0 %v5798_v2  ;;  %5382 = vmatprep.subr.bf16.mxu1 %v5798_v2 }
 0x25b   :  { %5360 = vmatpush3.bf16.msra.mxu0 %v6563_v62  ;;  %5384 = vmatpush3.bf16.msra.mxu1 %v6563_v62 }
 0x25c   :  { %5361 = vmatprep.subr.bf16.mxu0 %v5798_v2  ;;  %5385 = vmatprep.subr.bf16.mxu1 %v5798_v2 }
 0x25f   :  { %5363 = vmatpush3.bf16.msra.mxu0 %v6575_v17  ;;  %5387 = vmatpush3.bf16.msra.mxu1 %v6575_v17 }
 0x260   :  { %5388 = vmatprep.subr.bf16.mxu0 %v5798_v2  ;;  %5412 = vmatprep.subr.bf16.mxu1 %v5798_v2 }
 0x262   :  { %4748 = vmatmul.mubr.msk.f32.vlgmr.msra.gmra.mrb[52].mxu0 %vm1797_vm1, %v1892_v58  ;;  %4786 = vmatmul.mubr.msk.f32.vlgmr.msra.gmra.mrb[60].mxu1 %vm1797_vm1, %v2086_v24 }
 0x263   :  { %5390 = vmatpush3.bf16.msra.mxu0 %v5389_v9  ;;  %5414 = vmatpush3.bf16.msra.mxu1 %v5413_v10 }
 0x264   :  { %5391 = vmatprep.subr.bf16.mxu0 %v5798_v2  ;;  %5415 = vmatprep.subr.bf16.mxu1 %v5798_v2 }
 0x265   :  { %4820 = vmatprep.mubr.msk.f32.mxu0 %vm5799_vm0, %v5800_v4  ;;  %4855 = vmatprep.mubr.msk.f32.mxu1 %vm5799_vm0, %v5800_v4 }
 0x267   :  { %5393 = vmatpush3.bf16.msra.mxu0 %v5392_v25  ;;  %5417 = vmatpush3.bf16.msra.mxu1 %v5416_v27  ;;  %v3855_v25 = vld [vmem:[%s7324_s10 + $0x98] sm:$0xff]  ;;  %v1997_v27 = vld [vmem:[%s7324_s10 + $0x10] sm:$0xff] }
 0x268   :  { %5394 = vmatprep.subr.bf16.mxu0 %v5798_v2  ;;  %5418 = vmatprep.subr.bf16.mxu1 %v5798_v2  ;;  %v5440_v33 = vpack.c.bf16 %v3855_v25, %v3854_v22  ;;  %v3872_v22 = vld [vmem:[%s7321_s7 + $0x110] sm:$0xff] }
 0x269   :  { %v3888_v25 = vld [vmem:[%s7324_s10 + $0x110] sm:$0xff] }
 0x26b   :  { %5396 = vmatpush3.bf16.msra.mxu0 %v5395_v34  ;;  %5420 = vmatpush3.bf16.msra.mxu1 %v5419_v37  ;;  %v5464_v34 = vpack.c.bf16 %v1998_v28, %v1997_v27  ;;  %v3856_v37 = vld [vmem:[%s7324_s10 + $0xa0] sm:$0xff]  ;;  %v3889_v27 = vld [vmem:[%s7324_s10 + $0x118] sm:$0xff] }
 0x26c   :  { %5397 = vmatprep.subr.bf16.mxu0 %v5798_v2  ;;  %5421 = vmatprep.subr.bf16.mxu1 %v5798_v2  ;;  %v5443_v40 = vpack.c.bf16 %v3857_v38, %v3856_v37  ;;  %v3891_v37 = vld [vmem:[%s7324_s10 + $0x128] sm:$0xff] }
 0x26f   :  { %5399 = vmatpush3.bf16.msra.mxu0 %v5398_v41  ;;  %5423 = vmatpush3.bf16.msra.mxu1 %v5422_v42  ;;  %v5467_v41 = vpack.c.bf16 %v2000_v39, %v1999_v61  ;;  %v3858_v42 = vld [vmem:[%s7324_s10 + $0xb0] sm:$0xff] }
 0x270   :  { %5400 = vmatprep.subr.bf16.mxu0 %v5798_v2  ;;  %5424 = vmatprep.subr.bf16.mxu1 %v5798_v2  ;;  %v5446_v48 = vpack.c.bf16 %v3859_v43, %v3858_v42  ;;  %v3876_v39 = vld [vmem:[%s7321_s7 + $0x130] sm:$0xff]  ;;  %v3893_v42 = vld [vmem:[%s7324_s10 + $0x138] sm:$0xff] }
 0x273   :  { %5402 = vmatpush3.bf16.msra.mxu0 %v5401_v49  ;;  %5426 = vmatpush3.bf16.msra.mxu1 %v5425_v14  ;;  %v5470_v49 = vpack.c.bf16 %v2002_v46, %v2001_v44  ;;  %v3860_v14 = vld [vmem:[%s7324_s10 + $0xc0] sm:$0xff] }
 0x274   :  { %5403 = vmatprep.subr.bf16.mxu0 %v5798_v2  ;;  %5427 = vmatprep.subr.bf16.mxu1 %v5798_v2  ;;  %v5449_v53 = vpack.c.bf16 %v3861_v50, %v3860_v14  ;;  %v3878_v46 = vld [vmem:[%s7321_s7 + $0x140] sm:$0xff]  ;;  %v3895_v14 = vld [vmem:[%s7324_s10 + $0x148] sm:$0xff] }
 0x277   :  { %5405 = vmatpush3.bf16.msra.mxu0 %v5404_v54  ;;  %5429 = vmatpush3.bf16.msra.mxu1 %v5428_v55  ;;  %v5473_v54 = vpack.c.bf16 %v2004_v52, %v2003_v51  ;;  %v3862_v55 = vld [vmem:[%s7324_s10 + $0xd0] sm:$0xff] }
 0x278   :  { %5406 = vmatprep.subr.bf16.mxu0 %v5798_v2  ;;  %5430 = vmatprep.subr.bf16.mxu1 %v5798_v2  ;;  %v5452_v60 = vpack.c.bf16 %v3863_v56, %v3862_v55  ;;  %v3880_v52 = vld [vmem:[%s7321_s7 + $0x150] sm:$0xff]  ;;  %v3897_v55 = vld [vmem:[%s7324_s10 + $0x158] sm:$0xff] }
 0x27b   :  { %5408 = vmatpush3.bf16.msra.mxu0 %v5407_v63  ;;  %5432 = vmatpush3.bf16.msra.mxu1 %v5431_v0  ;;  %v5476_v63 = vpack.c.bf16 %v2006_v59, %v2005_v57  ;;  %v3864_v0 = vld [vmem:[%s7324_s10 + $0xe0] sm:$0xff] }
 0x27c   :  { %5409 = vmatprep.subr.bf16.mxu0 %v5798_v2  ;;  %5433 = vmatprep.subr.bf16.mxu1 %v5798_v2  ;;  %v3882_v59 = vld [vmem:[%s7321_s7 + $0x160] sm:$0xff] }
 0x27f   :  { %5411 = vmatpush3.bf16.msra.mxu0 %v5410_v7  ;;  %5435 = vmatpush3.bf16.msra.mxu1 %v5434_v11  ;;  %v5455_v7 = vpack.c.bf16 %v3865_v1, %v3864_v0  ;;  %v3866_v11 = vld [vmem:[%s7324_s10 + $0xf0] sm:$0xff]  ;;  %v3899_v0 = vld [vmem:[%s7324_s10 + $0x168] sm:$0xff] }
 0x280   :  { %5436 = vmatprep.subr.bf16.mxu0 %v5798_v2  ;;  %5460 = vmatprep.subr.bf16.mxu1 %v5798_v2  ;;  %v5458_v18 = vpack.c.bf16 %v3867_v15, %v3866_v11  ;;  %v3900_v11 = vld [vmem:[%s7324_s10 + $0x170] sm:$0xff]  ;;  %v3901_v15 = vld [vmem:[%s7324_s10 + $0x178] sm:$0xff] }
 0x335   :  { %v1971_v19 = vpop.f32.mrb[52].mxu0  ;;  %v2156_v3 = vpop.f32.mrb[60].mxu1 }
 0x336   :  { %v5716_v20 = vadd.f32 %v6704_v13, %v1971_v19  ;;  %v5717_v9 = vadd.f32 %v6704_v13, %v2156_v3  ;;  %v4749_v10 = vpop.f32.mrb[53].mxu0  ;;  %v4787_v21 = vpop.f32.mrb[61].mxu1  ;;  %v5482_v19 = vpack.c.bf16 %v2010_v47, %v2009_v16  ;;  %v2478_v3 = vld [vmem:[#allocation3 + $0x8] sm:$0x3]  ;;  %v5554_v16 = vpack.c.bf16 %v3901_v15, %v3900_v11  ;;  %v3931_v11 = vld [vmem:[%s7324_s10 + $0x1d8] sm:$0xff] }
 0x337   :  { %v3871_v10 = vld [vmem:[%s7321_s7 + $0x108] sm:$0xff]  ;;  %v3886_v21 = vld [vmem:[%s7324_s10 + $0x100] sm:$0xff] }
 0x338   :  { %vm1976_vm6 = vcmp.ge.f32.partialorder %v5716_v20, 0.0  ;;  %v1977_v58 = vmul.f32 0.01, %v5716_v20  ;;  %vm2161_vm7 = vcmp.ge.f32.partialorder %v5717_v9, 0.0  ;;  %v2162_v24 = vmul.f32 0.01, %v5717_v9 }
 0x33a   :  { %v6732_v30 = vsel %vm2161_vm7, %v5717_v9, %v2162_v24  ;;  %v6734_v31 = vsel %vm1976_vm6, %v5716_v20, %v1977_v58  ;;  %v2553_v20 = vld [vmem:[#allocation3 + $0xa] sm:$0x3]  ;;  %v3870_v9 = vld [vmem:[%s7321_s7 + $0x100] sm:$0xff]  ;;  %v3873_v58 = vld [vmem:[%s7321_s7 + $0x118] sm:$0xff] }
 0x33b   :  { %4821 = vmatmul.mubr.f32.vlgmr.msra.gmra.mrb[54].mxu0 %v6732_v30  ;;  %4856 = vmatmul.mubr.f32.vlgmr.msra.gmra.mrb[62].mxu1 %v6734_v31  ;;  %v5512_v28 = vpack.c.bf16 %v3873_v58, %v3872_v22 }
 0x33c   :  { %5438 = vmatpush3.bf16.msra.mxu0 %v5437_v23  ;;  %5462 = vmatpush3.bf16.msra.mxu1 %v5461_v45  ;;  %v5509_v23 = vpack.c.bf16 %v3871_v10, %v3870_v9  ;;  %v3887_v45 = vld [vmem:[%s7324_s10 + $0x108] sm:$0xff] }
 0x33d   :  { %5439 = vmatprep.subr.bf16.mxu0 %v5798_v2  ;;  %5463 = vmatprep.subr.bf16.mxu1 %v5798_v2  ;;  %v5533_v24 = vpack.c.bf16 %v3887_v45, %v3886_v21 }
 0x33e   :  { %4890 = vmatprep.mubr.msk.f32.mxu0 %vm5799_vm0, %v5800_v4  ;;  %4925 = vmatprep.mubr.msk.f32.mxu1 %vm5799_vm0, %v5800_v4 }
 0x340   :  { %5441 = vmatpush3.bf16.msra.mxu0 %v5440_v33  ;;  %5465 = vmatpush3.bf16.msra.mxu1 %v5464_v34  ;;  %v3875_v33 = vld [vmem:[%s7321_s7 + $0x128] sm:$0xff]  ;;  %v3890_v34 = vld [vmem:[%s7324_s10 + $0x120] sm:$0xff] }
 0x341   :  { %5442 = vmatprep.subr.bf16.mxu0 %v5798_v2  ;;  %5466 = vmatprep.subr.bf16.mxu1 %v5798_v2  ;;  %v5539_v61 = vpack.c.bf16 %v3891_v37, %v3890_v34  ;;  %v3920_v34 = vld [vmem:[%s7324_s10 + $0x180] sm:$0xff] }
 0x344   :  { %5444 = vmatpush3.bf16.msra.mxu0 %v5443_v40  ;;  %5468 = vmatpush3.bf16.msra.mxu1 %v5467_v41  ;;  %v3877_v40 = vld [vmem:[%s7321_s7 + $0x138] sm:$0xff]  ;;  %v3892_v41 = vld [vmem:[%s7324_s10 + $0x130] sm:$0xff] }
 0x345   :  { %5445 = vmatprep.subr.bf16.mxu0 %v5798_v2  ;;  %5469 = vmatprep.subr.bf16.mxu1 %v5798_v2  ;;  %v5518_v43 = vpack.c.bf16 %v3877_v40, %v3876_v39  ;;  %v5542_v44 = vpack.c.bf16 %v3893_v42, %v3892_v41  ;;  %v3907_v39 = vld [vmem:[%s7321_s7 + $0x198] sm:$0xff]  ;;  %v3922_v41 = vld [vmem:[%s7324_s10 + $0x190] sm:$0xff] }
 0x346   :  { %v3923_v42 = vld [vmem:[%s7324_s10 + $0x198] sm:$0xff] }
 0x348   :  { %5447 = vmatpush3.bf16.msra.mxu0 %v5446_v48  ;;  %5471 = vmatpush3.bf16.msra.mxu1 %v5470_v49  ;;  %v3879_v48 = vld [vmem:[%s7321_s7 + $0x148] sm:$0xff]  ;;  %v3894_v49 = vld [vmem:[%s7324_s10 + $0x140] sm:$0xff] }
 0x349   :  { %5448 = vmatprep.subr.bf16.mxu0 %v5798_v2  ;;  %5472 = vmatprep.subr.bf16.mxu1 %v5798_v2  ;;  %v5521_v50 = vpack.c.bf16 %v3879_v48, %v3878_v46  ;;  %v5545_v51 = vpack.c.bf16 %v3895_v14, %v3894_v49  ;;  %v3908_v46 = vld [vmem:[%s7321_s7 + $0x1a0] sm:$0xff]  ;;  %v3909_v48 = vld [vmem:[%s7321_s7 + $0x1a8] sm:$0xff] }
 0x34a   :  { %v3924_v49 = vld [vmem:[%s7324_s10 + $0x1a0] sm:$0xff]  ;;  %v3925_v14 = vld [vmem:[%s7324_s10 + $0x1a8] sm:$0xff] }
 0x34c   :  { %5450 = vmatpush3.bf16.msra.mxu0 %v5449_v53  ;;  %5474 = vmatpush3.bf16.msra.mxu1 %v5473_v54  ;;  %v3881_v53 = vld [vmem:[%s7321_s7 + $0x158] sm:$0xff]  ;;  %v3896_v54 = vld [vmem:[%s7324_s10 + $0x150] sm:$0xff] }
 0x34d   :  { %5451 = vmatprep.subr.bf16.mxu0 %v5798_v2  ;;  %5475 = vmatprep.subr.bf16.mxu1 %v5798_v2  ;;  %v5524_v56 = vpack.c.bf16 %v3881_v53, %v3880_v52  ;;  %v5548_v57 = vpack.c.bf16 %v3897_v55, %v3896_v54  ;;  %v3910_v52 = vld [vmem:[%s7321_s7 + $0x1b0] sm:$0xff]  ;;  %v3911_v53 = vld [vmem:[%s7321_s7 + $0x1b8] sm:$0xff] }
 0x34e   :  { %v3926_v54 = vld [vmem:[%s7324_s10 + $0x1b0] sm:$0xff]  ;;  %v3927_v55 = vld [vmem:[%s7324_s10 + $0x1b8] sm:$0xff] }
 0x350   :  { %5453 = vmatpush3.bf16.msra.mxu0 %v5452_v60  ;;  %5477 = vmatpush3.bf16.msra.mxu1 %v5476_v63  ;;  %v3883_v60 = vld [vmem:[%s7321_s7 + $0x168] sm:$0xff]  ;;  %v3898_v63 = vld [vmem:[%s7324_s10 + $0x160] sm:$0xff] }
 0x351   :  { %5454 = vmatprep.subr.bf16.mxu0 %v5798_v2  ;;  %5478 = vmatprep.subr.bf16.mxu1 %v5798_v2  ;;  %v5527_v1 = vpack.c.bf16 %v3883_v60, %v3882_v59  ;;  %v5551_v35 = vpack.c.bf16 %v3899_v0, %v3898_v63  ;;  %v3912_v59 = vld [vmem:[%s7321_s7 + $0x1c0] sm:$0xff]  ;;  %v3913_v60 = vld [vmem:[%s7321_s7 + $0x1c8] sm:$0xff] }
 0x352   :  { %v3928_v63 = vld [vmem:[%s7324_s10 + $0x1c0] sm:$0xff]  ;;  %v3929_v0 = vld [vmem:[%s7324_s10 + $0x1c8] sm:$0xff] }
 0x354   :  { %5456 = vmatpush3.bf16.msra.mxu0 %v5455_v7  ;;  %5480 = vmatpush3.bf16.msra.mxu1 %v5479_v8  ;;  %v3885_v7 = vld [vmem:[%s7321_s7 + $0x178] sm:$0xff] }
 0x355   :  { %5457 = vmatprep.subr.bf16.mxu0 %v5798_v2  ;;  %5481 = vmatprep.subr.bf16.mxu1 %v5798_v2  ;;  %v5530_v8 = vpack.c.bf16 %v3885_v7, %v3884_v6  ;;  %v3914_v6 = vld [vmem:[%s7321_s7 + $0x1d0] sm:$0xff]  ;;  %v3915_v7 = vld [vmem:[%s7321_s7 + $0x1d8] sm:$0xff] }
 0x356   :  { %v5596_v15 = vpack.c.bf16 %v3915_v7, %v3914_v6  ;;  %v3948_v6 = vld [vmem:[%s7321_s7 + $0x250] sm:$0xff]  ;;  %v3949_v7 = vld [vmem:[%s7321_s7 + $0x258] sm:$0xff] }
 0x358   :  { %5459 = vmatpush3.bf16.msra.mxu0 %v5458_v18  ;;  %5483 = vmatpush3.bf16.msra.mxu1 %v5482_v19 }
 0x359   :  { %5484 = vmatprep.subr.bf16.mxu0 %v5798_v2  ;;  %5508 = vmatprep.subr.bf16.mxu1 %v5798_v2 }
 0x35b   :  { %4891 = vmatmul.mubr.f32.vlgmr.msra.gmra.mrb[56].mxu0 %v6732_v30  ;;  %4926 = vmatmul.mubr.f32.vlgmr.msra.gmra.mrb[64].mxu1 %v6734_v31  ;;  %v5536_v30 = vpack.c.bf16 %v3889_v27, %v3888_v25  ;;  %v3874_v31 = vld [vmem:[%s7321_s7 + $0x120] sm:$0xff] }
 0x35c   :  { %5486 = vmatpush3.bf16.msra.mxu0 %v6482_v26  ;;  %4944 = vmatprep.mubr.msk.f32.mxu0 %vm5799_vm0, %v5800_v4  ;;  %v5515_v38 = vpack.c.bf16 %v3875_v33, %v3874_v31  ;;  %v3904_v31 = vld [vmem:[%s7321_s7 + $0x180] sm:$0xff]  ;;  %v3905_v33 = vld [vmem:[%s7321_s7 + $0x188] sm:$0xff] }
 0x35d   :  { %5487 = vmatprep.subr.bf16.mxu0 %v5798_v2  ;;  %4998 = vmatprep.mubr.msk.f32.mxu1 %vm5799_vm0, %v5800_v4  ;;  %v5581_v37 = vpack.c.bf16 %v3905_v33, %v3904_v31 }
 0x35e   :  { %5510 = vmatpush3.bf16.msra.mxu1 %v5509_v23 }
 0x35f   :  { %5511 = vmatprep.subr.bf16.mxu1 %v5798_v2 }
 0x360   :  { %5489 = vmatpush3.bf16.msra.mxu0 %v6494_v29 }
 0x361   :  { %5490 = vmatprep.subr.bf16.mxu0 %v5798_v2 }
 0x362   :  { %5513 = vmatpush3.bf16.msra.mxu1 %v5512_v28  ;;  %v2807_v28 = vld [vmem:[#allocation3 + $0xc] sm:$0x3] }
 0x363   :  { %5514 = vmatprep.subr.bf16.mxu1 %v5798_v2 }
 0x364   :  { %5492 = vmatpush3.bf16.msra.mxu0 %v6506_v32 }
 0x365   :  { %5493 = vmatprep.subr.bf16.mxu0 %v5798_v2 }
 0x366   :  { %5516 = vmatpush3.bf16.msra.mxu1 %v5515_v38  ;;  %v3921_v38 = vld [vmem:[%s7324_s10 + $0x188] sm:$0xff] }
 0x367   :  { %5517 = vmatprep.subr.bf16.mxu1 %v5798_v2  ;;  %v5605_v40 = vpack.c.bf16 %v3921_v38, %v3920_v34 }
 0x368   :  { %5495 = vmatpush3.bf16.msra.mxu0 %v6518_v36 }
 0x369   :  { %5496 = vmatprep.subr.bf16.mxu0 %v5798_v2 }
 0x36a   :  { %5519 = vmatpush3.bf16.msra.mxu1 %v5518_v43 }
 0x36b   :  { %4945 = vmatmul.mubr.msk.f32.vlgmr.msra.gmra.mrb[58].mxu0 %vm1797_vm1, %v2478_v3  ;;  %5520 = vmatprep.subr.bf16.mxu1 %v5798_v2 }
 0x36c   :  { %5498 = vmatpush3.bf16.msra.mxu0 %v6535_v5  ;;  %4963 = vmatprep.mubr.msk.f32.mxu0 %vm5799_vm0, %v5800_v4 }
 0x36d   :  { %5499 = vmatprep.subr.bf16.mxu0 %v5798_v2 }
 0x36e   :  { %5522 = vmatpush3.bf16.msra.mxu1 %v5521_v50  ;;  %v5587_v50 = vpack.c.bf16 %v3909_v48, %v3908_v46  ;;  %v3942_v46 = vld [vmem:[%s7321_s7 + $0x220] sm:$0xff]  ;;  %v3943_v48 = vld [vmem:[%s7321_s7 + $0x228] sm:$0xff] }
 0x36f   :  { %5523 = vmatprep.subr.bf16.mxu1 %v5798_v2 }
 0x370   :  { %5501 = vmatpush3.bf16.msra.mxu0 %v6547_v12 }
 0x371   :  { %5502 = vmatprep.subr.bf16.mxu0 %v5798_v2 }
 0x372   :  { %5525 = vmatpush3.bf16.msra.mxu1 %v5524_v56  ;;  %v5590_v56 = vpack.c.bf16 %v3911_v53, %v3910_v52  ;;  %v3944_v52 = vld [vmem:[%s7321_s7 + $0x230] sm:$0xff]  ;;  %v3945_v53 = vld [vmem:[%s7321_s7 + $0x238] sm:$0xff] }
 0x373   :  { %5526 = vmatprep.subr.bf16.mxu1 %v5798_v2 }
 0x374   :  { %5504 = vmatpush3.bf16.msra.mxu0 %v6563_v62 }
 0x375   :  { %5505 = vmatprep.subr.bf16.mxu0 %v5798_v2 }
 0x376   :  { %5528 = vmatpush3.bf16.msra.mxu1 %v5527_v1  ;;  %v5593_v1 = vpack.c.bf16 %v3913_v60, %v3912_v59  ;;  %v3946_v59 = vld [vmem:[%s7321_s7 + $0x240] sm:$0xff]  ;;  %v3947_v60 = vld [vmem:[%s7321_s7 + $0x248] sm:$0xff] }
 0x377   :  { %5529 = vmatprep.subr.bf16.mxu1 %v5798_v2 }
 0x378   :  { %5507 = vmatpush3.bf16.msra.mxu0 %v6575_v17 }
 0x379   :  { %5532 = vmatprep.subr.bf16.mxu0 %v5798_v2 }
 0x37a   :  { %5531 = vmatpush3.bf16.msra.mxu1 %v5530_v8  ;;  %v3930_v8 = vld [vmem:[%s7324_s10 + $0x1d0] sm:$0xff] }
 0x37b   :  { %4964 = vmatmul.mubr.msk.f32.vlgmr.msra.gmra.mrb[58].mxu0 %vm1797_vm1, %v2553_v20  ;;  %5556 = vmatprep.subr.bf16.mxu1 %v5798_v2 }
 0x37c   :  { %5033 = vmatprep.mubr.msk.f32.mxu0 %vm5799_vm0, %v5800_v4  ;;  %5534 = vmatpush3.bf16.msra.mxu0 %v5533_v24 }
 0x37d   :  { %5535 = vmatprep.subr.bf16.mxu0 %v5798_v2 }
 0x380   :  { %5537 = vmatpush3.bf16.msra.mxu0 %v5536_v30  ;;  %v2882_v30 = vld [vmem:[#allocation3 + $0xe] sm:$0x3] }
 0x381   :  { %5538 = vmatprep.subr.bf16.mxu0 %v5798_v2 }
 0x384   :  { %5540 = vmatpush3.bf16.msra.mxu0 %v5539_v61  ;;  %v3906_v61 = vld [vmem:[%s7321_s7 + $0x190] sm:$0xff] }
 0x385   :  { %5541 = vmatprep.subr.bf16.mxu0 %v5798_v2  ;;  %v5584_v43 = vpack.c.bf16 %v3907_v39, %v3906_v61 }
 0x388   :  { %5543 = vmatpush3.bf16.msra.mxu0 %v5542_v44  ;;  %v5608_v44 = vpack.c.bf16 %v3923_v42, %v3922_v41  ;;  %v3956_v41 = vld [vmem:[%s7324_s10 + $0x210] sm:$0xff]  ;;  %v3957_v42 = vld [vmem:[%s7324_s10 + $0x218] sm:$0xff] }
 0x389   :  { %5544 = vmatprep.subr.bf16.mxu0 %v5798_v2 }
 0x38c   :  { %5546 = vmatpush3.bf16.msra.mxu0 %v5545_v51  ;;  %v5611_v51 = vpack.c.bf16 %v3925_v14, %v3924_v49  ;;  %v3958_v49 = vld [vmem:[%s7324_s10 + $0x220] sm:$0xff]  ;;  %v3959_v14 = vld [vmem:[%s7324_s10 + $0x228] sm:$0xff] }
 0x38d   :  { %5547 = vmatprep.subr.bf16.mxu0 %v5798_v2 }
 0x390   :  { %5549 = vmatpush3.bf16.msra.mxu0 %v5548_v57  ;;  %v5614_v57 = vpack.c.bf16 %v3927_v55, %v3926_v54  ;;  %v3960_v54 = vld [vmem:[%s7324_s10 + $0x230] sm:$0xff]  ;;  %v3961_v55 = vld [vmem:[%s7324_s10 + $0x238] sm:$0xff] }
 0x391   :  { %5550 = vmatprep.subr.bf16.mxu0 %v5798_v2 }
 0x394   :  { %5552 = vmatpush3.bf16.msra.mxu0 %v5551_v35  ;;  %v5617_v35 = vpack.c.bf16 %v3929_v0, %v3928_v63  ;;  %v3962_v63 = vld [vmem:[%s7324_s10 + $0x240] sm:$0xff]  ;;  %v3963_v0 = vld [vmem:[%s7324_s10 + $0x248] sm:$0xff] }
 0x395   :  { %5553 = vmatprep.subr.bf16.mxu0 %v5798_v2 }
 0x398   :  { %5555 = vmatpush3.bf16.msra.mxu0 %v5554_v16  ;;  %v5620_v16 = vpack.c.bf16 %v3931_v11, %v3930_v8  ;;  %v3964_v8 = vld [vmem:[%s7324_s10 + $0x250] sm:$0xff]  ;;  %v3965_v11 = vld [vmem:[%s7324_s10 + $0x258] sm:$0xff] }
 0x399   :  { %5580 = vmatprep.subr.bf16.mxu0 %v5798_v2 }
 0x40e   :  { %v2247_v47 = vpop.f32.mrb[54].mxu0  ;;  %v2317_v18 = vpop.f32.mrb[62].mxu1 }
 0x40f   :  { %v6970_v19 = vadd.f32 %v2317_v18, %v2247_v47  ;;  %v4822_v3 = vpop.f32.mrb[55].mxu0  ;;  %v4857_v20 = vpop.f32.mrb[63].mxu1  ;;  %v3916_v47 = vld [vmem:[%s7321_s7 + $0x1e0] sm:$0xff]  ;;  %v3917_v18 = vld [vmem:[%s7321_s7 + $0x1e8] sm:$0xff] }
 0x410   :  { %v3932_v3 = vld [vmem:[%s7324_s10 + $0x1e0] sm:$0xff]  ;;  %v3933_v20 = vld [vmem:[%s7324_s10 + $0x1e8] sm:$0xff] }
 0x42e   :  { %v2404_v9 = vpop.f32.mrb[56].mxu0  ;;  %v2474_v10 = vpop.f32.mrb[64].mxu1 }
 0x42f   :  { %v6972_v21 = vadd.f32 %v2474_v10, %v2404_v9  ;;  %v4892_v23 = vpop.f32.mrb[57].mxu0  ;;  %v4927_v45 = vpop.f32.mrb[65].mxu1  ;;  %v5599_v9 = vpack.c.bf16 %v3917_v18, %v3916_v47  ;;  %v5623_v10 = vpack.c.bf16 %v3933_v20, %v3932_v3  ;;  %v3950_v47 = vld [vmem:[%s7321_s7 + $0x260] sm:$0xff]  ;;  %v3951_v18 = vld [vmem:[%s7321_s7 + $0x268] sm:$0xff] }
 0x430   :  { %v3918_v23 = vld [vmem:[%s7321_s7 + $0x1f0] sm:$0xff]  ;;  %v3919_v45 = vld [vmem:[%s7321_s7 + $0x1f8] sm:$0xff]  ;;  %v3966_v3 = vld [vmem:[%s7324_s10 + $0x260] sm:$0xff] }
 0x431   :  { %v3967_v20 = vld [vmem:[%s7324_s10 + $0x268] sm:$0xff] }
 0x44e   :  { %v2623_v22 = vpop.f32.mrb[58].mxu0 }
 0x44f   :  { %v5718_v58 = vadd.f32 %v6704_v13, %v2623_v22  ;;  %v4965_v24 = vpop.f32.mrb[59].mxu0  ;;  %v5602_v22 = vpack.c.bf16 %v3919_v45, %v3918_v23  ;;  %v3952_v23 = vld [vmem:[%s7321_s7 + $0x270] sm:$0xff]  ;;  %v3953_v45 = vld [vmem:[%s7321_s7 + $0x278] sm:$0xff] }
 0x450   :  { %v3935_v24 = vld [vmem:[%s7324_s10 + $0x1f8] sm:$0xff] }
 0x451   :  { %vm2628_vm8 = vcmp.ge.f32.partialorder %v5718_v58, 0.0  ;;  %v2629_v25 = vmul.f32 0.01, %v5718_v58 }
 0x453   :  { %v2630_v27 = vsel %vm2628_vm8, %v5718_v58, %v2629_v25  ;;  %v3934_v58 = vld [vmem:[%s7324_s10 + $0x1f0] sm:$0xff] }
 0x454   :  { %4999 = vmatmul.mubr.f32.vlgmr.msra.gmra.mrb[66].mxu1 %v2630_v27  ;;  %5034 = vmatmul.mubr.f32.vlgmr.msra.gmra.mrb[60].mxu0 %v2630_v27  ;;  %v5626_v25 = vpack.c.bf16 %v3935_v24, %v3934_v58  ;;  %v5674_v58 = vpack.c.bf16 %v3953_v45, %v3952_v23  ;;  %v3969_v24 = vld [vmem:[%s7324_s10 + $0x278] sm:$0xff] }
 0x455   :  { %5558 = vmatpush3.bf16.msra.mxu1 %v6482_v26  ;;  %5052 = vmatprep.mubr.msk.f32.mxu1 %vm5799_vm0, %v5800_v4 }
 0x456   :  { %5559 = vmatprep.subr.bf16.mxu1 %v5798_v2  ;;  %5106 = vmatprep.mubr.msk.f32.mxu0 %vm5799_vm0, %v5800_v4 }
 0x457   :  { %5582 = vmatpush3.bf16.msra.mxu0 %v5581_v37 }
 0x458   :  { %5583 = vmatprep.subr.bf16.mxu0 %v5798_v2 }
 0x459   :  { %5561 = vmatpush3.bf16.msra.mxu1 %v6494_v29 }
 0x45a   :  { %5562 = vmatprep.subr.bf16.mxu1 %v5798_v2 }
 0x45b   :  { %5585 = vmatpush3.bf16.msra.mxu0 %v5584_v43 }
 0x45c   :  { %5586 = vmatprep.subr.bf16.mxu0 %v5798_v2 }
 0x45d   :  { %5564 = vmatpush3.bf16.msra.mxu1 %v6506_v32 }
 0x45e   :  { %5565 = vmatprep.subr.bf16.mxu1 %v5798_v2 }
 0x45f   :  { %5588 = vmatpush3.bf16.msra.mxu0 %v5587_v50  ;;  %v5659_v50 = vpack.c.bf16 %v3943_v48, %v3942_v46 }
 0x460   :  { %5589 = vmatprep.subr.bf16.mxu0 %v5798_v2 }
 0x461   :  { %5567 = vmatpush3.bf16.msra.mxu1 %v6518_v36 }
 0x462   :  { %5568 = vmatprep.subr.bf16.mxu1 %v5798_v2 }
 0x463   :  { %5591 = vmatpush3.bf16.msra.mxu0 %v5590_v56  ;;  %v5662_v56 = vpack.c.bf16 %v3945_v53, %v3944_v52  ;;  %v3975_v52 = vld [vmem:[%s7326_s12 + $0x20] sm:$0xff]  ;;  %v3976_v53 = vld [vmem:[%s7326_s12 + $0x28] sm:$0xff] }
 0x464   :  { %5053 = vmatmul.mubr.msk.f32.vlgmr.msra.gmra.mrb[68].mxu1 %vm1797_vm1, %v2807_v28  ;;  %5592 = vmatprep.subr.bf16.mxu0 %v5798_v2 }
 0x465   :  { %5570 = vmatpush3.bf16.msra.mxu1 %v6535_v5  ;;  %5071 = vmatprep.mubr.msk.f32.mxu1 %vm5799_vm0, %v5800_v4 }
 0x466   :  { %5571 = vmatprep.subr.bf16.mxu1 %v5798_v2 }
 0x467   :  { %5594 = vmatpush3.bf16.msra.mxu0 %v5593_v1  ;;  %v5665_v1 = vpack.c.bf16 %v3947_v60, %v3946_v59 }
 0x468   :  { %5595 = vmatprep.subr.bf16.mxu0 %v5798_v2 }
 0x469   :  { %5573 = vmatpush3.bf16.msra.mxu1 %v6547_v12 }
 0x46a   :  { %5574 = vmatprep.subr.bf16.mxu1 %v5798_v2 }
 0x46b   :  { %5597 = vmatpush3.bf16.msra.mxu0 %v5596_v15  ;;  %v5668_v15 = vpack.c.bf16 %v3949_v7, %v3948_v6 }
 0x46c   :  { %5598 = vmatprep.subr.bf16.mxu0 %v5798_v2 }
 0x46d   :  { %5576 = vmatpush3.bf16.msra.mxu1 %v6563_v62 }
 0x46e   :  { %5577 = vmatprep.subr.bf16.mxu1 %v5798_v2 }
 0x46f   :  { %5600 = vmatpush3.bf16.msra.mxu0 %v5599_v9  ;;  %v5671_v9 = vpack.c.bf16 %v3951_v18, %v3950_v47 }
 0x470   :  { %5601 = vmatprep.subr.bf16.mxu0 %v5798_v2 }
 0x471   :  { %5579 = vmatpush3.bf16.msra.mxu1 %v6575_v17 }
 0x472   :  { %5604 = vmatprep.subr.bf16.mxu1 %v5798_v2 }
 0x473   :  { %5603 = vmatpush3.bf16.msra.mxu0 %v5602_v22  ;;  %v3968_v22 = vld [vmem:[%s7324_s10 + $0x270] sm:$0xff] }
 0x474   :  { %5072 = vmatmul.mubr.msk.f32.vlgmr.msra.gmra.mrb[68].mxu1 %vm1797_vm1, %v2882_v30  ;;  %5628 = vmatprep.subr.bf16.mxu0 %v5798_v2 }
 0x475   :  { %5141 = vmatprep.mubr.msk.f32.mxu1 %vm5799_vm0, %v5800_v4  ;;  %5606 = vmatpush3.bf16.msra.mxu1 %v5605_v40 }
 0x476   :  { %5607 = vmatprep.subr.bf16.mxu1 %v5798_v2 }
 0x479   :  { %5609 = vmatpush3.bf16.msra.mxu1 %v5608_v44  ;;  %v5680_v44 = vpack.c.bf16 %v3957_v42, %v3956_v41 }
 0x47a   :  { %5610 = vmatprep.subr.bf16.mxu1 %v5798_v2 }
 0x47d   :  { %5612 = vmatpush3.bf16.msra.mxu1 %v5611_v51  ;;  %v5683_v51 = vpack.c.bf16 %v3959_v14, %v3958_v49  ;;  %v3971_v49 = vld [vmem:[%s7323_s9] ss:$0 sm:$0xff] }
 0x47e   :  { %5613 = vmatprep.subr.bf16.mxu1 %v5798_v2 }
 0x481   :  { %5615 = vmatpush3.bf16.msra.mxu1 %v5614_v57  ;;  %v5686_v57 = vpack.c.bf16 %v3961_v55, %v3960_v54  ;;  %v5707_v54 = vpack.c.bf16 %v3976_v53, %v3975_v52  ;;  %v3978_v55 = vld [vmem:[%s7326_s12 + $0x38] sm:$0xff] }
 0x482   :  { %5616 = vmatprep.subr.bf16.mxu1 %v5798_v2 }
 0x485   :  { %5618 = vmatpush3.bf16.msra.mxu1 %v5617_v35  ;;  %v5689_v35 = vpack.c.bf16 %v3963_v0, %v3962_v63 }
 0x486   :  { %5619 = vmatprep.subr.bf16.mxu1 %v5798_v2 }
 0x489   :  { %5621 = vmatpush3.bf16.msra.mxu1 %v5620_v16  ;;  %v5692_v16 = vpack.c.bf16 %v3965_v11, %v3964_v8 }
 0x48a   :  { %5622 = vmatprep.subr.bf16.mxu1 %v5798_v2 }
 0x48d   :  { %5624 = vmatpush3.bf16.msra.mxu1 %v5623_v10  ;;  %v5695_v10 = vpack.c.bf16 %v3967_v20, %v3966_v3  ;;  %v3683_v3 = vstv %s3983_s0 }
 0x48e   :  { %5625 = vmatprep.subr.bf16.mxu1 %v5798_v2 }
 0x491   :  { %5627 = vmatpush3.bf16.msra.mxu1 %v5626_v25  ;;  %v5698_v25 = vpack.c.bf16 %v3969_v24, %v3968_v22 }
 0x492   :  { %5652 = vmatprep.subr.bf16.mxu1 %v5798_v2 }
 0x527   :  { %v2714_v27 = vpop.f32.mrb[66].mxu1  ;;  %v2802_v28 = vpop.f32.mrb[60].mxu0 }
 0x528   :  { %v7114_v30 = vadd.f32 %v2714_v27, %v6970_v19  ;;  %v7117_v31 = vadd.f32 %v2802_v28, %v6972_v21  ;;  %v5000_v33 = vpop.f32.mrb[67].mxu1  ;;  %v5035_v34 = vpop.f32.mrb[61].mxu0  ;;  %v3941_v19 = vld [vmem:[%s7321_s7 + $0x218] sm:$0xff] }
 0x547   :  { %v2952_v37 = vpop.f32.mrb[68].mxu1 }
 0x548   :  { %v5719_v38 = vadd.f32 %v6704_v13, %v2952_v37  ;;  %v5073_v61 = vpop.f32.mrb[69].mxu1 }
 0x54a   :  { %vm2957_vm9 = vcmp.ge.f32.partialorder %v5719_v38, 0.0  ;;  %v2958_v39 = vmul.f32 0.01, %v5719_v38 }
 0x54c   :  { %v2959_v40 = vsel %vm2957_vm9, %v5719_v38, %v2958_v39  ;;  %v3499_v39 = vld [vmem:[%s7326_s12] sm:$0xff] }
 0x54d   :  { %5107 = vmatmul.mubr.f32.vlgmr.msra.gmra.mrb[62].mxu0 %v2959_v40  ;;  %5142 = vmatmul.mubr.f32.vlgmr.msra.gmra.mrb[70].mxu1 %v2959_v40  ;;  %v3500_v40 = vld [vmem:[%s7326_s12 + $0x8] sm:$0xff] }
 0x54e   :  { %5630 = vmatpush3.bf16.msra.mxu0 %v6482_v26  ;;  %5160 = vmatprep.mubr.msk.f32.mxu0 %vm5799_vm0, %v5800_v4  ;;  %v3136_v26 = vld [vmem:[#allocation3 + $0x10] sm:$0x3] }
 0x54f   :  { %5631 = vmatprep.subr.bf16.mxu0 %v5798_v2  ;;  %5214 = vmatprep.mubr.msk.f32.mxu1 %vm5799_vm0, %v5800_v4 }
 0x552   :  { %5633 = vmatpush3.bf16.msra.mxu0 %v6494_v29  ;;  %v3211_v29 = vld [vmem:[#allocation3 + $0x12] sm:$0x3] }
 0x553   :  { %5634 = vmatprep.subr.bf16.mxu0 %v5798_v2 }
 0x556   :  { %5636 = vmatpush3.bf16.msra.mxu0 %v6506_v32  ;;  %v3938_v32 = vld [vmem:[%s7321_s7 + $0x200] sm:$0xff] }
 0x557   :  { %5637 = vmatprep.subr.bf16.mxu0 %v5798_v2 }
 0x55a   :  { %5639 = vmatpush3.bf16.msra.mxu0 %v6518_v36  ;;  %v3939_v36 = vld [vmem:[%s7321_s7 + $0x208] sm:$0xff] }
 0x55b   :  { %5640 = vmatprep.subr.bf16.mxu0 %v5798_v2 }
 0x55d   :  { %5161 = vmatmul.mubr.msk.f32.vlgmr.msra.gmra.mrb[64].mxu0 %vm1797_vm1, %v3136_v26 }
 0x55e   :  { %5642 = vmatpush3.bf16.msra.mxu0 %v6535_v5  ;;  %5179 = vmatprep.mubr.msk.f32.mxu0 %vm5799_vm0, %v5800_v4  ;;  %v3954_v5 = vld [vmem:[%s7324_s10 + $0x200] sm:$0xff] }
 0x55f   :  { %5643 = vmatprep.subr.bf16.mxu0 %v5798_v2 }
 0x562   :  { %5645 = vmatpush3.bf16.msra.mxu0 %v6547_v12  ;;  %v5653_v12 = vpack.c.bf16 %v3939_v36, %v3938_v32  ;;  %v5701_v36 = vpack.c.bf16 %v3500_v40, %v3499_v39 }
 0x563   :  { %5646 = vmatprep.subr.bf16.mxu0 %v5798_v2 }
 0x564   :  { %5654 = vmatpush3.bf16.msra.mxu1 %v5653_v12 }
 0x565   :  { %5655 = vmatprep.subr.bf16.mxu1 %v5798_v2 }
 0x566   :  { %5648 = vmatpush3.bf16.msra.mxu0 %v6563_v62  ;;  %v3955_v62 = vld [vmem:[%s7324_s10 + $0x208] sm:$0xff] }
 0x567   :  { %5649 = vmatprep.subr.bf16.mxu0 %v5798_v2  ;;  %v5677_v21 = vpack.c.bf16 %v3955_v62, %v3954_v5  ;;  %v3970_v62 = vld [vmem:[%s7322_s8] ss:$0 sm:$0xff] }
 0x56a   :  { %5651 = vmatpush3.bf16.msra.mxu0 %v6575_v17  ;;  %v3940_v17 = vld [vmem:[%s7321_s7 + $0x210] sm:$0xff] }
 0x56b   :  { %5676 = vmatprep.subr.bf16.mxu0 %v5798_v2  ;;  %v5656_v43 = vpack.c.bf16 %v3941_v19, %v3940_v17  ;;  %v3972_v19 = vld [vmem:[%s7325_s11] ss:$0 sm:$0xff] }
 0x56d   :  { %5180 = vmatmul.mubr.msk.f32.vlgmr.msra.gmra.mrb[64].mxu0 %vm1797_vm1, %v3211_v29  ;;  %5657 = vmatpush3.bf16.msra.mxu1 %v5656_v43 }
 0x56e   :  { %5249 = vmatprep.mubr.msk.f32.mxu0 %vm5799_vm0, %v5800_v4  ;;  %5678 = vmatpush3.bf16.msra.mxu0 %v5677_v21 }
 0x56f   :  { %5679 = vmatprep.subr.bf16.mxu0 %v5798_v2  ;;  %5658 = vmatprep.subr.bf16.mxu1 %v5798_v2 }
 0x571   :  { %5660 = vmatpush3.bf16.msra.mxu1 %v5659_v50 }
 0x572   :  { %5681 = vmatpush3.bf16.msra.mxu0 %v5680_v44  ;;  %5661 = vmatprep.subr.bf16.mxu1 %v5798_v2 }
 0x573   :  { %5682 = vmatprep.subr.bf16.mxu0 %v5798_v2 }
 0x575   :  { %5663 = vmatpush3.bf16.msra.mxu1 %v5662_v56 }
 0x576   :  { %5684 = vmatpush3.bf16.msra.mxu0 %v5683_v51  ;;  %5664 = vmatprep.subr.bf16.mxu1 %v5798_v2 }
 0x577   :  { %5685 = vmatprep.subr.bf16.mxu0 %v5798_v2 }
 0x579   :  { %5666 = vmatpush3.bf16.msra.mxu1 %v5665_v1 }
 0x57a   :  { %5687 = vmatpush3.bf16.msra.mxu0 %v5686_v57  ;;  %5667 = vmatprep.subr.bf16.mxu1 %v5798_v2  ;;  %v3973_v57 = vld [vmem:[%s7327_s13] ss:$0 sm:$0xff] }
 0x57b   :  { %5688 = vmatprep.subr.bf16.mxu0 %v5798_v2 }
 0x57d   :  { %5669 = vmatpush3.bf16.msra.mxu1 %v5668_v15  ;;  %v3685_v15 = vlaneseq }
 0x57e   :  { %5690 = vmatpush3.bf16.msra.mxu0 %v5689_v35  ;;  %5670 = vmatprep.subr.bf16.mxu1 %v5798_v2  ;;  %v3982_v35 = vld [vmem:[%s7328_s14] ss:$0 sm:$0xff] }
 0x57f   :  { %5691 = vmatprep.subr.bf16.mxu0 %v5798_v2  ;;  %v3686_v47 = vand.u32 127, %v3685_v15 }
 0x581   :  { %5672 = vmatpush3.bf16.msra.mxu1 %v5671_v9  ;;  %vm3689_vm13 = vcmp.eq.s32.totalorder %v3686_v47, 1 }
 0x582   :  { %5693 = vmatpush3.bf16.msra.mxu0 %v5692_v16  ;;  %5673 = vmatprep.subr.bf16.mxu1 %v5798_v2 }
 0x583   :  { %5694 = vmatprep.subr.bf16.mxu0 %v5798_v2 }
 0x585   :  { %5675 = vmatpush3.bf16.msra.mxu1 %v5674_v58 }
 0x586   :  { %5696 = vmatpush3.bf16.msra.mxu0 %v5695_v10  ;;  %5700 = vmatprep.subr.bf16.mxu1 %v5798_v2 }
 0x587   :  { %5697 = vmatprep.subr.bf16.mxu0 %v5798_v2 }
 0x58a   :  { %5699 = vmatpush3.bf16.msra.mxu0 %v5698_v25 }
 0x620   :  { %v3043_v27 = vpop.f32.mrb[62].mxu0  ;;  %v3131_v28 = vpop.f32.mrb[70].mxu1 }
 0x621   :  { %v3047_v33 = vadd.f32 %v3043_v27, %v7114_v30  ;;  %v3135_v34 = vadd.f32 %v3131_v28, %v7117_v31  ;;  %v5108_v37 = vpop.f32.mrb[63].mxu0  ;;  %v5143_v38 = vpop.f32.mrb[71].mxu1  ;;  %v3501_v31 = vld [vmem:[%s7326_s12 + $0x10] sm:$0xff] }
 0x640   :  { %v3281_v61 = vpop.f32.mrb[64].mxu0 }
 0x641   :  { %v5720_v26 = vadd.f32 %v6704_v13, %v3281_v61  ;;  %v5181_v29 = vpop.f32.mrb[65].mxu0  ;;  %v3502_v13 = vld [vmem:[%s7326_s12 + $0x18] sm:$0xff] }
 0x642   :  { %v5704_v5 = vpack.c.bf16 %v3502_v13, %v3501_v31 }
 0x643   :  { %vm3286_vm10 = vcmp.ge.f32.partialorder %v5720_v26, 0.0  ;;  %v3287_v32 = vmul.f32 0.01, %v5720_v26 }
 0x645   :  { %v3288_v30 = vsel %vm3286_vm10, %v5720_v26, %v3287_v32 }
 0x646   :  { %5215 = vmatmul.mubr.f32.vlgmr.msra.gmra.mrb[72].mxu1 %v3288_v30  ;;  %5250 = vmatmul.mubr.f32.vlgmr.msra.gmra.mrb[66].mxu0 %v3288_v30 }
 0x647   :  { %5702 = vmatpush3.bf16.msra.mxu1 %v5701_v36  ;;  %5260 = vmatprep.mubr.msk.f32.mxu1 %vm5799_vm0, %v5800_v4 }
 0x648   :  { %5703 = vmatprep.subr.bf16.mxu1 %v5798_v2 }
 0x64b   :  { %5705 = vmatpush3.bf16.msra.mxu1 %v5704_v5 }
 0x64c   :  { %5706 = vmatprep.subr.bf16.mxu1 %v5798_v2 }
 0x719   :  { %v3372_v12 = vpop.f32.mrb[72].mxu1  ;;  %v3460_v17 = vpop.f32.mrb[66].mxu0 }
 0x71a   :  { %v3376_v21 = vadd.f32 %v3372_v12, %v3047_v33  ;;  %v3464_v41 = vadd.f32 %v3460_v17, %v3135_v34  ;;  %v5216_v42 = vpop.f32.mrb[73].mxu1  ;;  %v5251_v43 = vpop.f32.mrb[67].mxu0 }
 0x71c   :  { %v3472_v44 = vadd.f32 %v3970_v62, %v3376_v21  ;;  %v3498_v46 = vadd.f32 %v3972_v19, %v3464_v41 }
 0x71e   :  { %v3474_v48 = vmul.f32 0.01, %v3472_v44  ;;  %5261 = vmatmul.mubr.msk.f32.vlgmr.msra.gmra.mrb[74].mxu1 %vm787_vm4, %v3498_v46  ;;  %vm3473_vm11 = vcmp.ge.f32.partialorder %v3472_v44, 0.0 }
 0x71f   :  { %5271 = vmatprep.mubr.msk.f32.mxu1 %vm5799_vm0, %v5800_v4  ;;  %5708 = vmatpush3.bf16.msra.mxu1 %v5707_v54  ;;  %v3977_v4 = vld [vmem:[%s7326_s12 + $0x30] sm:$0xff]  ;;  %vm3678_vm0 = vcmask 254976   ;;  %s3488_s12 = sld [smem:[#allocation4]] }
 0x720   :  { %v3475_v14 = vsel %vm3473_vm11, %v3472_v44, %v3474_v48  ;;  %5709 = vmatprep.subr.bf16.mxu1 %v5798_v2  ;;  %v5710_v56 = vpack.c.bf16 %v3978_v55, %v3977_v4  ;;  %v3980_v2 = vld [vmem:[%s7327_s13 + $0x1] ss:$0 sm:$0xff] }
 0x721   :  { %v3483_v50 = vmul.f32 %v3971_v49, %v3475_v14 }
 0x723   :  { %v3485_v51 = vsel %vm3484_vm12, %v3483_v50, 0.0  ;;  %5711 = vmatpush3.bf16.msra.mxu1 %v5710_v56 }
 0x724   :  { %3486 = vadd.xlane.f32.xlu0 %v3485_v51 }
 0x725   :  { %v3489_v16 = vstv %s3488_s12 }
 0x7b1   :  { %v3487_v18 = vpop.xlane.xlu0 %3486 }
 0x7b2   :  { %v3490_v20 = vadd.f32 %v3489_v16, %v3487_v18 }
 0x7f1   :  { %v3579_v59 = vpop.f32.mrb[74].mxu1 }
 0x7f2   :  { %v3580_v60 = vadd.f32 %v3973_v57, %v3579_v59  ;;  %v5262_v63 = vpop.f32.mrb[75].mxu1 }
 0x7f4   :  { %v3583_v0 = vmax.f32 %v3580_v60, 0.0 }
 0x7f6   :  { %5272 = vmatmul.mubr.msk.f32.vlgmr.msra.gmra.mrb[76].mxu1 %vm787_vm4, %v3583_v0  ;;  %vm3687_vm4 = vcmp.eq.s32.totalorder %v3686_v47, 0 }
 0x7f7   :  { %v3688_v23 = vsel %vm3687_vm4, %v3490_v20, 0.0 }
 0x8c9   :  { %v3666_v1 = vpop.f32.mrb[76].mxu1 }
 0x8ca   :  { %v3667_v6 = vadd.f32 %v3980_v2, %v3666_v1  ;;  %v5273_v7 = vpop.f32.mrb[77].mxu1 }
 0x8cc   :  { %v3677_v8 = vmul.f32 %v3982_v35, %v3667_v6 }
 0x8ce   :  { %v3679_v11 = vsel %vm3678_vm0, %v3677_v8, 0.0 }
 0x8cf   :  { %3680 = vadd.xlane.f32.xlu0 %v3679_v11 }
 0x95c   :  { %v3681_v9 = vpop.xlane.xlu0 %3680 }
 0x95d   :  { %v3684_v10 = vadd.f32 %v3683_v3, %v3681_v9 }
 0x95f   :  { %v3690_v45 = vsel %vm3689_vm13, %v3684_v10, 0.0 }
 0x960   :  { %v3691_v22 = vadd.f32 %v3690_v45, %v3688_v23 }
 0x962   :  { %3692 = vst [vmem:[%s7330_s16] sm:$0x3] %v3691_v22 }
 0x963   :  { %3697 = vsyncpa [#allocation5], 1 }

</bundles_post_ra>
